<compile_context>
chip_gen: v6e
topology: v6e:2x2x1
jax: 0.10.0
libtpu: 0.0.40
codegen_flags: <defaults>
</compile_context>

<pallas_src>
import functools

import jax
import jax.numpy as jnp
from jax.experimental import pallas as pl
from jax.experimental.pallas import tpu as pltpu


def _round_up(x: int, m: int) -> int:
    return ((x + m - 1) // m) * m


def _sigmoid(x):
    # Single EUP op (tanh) per gate group instead of exp + reciprocal.
    return 0.5 * jnp.tanh(0.5 * x) + 0.5


def _lstm_recurrence_kernel(xw_ref, u_ref, b_ref, o_ref, h_sc, c_sc, *,
                            chunk, n_il, bt, hp, seq_len, mask_tail):
    """Serial LSTM recurrence over one chunk of timesteps.

    xw_ref: (n_il*bt, chunk, 4*hp) compute-dtype, precomputed x @ W_fused
    u_ref : (hp, 4*hp)             compute-dtype, fused [i|f|o|c] weights
    b_ref : (1, 4*hp)              f32, fused bias
    o_ref : (n_il*bt, hp)          f32, final hidden state (last chunk only)
    h_sc, c_sc: (n_il, bt, hp)     f32 VMEM scratch carrying the state
    """
    t_idx = pl.program_id(1)

    # Re-initialize the recurrent state at the start of every batch tile.
    @pl.when(t_idx == 0)
    def _():
        h_sc[...] = jnp.zeros_like(h_sc)
        c_sc[...] = jnp.zeros_like(c_sc)

    u = u_ref[...]                                          # resident slab
    bias = jnp.broadcast_to(b_ref[...], (bt, 4 * hp)).astype(jnp.float32)

    h_list = [h_sc[k] for k in range(n_il)]
    c_list = [c_sc[k] for k in range(n_il)]

    t_base = t_idx * chunk
    for j in range(chunk):                  # static unroll over timesteps
        for k in range(n_il):               # independent batch tiles (overlap)
            h, c = h_list[k], c_list[k]
            # x@W is precomputed off the serial path; bias added here in f32.
            pre = (xw_ref[k * bt:(k + 1) * bt, j, :].astype(jnp.float32)
                   + bias)
            # Only the hidden->gate matmul sits on the serial critical path.
            g = pre + jnp.dot(h.astype(u.dtype), u,
                              preferred_element_type=jnp.float32)
            ifo = _sigmoid(g[:, :3 * hp])   # fused i/f/o (lane-aligned slices)
            i_g = ifo[:, :hp]
            f_g = ifo[:, hp:2 * hp]
            o_g = ifo[:, 2 * hp:3 * hp]
            c_t = jnp.tanh(g[:, 3 * hp:])
            c_new = f_g * c + i_g * c_t
            h_new = o_g * jnp.tanh(c_new)
            if mask_tail:
                # Freeze the state on padded timesteps (seq_len % chunk != 0).
                valid = (t_base + j) < seq_len
                h_new = jnp.where(valid, h_new, h)
                c_new = jnp.where(valid, c_new, c)
            h_list[k], c_list[k] = h_new, c_new

    for k in range(n_il):
        h_sc[k] = h_list[k]
        c_sc[k] = c_list[k]

    # Store the output only once, on the final time chunk.
    @pl.when(t_idx == pl.num_programs(1) - 1)
    def _():
        for k in range(n_il):
            o_ref[k * bt:(k + 1) * bt, :] = h_list[k].astype(o_ref.dtype)


def lstm_forward(inputs, W, U, b, *, compute_dtype=jnp.bfloat16,
                 time_chunk=16, batch_tile=None, interleave=1):
    """inputs: (batch, seq_len, input_size) f32.
    W: (4, input_size, hidden), U: (4, hidden, hidden), b: (4, 1, hidden),
    gate order [i, f, o, c].  Returns the final hidden state (batch, hidden)
    in f32.  compute_dtype is the MXU / xw streaming dtype (bf16 fast path;
    jnp.float32 for exact results)."""
    batch, seq_len, input_size = inputs.shape
    hidden = W.shape[-1]
    hp = _round_up(hidden, 128)          # lane-align each gate
    G = 4 * hp
    pad_h = hp - hidden

    # ---- Fuse the four gates into lane-padded slabs ------------------------
    Wf = jnp.concatenate([jnp.pad(W[k], ((0, 0), (0, pad_h)))
                          for k in range(4)], axis=1).astype(compute_dtype)
    Uf = jnp.concatenate([jnp.pad(U[k], ((0, pad_h), (0, pad_h)))
                          for k in range(4)], axis=1).astype(compute_dtype)
    bf = jnp.concatenate([jnp.pad(b[k], ((0, 0), (0, pad_h)))
                          for k in range(4)], axis=1).astype(jnp.float32)

    # ---- Batch-tile / interleave selection ----------------------------------
    if batch_tile is None:
        if batch >= 256:
            bt = 256                     # fills the 2x256^2 MXU on v6e/v7x
        elif batch >= 128:
            bt = 128
        else:
            bt = _round_up(batch, 8)
    else:
        bt = max(8, _round_up(batch_tile, 8))
    n_il = max(1, int(interleave))
    block_rows = bt * n_il
    b_pad = _round_up(batch, block_rows)
    # TODO(synk): on v7x choose bt so that b_pad // block_rows >= 2 and the
    # "parallel" batch axis actually shards across the 2 TensorCores.

    # ---- Time chunking ------------------------------------------------------
    time_chunk = max(8, _round_up(time_chunk, 8))
    time_chunk = min(time_chunk, _round_up(seq_len, 8))
    s_pad = _round_up(seq_len, time_chunk)

    x = inputs
    if (b_pad, s_pad) != (batch, seq_len):
        x = jnp.pad(x, ((0, b_pad - batch), (0, s_pad - seq_len), (0, 0)))
    x = x.astype(compute_dtype)

    # ---- Hoisted, fully parallel input projection (off the serial path) ----
    # Kept batch-major (B, S, 4Hp): no HBM transpose pass.  Streamed to the
    # kernel in compute_dtype (bf16 default); the f32 bias is added in-kernel.
    xw = jnp.einsum("bsd,dg->bsg", x, Wf,
                    preferred_element_type=jnp.float32).astype(compute_dtype)

    kernel = functools.partial(
        _lstm_recurrence_kernel,
        chunk=time_chunk, n_il=n_il, bt=bt, hp=hp,
        seq_len=seq_len, mask_tail=(s_pad != seq_len))

    # ---- Explicit VMEM budget: U + bias + 2x xw block + 2x out + scratch ---
    csize = jnp.dtype(compute_dtype).itemsize
    need = (hp * G * csize                                   # U (single copy)
            + 8 * G * 4                                      # bias
            + 2 * block_rows * time_chunk * G * csize        # xw double buffer
            + 2 * block_rows * hp * 4                        # out double buffer
            + 2 * n_il * bt * hp * 4)                        # h/c scratch
    vmem_limit = int(min(64 * 1024 * 1024, max(4 * need, 32 * 1024 * 1024)))
    # TODO(synk): at production hidden sizes (H*4Hp*2B > ~40 MiB) on v7x
    # (64 MiB VMEM) the U slab must additionally be tiled along its
    # contraction axis with an inner accumulation loop.

    h_final = pl.pallas_call(
        kernel,
        out_shape=jax.ShapeDtypeStruct((b_pad, hp), jnp.float32),
        grid_spec=pltpu.PrefetchScalarGridSpec(
            num_scalar_prefetch=0,
            grid=(b_pad // block_rows, s_pad // time_chunk),
            in_specs=[
                # xw streamed batch-major; last two block dims (chunk, G)
                # satisfy the (8, 128) constraint.
                pl.BlockSpec((block_rows, time_chunk, G),
                             lambda bi, t: (bi, t, 0)),
                # Weight slab + bias: single resident VMEM copy (no
                # per-grid-step DMA, no double buffering).
                pl.BlockSpec(memory_space=pltpu.MemorySpace.VMEM),
                pl.BlockSpec(memory_space=pltpu.MemorySpace.VMEM),
            ],
            out_specs=pl.BlockSpec((block_rows, hp), lambda bi, t: (bi, 0)),
            scratch_shapes=[
                pltpu.VMEM((n_il, bt, hp), jnp.float32),   # hidden-state carry
                pltpu.VMEM((n_il, bt, hp), jnp.float32),   # cell-state carry
            ],
        ),
        compiler_params=pltpu.CompilerParams(
            # Batch tiles are independent (megacore / v7x 2nd TensorCore);
            # the time axis is a true recurrence.
            dimension_semantics=("parallel", "arbitrary"),
            vmem_limit_bytes=vmem_limit,
        ),
    )(xw, Uf, bf)

    return h_final[:batch, :hidden]


def lstm_reference(inputs, W, U, b):
    """Pure-JAX f32 reference matching the PyTorch forward exactly."""
    batch = inputs.shape[0]
    hidden = W.shape[-1]
    h = jnp.zeros((batch, hidden), jnp.float32)
    c = jnp.zeros((batch, hidden), jnp.float32)

    def step(carry, x_t):
        h, c = carry
        i_g = jax.nn.sigmoid(x_t @ W[0] + h @ U[0] + b[0])
        f_g = jax.nn.sigmoid(x_t @ W[1] + h @ U[1] + b[1])
        o_g = jax.nn.sigmoid(x_t @ W[2] + h @ U[2] + b[2])
        c_t = jnp.tanh(x_t @ W[3] + h @ U[3] + b[3])
        c_new = f_g * c + i_g * c_t
        h_new = o_g * jnp.tanh(c_new)
        return (h_new, c_new), None

    (h, c), _ = jax.lax.scan(step, (h, c), jnp.transpose(inputs, (1, 0, 2)))
    return h


if __name__ == "__main__":
    key = jax.random.PRNGKey(0)

    # ---- Test 1: module-sized toy problem (batch=2, seq=8, D=16, H=32) -----
    batch, seq_len, input_size, hidden = 2, 8, 16, 32
    kx, kw, ku, kb = jax.random.split(key, 4)
    # The PyTorch module defaults its parameters to zeros; use small random
    # values instead so the recurrence is non-trivial.
    x = jax.random.normal(kx, (batch, seq_len, input_size), jnp.float32)
    W = 0.1 * jax.random.normal(kw, (4, input_size, hidden), jnp.float32)
    U = 0.1 * jax.random.normal(ku, (4, hidden, hidden), jnp.float32)
    b = 0.1 * jax.random.normal(kb, (4, 1, hidden), jnp.float32)

    ref = lstm_reference(x, W, U, b)

    out_f32 = jax.block_until_ready(
        lstm_forward(x, W, U, b, compute_dtype=jnp.float32))
    assert out_f32.shape == (batch, hidden)
    assert jnp.allclose(out_f32, ref, atol=1e-4, rtol=1e-4), \
        "f32 mismatch vs reference"

    out_bf16 = jax.block_until_ready(
        lstm_forward(x, W, U, b, compute_dtype=jnp.bfloat16))
    assert out_bf16.shape == (batch, hidden)
    assert jnp.allclose(out_bf16, ref, atol=5e-2, rtol=5e-2), \
        "bf16 mismatch vs reference"

    # ---- Test 2: exercises batch/seq/hidden padding, state carry across ----
    # time chunks, tail-timestep masking and the interleaved-batch-tile path.
    batch2, seq2, in2, hid2 = 20, 20, 16, 40
    k2 = jax.random.split(key, 8)
    x2 = jax.random.normal(k2[4], (batch2, seq2, in2), jnp.float32)
    W2 = 0.1 * jax.random.normal(k2[5], (4, in2, hid2), jnp.float32)
    U2 = 0.1 * jax.random.normal(k2[6], (4, hid2, hid2), jnp.float32)
    b2 = 0.1 * jax.random.normal(k2[7], (4, 1, hid2), jnp.float32)
    ref2 = lstm_reference(x2, W2, U2, b2)
    out2 = jax.block_until_ready(
        lstm_forward(x2, W2, U2, b2, compute_dtype=jnp.float32,
                     time_chunk=16, batch_tile=8, interleave=2))
    assert out2.shape == (batch2, hid2)
    assert jnp.allclose(out2, ref2, atol=1e-4, rtol=1e-4), \
        "interleaved/padded mismatch vs reference"

    print("KERNEL_OK")
</pallas_src>

<mosaic_0001>
module attributes {stable_mosaic.version = 11 : i64} {
  func.func @_lstm_recurrence_kernel(%arg0: i32, %arg1: i32, %arg2: memref<8x8x512xf32, #tpu.memory_space<vmem>>, %arg3: memref<128x512xf32, #tpu.memory_space<vmem>>, %arg4: memref<1x512xf32, #tpu.memory_space<vmem>>, %arg5: memref<8x128xf32, #tpu.memory_space<vmem>>, %arg6: memref<1x8x128xf32, #tpu.memory_space<vmem>>, %arg7: memref<1x8x128xf32, #tpu.memory_space<vmem>>) attributes {dimension_semantics = [#tpu.dimension_semantics<parallel>, #tpu.dimension_semantics<arbitrary>], iteration_bounds = array<i64: 1, 1>, scalar_prefetch = 0 : i64, scratch_operands = 2 : i64, tpu.core_type = #tpu.core_type<tc>, window_params = [{transform_indices = @transform_0, window_bounds = array<i64: 8, 8, 512>}, {pipeline_mode = #tpu.pipeline_mode<synchronous>, transform_indices = @transform_1, window_bounds = array<i64: 128, 512>}, {pipeline_mode = #tpu.pipeline_mode<synchronous>, transform_indices = @transform_2, window_bounds = array<i64: 1, 512>}, {transform_indices = @transform_3, window_bounds = array<i64: 8, 128>}]} {
    %c0_i32 = arith.constant 0 : i32
    %0 = arith.cmpi eq, %arg1, %c0_i32 : i32
    %1 = arith.extui %0 : i1 to i32
    %c0_i32_0 = arith.constant 0 : i32
    %2 = arith.cmpi ne, %1, %c0_i32_0 : i32
    scf.if %2 {
      %cst_66 = arith.constant 0.000000e+00 : f32
      %204 = vector.broadcast %cst_66 : f32 to vector<1x8x128xf32>
      %c0_67 = arith.constant 0 : index
      %c0_68 = arith.constant 0 : index
      %c0_69 = arith.constant 0 : index
      %205 = vector.load %arg6[%c0_67, %c0_68, %c0_69] : memref<1x8x128xf32, #tpu.memory_space<vmem>>, vector<1x8x128xf32>
      tpu.vector_store %arg6[%c0_67, %c0_68, %c0_69], %204 {strides = array<i32>} : memref<1x8x128xf32, #tpu.memory_space<vmem>>, vector<1x8x128xf32>,
      %cst_70 = arith.constant 0.000000e+00 : f32
      %206 = vector.broadcast %cst_70 : f32 to vector<1x8x128xf32>
      %c0_71 = arith.constant 0 : index
      %c0_72 = arith.constant 0 : index
      %c0_73 = arith.constant 0 : index
      %207 = vector.load %arg7[%c0_71, %c0_72, %c0_73] : memref<1x8x128xf32, #tpu.memory_space<vmem>>, vector<1x8x128xf32>
      tpu.vector_store %arg7[%c0_71, %c0_72, %c0_73], %206 {strides = array<i32>} : memref<1x8x128xf32, #tpu.memory_space<vmem>>, vector<1x8x128xf32>,
    } else {
    }
    %c0 = arith.constant 0 : index
    %c0_1 = arith.constant 0 : index
    %3 = vector.load %arg3[%c0, %c0_1] : memref<128x512xf32, #tpu.memory_space<vmem>>, vector<128x512xf32>
    %c0_2 = arith.constant 0 : index
    %c0_3 = arith.constant 0 : index
    %4 = vector.load %arg4[%c0_2, %c0_3] : memref<1x512xf32, #tpu.memory_space<vmem>>, vector<1x512xf32>
    %5 = vector.shape_cast %4 : vector<1x512xf32> to vector<1x512xf32>
    %6 = vector.broadcast %5 : vector<1x512xf32> to vector<8x512xf32>
    %c0_4 = arith.constant 0 : index
    %c0_5 = arith.constant 0 : index
    %c0_6 = arith.constant 0 : index
    %7 = vector.load %arg6[%c0_4, %c0_5, %c0_6] : memref<1x8x128xf32, #tpu.memory_space<vmem>>, vector<1x8x128xf32>
    %8 = vector.shape_cast %7 : vector<1x8x128xf32> to vector<8x128xf32>
    %c0_7 = arith.constant 0 : index
    %c0_8 = arith.constant 0 : index
    %c0_9 = arith.constant 0 : index
    %9 = vector.load %arg7[%c0_7, %c0_8, %c0_9] : memref<1x8x128xf32, #tpu.memory_space<vmem>>, vector<1x8x128xf32>
    %10 = vector.shape_cast %9 : vector<1x8x128xf32> to vector<8x128xf32>
    %c0_10 = arith.constant 0 : index
    %c0_11 = arith.constant 0 : index
    %c0_12 = arith.constant 0 : index
    %11 = vector.load %arg2[%c0_10, %c0_11, %c0_12] : memref<8x8x512xf32, #tpu.memory_space<vmem>>, vector<8x1x512xf32>
    %12 = vector.shape_cast %11 : vector<8x1x512xf32> to vector<8x512xf32>
    %13 = arith.addf %12, %6 : vector<8x512xf32>
    %cst = arith.constant dense<0.000000e+00> : vector<8x512xf32>
    %14 = tpu.matmul %8, %3, %cst {dimension_numbers = #tpu.dot_dimension_numbers<[1], [0], [0], [1], [0, 0, 1, 1], [], []>} : vector<8x128xf32>, vector<128x512xf32>, vector<8x512xf32> -> vector<8x512xf32>
    %15 = arith.addf %13, %14 : vector<8x512xf32>
    %16 = vector.extract_strided_slice %15 {offsets = [0, 0], sizes = [8, 384], strides = [1, 1]} : vector<8x512xf32> to vector<8x384xf32>
    %cst_13 = arith.constant 5.000000e-01 : f32
    %17 = vector.broadcast %cst_13 : f32 to vector<8x384xf32>
    %18 = arith.mulf %17, %16 : vector<8x384xf32>
    %19 = math.tanh %18 : vector<8x384xf32>
    %cst_14 = arith.constant 5.000000e-01 : f32
    %20 = vector.broadcast %cst_14 : f32 to vector<8x384xf32>
    %21 = arith.mulf %20, %19 : vector<8x384xf32>
    %cst_15 = arith.constant 5.000000e-01 : f32
    %22 = vector.broadcast %cst_15 : f32 to vector<8x384xf32>
    %23 = arith.addf %21, %22 : vector<8x384xf32>
    %24 = vector.extract_strided_slice %23 {offsets = [0, 0], sizes = [8, 128], strides = [1, 1]} : vector<8x384xf32> to vector<8x128xf32>
    %25 = vector.extract_strided_slice %23 {offsets = [0, 128], sizes = [8, 128], strides = [1, 1]} : vector<8x384xf32> to vector<8x128xf32>
    %26 = vector.extract_strided_slice %23 {offsets = [0, 256], sizes = [8, 128], strides = [1, 1]} : vector<8x384xf32> to vector<8x128xf32>
    %27 = vector.extract_strided_slice %15 {offsets = [0, 384], sizes = [8, 128], strides = [1, 1]} : vector<8x512xf32> to vector<8x128xf32>
    %28 = math.tanh %27 : vector<8x128xf32>
    %29 = arith.mulf %25, %10 : vector<8x128xf32>
    %30 = arith.mulf %24, %28 : vector<8x128xf32>
    %31 = arith.addf %29, %30 : vector<8x128xf32>
    %32 = math.tanh %31 : vector<8x128xf32>
    %33 = arith.mulf %26, %32 : vector<8x128xf32>
    %c0_16 = arith.constant 0 : index
    %c1 = arith.constant 1 : index
    %c0_17 = arith.constant 0 : index
    %34 = vector.load %arg2[%c0_16, %c1, %c0_17] : memref<8x8x512xf32, #tpu.memory_space<vmem>>, vector<8x1x512xf32>
    %35 = vector.shape_cast %34 : vector<8x1x512xf32> to vector<8x512xf32>
    %36 = arith.addf %35, %6 : vector<8x512xf32>
    %cst_18 = arith.constant dense<0.000000e+00> : vector<8x512xf32>
    %37 = tpu.matmul %33, %3, %cst_18 {dimension_numbers = #tpu.dot_dimension_numbers<[1], [0], [0], [1], [0, 0, 1, 1], [], []>} : vector<8x128xf32>, vector<128x512xf32>, vector<8x512xf32> -> vector<8x512xf32>
    %38 = arith.addf %36, %37 : vector<8x512xf32>
    %39 = vector.extract_strided_slice %38 {offsets = [0, 0], sizes = [8, 384], strides = [1, 1]} : vector<8x512xf32> to vector<8x384xf32>
    %cst_19 = arith.constant 5.000000e-01 : f32
    %40 = vector.broadcast %cst_19 : f32 to vector<8x384xf32>
    %41 = arith.mulf %40, %39 : vector<8x384xf32>
    %42 = math.tanh %41 : vector<8x384xf32>
    %cst_20 = arith.constant 5.000000e-01 : f32
    %43 = vector.broadcast %cst_20 : f32 to vector<8x384xf32>
    %44 = arith.mulf %43, %42 : vector<8x384xf32>
    %cst_21 = arith.constant 5.000000e-01 : f32
    %45 = vector.broadcast %cst_21 : f32 to vector<8x384xf32>
    %46 = arith.addf %44, %45 : vector<8x384xf32>
    %47 = vector.extract_strided_slice %46 {offsets = [0, 0], sizes = [8, 128], strides = [1, 1]} : vector<8x384xf32> to vector<8x128xf32>
    %48 = vector.extract_strided_slice %46 {offsets = [0, 128], sizes = [8, 128], strides = [1, 1]} : vector<8x384xf32> to vector<8x128xf32>
    %49 = vector.extract_strided_slice %46 {offsets = [0, 256], sizes = [8, 128], strides = [1, 1]} : vector<8x384xf32> to vector<8x128xf32>
    %50 = vector.extract_strided_slice %38 {offsets = [0, 384], sizes = [8, 128], strides = [1, 1]} : vector<8x512xf32> to vector<8x128xf32>
    %51 = math.tanh %50 : vector<8x128xf32>
    %52 = arith.mulf %48, %31 : vector<8x128xf32>
    %53 = arith.mulf %47, %51 : vector<8x128xf32>
    %54 = arith.addf %52, %53 : vector<8x128xf32>
    %55 = math.tanh %54 : vector<8x128xf32>
    %56 = arith.mulf %49, %55 : vector<8x128xf32>
    %c0_22 = arith.constant 0 : index
    %c2 = arith.constant 2 : index
    %c0_23 = arith.constant 0 : index
    %57 = vector.load %arg2[%c0_22, %c2, %c0_23] : memref<8x8x512xf32, #tpu.memory_space<vmem>>, vector<8x1x512xf32>
    %58 = vector.shape_cast %57 : vector<8x1x512xf32> to vector<8x512xf32>
    %59 = arith.addf %58, %6 : vector<8x512xf32>
    %cst_24 = arith.constant dense<0.000000e+00> : vector<8x512xf32>
    %60 = tpu.matmul %56, %3, %cst_24 {dimension_numbers = #tpu.dot_dimension_numbers<[1], [0], [0], [1], [0, 0, 1, 1], [], []>} : vector<8x128xf32>, vector<128x512xf32>, vector<8x512xf32> -> vector<8x512xf32>
    %61 = arith.addf %59, %60 : vector<8x512xf32>
    %62 = vector.extract_strided_slice %61 {offsets = [0, 0], sizes = [8, 384], strides = [1, 1]} : vector<8x512xf32> to vector<8x384xf32>
    %cst_25 = arith.constant 5.000000e-01 : f32
    %63 = vector.broadcast %cst_25 : f32 to vector<8x384xf32>
    %64 = arith.mulf %63, %62 : vector<8x384xf32>
    %65 = math.tanh %64 : vector<8x384xf32>
    %cst_26 = arith.constant 5.000000e-01 : f32
    %66 = vector.broadcast %cst_26 : f32 to vector<8x384xf32>
    %67 = arith.mulf %66, %65 : vector<8x384xf32>
    %cst_27 = arith.constant 5.000000e-01 : f32
    %68 = vector.broadcast %cst_27 : f32 to vector<8x384xf32>
    %69 = arith.addf %67, %68 : vector<8x384xf32>
    %70 = vector.extract_strided_slice %69 {offsets = [0, 0], sizes = [8, 128], strides = [1, 1]} : vector<8x384xf32> to vector<8x128xf32>
    %71 = vector.extract_strided_slice %69 {offsets = [0, 128], sizes = [8, 128], strides = [1, 1]} : vector<8x384xf32> to vector<8x128xf32>
    %72 = vector.extract_strided_slice %69 {offsets = [0, 256], sizes = [8, 128], strides = [1, 1]} : vector<8x384xf32> to vector<8x128xf32>
    %73 = vector.extract_strided_slice %61 {offsets = [0, 384], sizes = [8, 128], strides = [1, 1]} : vector<8x512xf32> to vector<8x128xf32>
    %74 = math.tanh %73 : vector<8x128xf32>
    %75 = arith.mulf %71, %54 : vector<8x128xf32>
    %76 = arith.mulf %70, %74 : vector<8x128xf32>
    %77 = arith.addf %75, %76 : vector<8x128xf32>
    %78 = math.tanh %77 : vector<8x128xf32>
    %79 = arith.mulf %72, %78 : vector<8x128xf32>
    %c0_28 = arith.constant 0 : index
    %c3 = arith.constant 3 : index
    %c0_29 = arith.constant 0 : index
    %80 = vector.load %arg2[%c0_28, %c3, %c0_29] : memref<8x8x512xf32, #tpu.memory_space<vmem>>, vector<8x1x512xf32>
    %81 = vector.shape_cast %80 : vector<8x1x512xf32> to vector<8x512xf32>
    %82 = arith.addf %81, %6 : vector<8x512xf32>
    %cst_30 = arith.constant dense<0.000000e+00> : vector<8x512xf32>
    %83 = tpu.matmul %79, %3, %cst_30 {dimension_numbers = #tpu.dot_dimension_numbers<[1], [0], [0], [1], [0, 0, 1, 1], [], []>} : vector<8x128xf32>, vector<128x512xf32>, vector<8x512xf32> -> vector<8x512xf32>
    %84 = arith.addf %82, %83 : vector<8x512xf32>
    %85 = vector.extract_strided_slice %84 {offsets = [0, 0], sizes = [8, 384], strides = [1, 1]} : vector<8x512xf32> to vector<8x384xf32>
    %cst_31 = arith.constant 5.000000e-01 : f32
    %86 = vector.broadcast %cst_31 : f32 to vector<8x384xf32>
    %87 = arith.mulf %86, %85 : vector<8x384xf32>
    %88 = math.tanh %87 : vector<8x384xf32>
    %cst_32 = arith.constant 5.000000e-01 : f32
    %89 = vector.broadcast %cst_32 : f32 to vector<8x384xf32>
    %90 = arith.mulf %89, %88 : vector<8x384xf32>
    %cst_33 = arith.constant 5.000000e-01 : f32
    %91 = vector.broadcast %cst_33 : f32 to vector<8x384xf32>
    %92 = arith.addf %90, %91 : vector<8x384xf32>
    %93 = vector.extract_strided_slice %92 {offsets = [0, 0], sizes = [8, 128], strides = [1, 1]} : vector<8x384xf32> to vector<8x128xf32>
    %94 = vector.extract_strided_slice %92 {offsets = [0, 128], sizes = [8, 128], strides = [1, 1]} : vector<8x384xf32> to vector<8x128xf32>
    %95 = vector.extract_strided_slice %92 {offsets = [0, 256], sizes = [8, 128], strides = [1, 1]} : vector<8x384xf32> to vector<8x128xf32>
    %96 = vector.extract_strided_slice %84 {offsets = [0, 384], sizes = [8, 128], strides = [1, 1]} : vector<8x512xf32> to vector<8x128xf32>
    %97 = math.tanh %96 : vector<8x128xf32>
    %98 = arith.mulf %94, %77 : vector<8x128xf32>
    %99 = arith.mulf %93, %97 : vector<8x128xf32>
    %100 = arith.addf %98, %99 : vector<8x128xf32>
    %101 = math.tanh %100 : vector<8x128xf32>
    %102 = arith.mulf %95, %101 : vector<8x128xf32>
    %c0_34 = arith.constant 0 : index
    %c4 = arith.constant 4 : index
    %c0_35 = arith.constant 0 : index
    %103 = vector.load %arg2[%c0_34, %c4, %c0_35] : memref<8x8x512xf32, #tpu.memory_space<vmem>>, vector<8x1x512xf32>
    %104 = vector.shape_cast %103 : vector<8x1x512xf32> to vector<8x512xf32>
    %105 = arith.addf %104, %6 : vector<8x512xf32>
    %cst_36 = arith.constant dense<0.000000e+00> : vector<8x512xf32>
    %106 = tpu.matmul %102, %3, %cst_36 {dimension_numbers = #tpu.dot_dimension_numbers<[1], [0], [0], [1], [0, 0, 1, 1], [], []>} : vector<8x128xf32>, vector<128x512xf32>, vector<8x512xf32> -> vector<8x512xf32>
    %107 = arith.addf %105, %106 : vector<8x512xf32>
    %108 = vector.extract_strided_slice %107 {offsets = [0, 0], sizes = [8, 384], strides = [1, 1]} : vector<8x512xf32> to vector<8x384xf32>
    %cst_37 = arith.constant 5.000000e-01 : f32
    %109 = vector.broadcast %cst_37 : f32 to vector<8x384xf32>
    %110 = arith.mulf %109, %108 : vector<8x384xf32>
    %111 = math.tanh %110 : vector<8x384xf32>
    %cst_38 = arith.constant 5.000000e-01 : f32
    %112 = vector.broadcast %cst_38 : f32 to vector<8x384xf32>
    %113 = arith.mulf %112, %111 : vector<8x384xf32>
    %cst_39 = arith.constant 5.000000e-01 : f32
    %114 = vector.broadcast %cst_39 : f32 to vector<8x384xf32>
    %115 = arith.addf %113, %114 : vector<8x384xf32>
    %116 = vector.extract_strided_slice %115 {offsets = [0, 0], sizes = [8, 128], strides = [1, 1]} : vector<8x384xf32> to vector<8x128xf32>
    %117 = vector.extract_strided_slice %115 {offsets = [0, 128], sizes = [8, 128], strides = [1, 1]} : vector<8x384xf32> to vector<8x128xf32>
    %118 = vector.extract_strided_slice %115 {offsets = [0, 256], sizes = [8, 128], strides = [1, 1]} : vector<8x384xf32> to vector<8x128xf32>
    %119 = vector.extract_strided_slice %107 {offsets = [0, 384], sizes = [8, 128], strides = [1, 1]} : vector<8x512xf32> to vector<8x128xf32>
    %120 = math.tanh %119 : vector<8x128xf32>
    %121 = arith.mulf %117, %100 : vector<8x128xf32>
    %122 = arith.mulf %116, %120 : vector<8x128xf32>
    %123 = arith.addf %121, %122 : vector<8x128xf32>
    %124 = math.tanh %123 : vector<8x128xf32>
    %125 = arith.mulf %118, %124 : vector<8x128xf32>
    %c0_40 = arith.constant 0 : index
    %c5 = arith.constant 5 : index
    %c0_41 = arith.constant 0 : index
    %126 = vector.load %arg2[%c0_40, %c5, %c0_41] : memref<8x8x512xf32, #tpu.memory_space<vmem>>, vector<8x1x512xf32>
    %127 = vector.shape_cast %126 : vector<8x1x512xf32> to vector<8x512xf32>
    %128 = arith.addf %127, %6 : vector<8x512xf32>
    %cst_42 = arith.constant dense<0.000000e+00> : vector<8x512xf32>
    %129 = tpu.matmul %125, %3, %cst_42 {dimension_numbers = #tpu.dot_dimension_numbers<[1], [0], [0], [1], [0, 0, 1, 1], [], []>} : vector<8x128xf32>, vector<128x512xf32>, vector<8x512xf32> -> vector<8x512xf32>
    %130 = arith.addf %128, %129 : vector<8x512xf32>
    %131 = vector.extract_strided_slice %130 {offsets = [0, 0], sizes = [8, 384], strides = [1, 1]} : vector<8x512xf32> to vector<8x384xf32>
    %cst_43 = arith.constant 5.000000e-01 : f32
    %132 = vector.broadcast %cst_43 : f32 to vector<8x384xf32>
    %133 = arith.mulf %132, %131 : vector<8x384xf32>
    %134 = math.tanh %133 : vector<8x384xf32>
    %cst_44 = arith.constant 5.000000e-01 : f32
    %135 = vector.broadcast %cst_44 : f32 to vector<8x384xf32>
    %136 = arith.mulf %135, %134 : vector<8x384xf32>
    %cst_45 = arith.constant 5.000000e-01 : f32
    %137 = vector.broadcast %cst_45 : f32 to vector<8x384xf32>
    %138 = arith.addf %136, %137 : vector<8x384xf32>
    %139 = vector.extract_strided_slice %138 {offsets = [0, 0], sizes = [8, 128], strides = [1, 1]} : vector<8x384xf32> to vector<8x128xf32>
    %140 = vector.extract_strided_slice %138 {offsets = [0, 128], sizes = [8, 128], strides = [1, 1]} : vector<8x384xf32> to vector<8x128xf32>
    %141 = vector.extract_strided_slice %138 {offsets = [0, 256], sizes = [8, 128], strides = [1, 1]} : vector<8x384xf32> to vector<8x128xf32>
    %142 = vector.extract_strided_slice %130 {offsets = [0, 384], sizes = [8, 128], strides = [1, 1]} : vector<8x512xf32> to vector<8x128xf32>
    %143 = math.tanh %142 : vector<8x128xf32>
    %144 = arith.mulf %140, %123 : vector<8x128xf32>
    %145 = arith.mulf %139, %143 : vector<8x128xf32>
    %146 = arith.addf %144, %145 : vector<8x128xf32>
    %147 = math.tanh %146 : vector<8x128xf32>
    %148 = arith.mulf %141, %147 : vector<8x128xf32>
    %c0_46 = arith.constant 0 : index
    %c6 = arith.constant 6 : index
    %c0_47 = arith.constant 0 : index
    %149 = vector.load %arg2[%c0_46, %c6, %c0_47] : memref<8x8x512xf32, #tpu.memory_space<vmem>>, vector<8x1x512xf32>
    %150 = vector.shape_cast %149 : vector<8x1x512xf32> to vector<8x512xf32>
    %151 = arith.addf %150, %6 : vector<8x512xf32>
    %cst_48 = arith.constant dense<0.000000e+00> : vector<8x512xf32>
    %152 = tpu.matmul %148, %3, %cst_48 {dimension_numbers = #tpu.dot_dimension_numbers<[1], [0], [0], [1], [0, 0, 1, 1], [], []>} : vector<8x128xf32>, vector<128x512xf32>, vector<8x512xf32> -> vector<8x512xf32>
    %153 = arith.addf %151, %152 : vector<8x512xf32>
    %154 = vector.extract_strided_slice %153 {offsets = [0, 0], sizes = [8, 384], strides = [1, 1]} : vector<8x512xf32> to vector<8x384xf32>
    %cst_49 = arith.constant 5.000000e-01 : f32
    %155 = vector.broadcast %cst_49 : f32 to vector<8x384xf32>
    %156 = arith.mulf %155, %154 : vector<8x384xf32>
    %157 = math.tanh %156 : vector<8x384xf32>
    %cst_50 = arith.constant 5.000000e-01 : f32
    %158 = vector.broadcast %cst_50 : f32 to vector<8x384xf32>
    %159 = arith.mulf %158, %157 : vector<8x384xf32>
    %cst_51 = arith.constant 5.000000e-01 : f32
    %160 = vector.broadcast %cst_51 : f32 to vector<8x384xf32>
    %161 = arith.addf %159, %160 : vector<8x384xf32>
    %162 = vector.extract_strided_slice %161 {offsets = [0, 0], sizes = [8, 128], strides = [1, 1]} : vector<8x384xf32> to vector<8x128xf32>
    %163 = vector.extract_strided_slice %161 {offsets = [0, 128], sizes = [8, 128], strides = [1, 1]} : vector<8x384xf32> to vector<8x128xf32>
    %164 = vector.extract_strided_slice %161 {offsets = [0, 256], sizes = [8, 128], strides = [1, 1]} : vector<8x384xf32> to vector<8x128xf32>
    %165 = vector.extract_strided_slice %153 {offsets = [0, 384], sizes = [8, 128], strides = [1, 1]} : vector<8x512xf32> to vector<8x128xf32>
    %166 = math.tanh %165 : vector<8x128xf32>
    %167 = arith.mulf %163, %146 : vector<8x128xf32>
    %168 = arith.mulf %162, %166 : vector<8x128xf32>
    %169 = arith.addf %167, %168 : vector<8x128xf32>
    %170 = math.tanh %169 : vector<8x128xf32>
    %171 = arith.mulf %164, %170 : vector<8x128xf32>
    %c0_52 = arith.constant 0 : index
    %c7 = arith.constant 7 : index
    %c0_53 = arith.constant 0 : index
    %172 = vector.load %arg2[%c0_52, %c7, %c0_53] : memref<8x8x512xf32, #tpu.memory_space<vmem>>, vector<8x1x512xf32>
    %173 = vector.shape_cast %172 : vector<8x1x512xf32> to vector<8x512xf32>
    %174 = arith.addf %173, %6 : vector<8x512xf32>
    %cst_54 = arith.constant dense<0.000000e+00> : vector<8x512xf32>
    %175 = tpu.matmul %171, %3, %cst_54 {dimension_numbers = #tpu.dot_dimension_numbers<[1], [0], [0], [1], [0, 0, 1, 1], [], []>} : vector<8x128xf32>, vector<128x512xf32>, vector<8x512xf32> -> vector<8x512xf32>
    %176 = arith.addf %174, %175 : vector<8x512xf32>
    %177 = vector.extract_strided_slice %176 {offsets = [0, 0], sizes = [8, 384], strides = [1, 1]} : vector<8x512xf32> to vector<8x384xf32>
    %cst_55 = arith.constant 5.000000e-01 : f32
    %178 = vector.broadcast %cst_55 : f32 to vector<8x384xf32>
    %179 = arith.mulf %178, %177 : vector<8x384xf32>
    %180 = math.tanh %179 : vector<8x384xf32>
    %cst_56 = arith.constant 5.000000e-01 : f32
    %181 = vector.broadcast %cst_56 : f32 to vector<8x384xf32>
    %182 = arith.mulf %181, %180 : vector<8x384xf32>
    %cst_57 = arith.constant 5.000000e-01 : f32
    %183 = vector.broadcast %cst_57 : f32 to vector<8x384xf32>
    %184 = arith.addf %182, %183 : vector<8x384xf32>
    %185 = vector.extract_strided_slice %184 {offsets = [0, 0], sizes = [8, 128], strides = [1, 1]} : vector<8x384xf32> to vector<8x128xf32>
    %186 = vector.extract_strided_slice %184 {offsets = [0, 128], sizes = [8, 128], strides = [1, 1]} : vector<8x384xf32> to vector<8x128xf32>
    %187 = vector.extract_strided_slice %184 {offsets = [0, 256], sizes = [8, 128], strides = [1, 1]} : vector<8x384xf32> to vector<8x128xf32>
    %188 = vector.extract_strided_slice %176 {offsets = [0, 384], sizes = [8, 128], strides = [1, 1]} : vector<8x512xf32> to vector<8x128xf32>
    %189 = math.tanh %188 : vector<8x128xf32>
    %190 = arith.mulf %186, %169 : vector<8x128xf32>
    %191 = arith.mulf %185, %189 : vector<8x128xf32>
    %192 = arith.addf %190, %191 : vector<8x128xf32>
    %193 = math.tanh %192 : vector<8x128xf32>
    %194 = arith.mulf %187, %193 : vector<8x128xf32>
    %c0_58 = arith.constant 0 : index
    %c0_59 = arith.constant 0 : index
    %c0_60 = arith.constant 0 : index
    %195 = vector.load %arg6[%c0_58, %c0_59, %c0_60] : memref<1x8x128xf32, #tpu.memory_space<vmem>>, vector<1x8x128xf32>
    %196 = vector.shape_cast %195 : vector<1x8x128xf32> to vector<8x128xf32>
    %197 = vector.shape_cast %194 : vector<8x128xf32> to vector<1x8x128xf32>
    tpu.vector_store %arg6[%c0_58, %c0_59, %c0_60], %197 {strides = array<i32>} : memref<1x8x128xf32, #tpu.memory_space<vmem>>, vector<1x8x128xf32>,
    %c0_61 = arith.constant 0 : index
    %c0_62 = arith.constant 0 : index
    %c0_63 = arith.constant 0 : index
    %198 = vector.load %arg7[%c0_61, %c0_62, %c0_63] : memref<1x8x128xf32, #tpu.memory_space<vmem>>, vector<1x8x128xf32>
    %199 = vector.shape_cast %198 : vector<1x8x128xf32> to vector<8x128xf32>
    %200 = vector.shape_cast %192 : vector<8x128xf32> to vector<1x8x128xf32>
    tpu.vector_store %arg7[%c0_61, %c0_62, %c0_63], %200 {strides = array<i32>} : memref<1x8x128xf32, #tpu.memory_space<vmem>>, vector<1x8x128xf32>,
    %c0_i32_64 = arith.constant 0 : i32
    %201 = arith.cmpi eq, %arg1, %c0_i32_64 : i32
    %202 = arith.extui %201 : i1 to i32
    %c0_i32_65 = arith.constant 0 : i32
    %203 = arith.cmpi ne, %202, %c0_i32_65 : i32
    scf.if %203 {
      %c0_66 = arith.constant 0 : index
      %c0_67 = arith.constant 0 : index
      %204 = vector.load %arg5[%c0_66, %c0_67] : memref<8x128xf32, #tpu.memory_space<vmem>>, vector<8x128xf32>
      tpu.vector_store %arg5[%c0_66, %c0_67], %194 {strides = array<i32>} : memref<8x128xf32, #tpu.memory_space<vmem>>, vector<8x128xf32>,
    } else {
    }
    return
  }
  func.func @transform_0(%arg0: i32, %arg1: i32) -> (i32, i32, i32) {
    %c0_i32 = arith.constant 0 : i32
    %c0_i32_0 = arith.constant 0 : i32
    return %arg0, %arg1, %c0_i32 : i32, i32, i32
  }
  func.func @transform_1(%arg0: i32, %arg1: i32) -> (i32, i32) {
    %c0_i32 = arith.constant 0 : i32
    %c0_i32_0 = arith.constant 0 : i32
    %c0_i32_1 = arith.constant 0 : i32
    return %c0_i32, %c0_i32_0 : i32, i32
  }
  func.func @transform_2(%arg0: i32, %arg1: i32) -> (i32, i32) {
    %c0_i32 = arith.constant 0 : i32
    %c0_i32_0 = arith.constant 0 : i32
    %c0_i32_1 = arith.constant 0 : i32
    return %c0_i32, %c0_i32_0 : i32, i32
  }
  func.func @transform_3(%arg0: i32, %arg1: i32) -> (i32, i32) {
    %c0_i32 = arith.constant 0 : i32
    %c0_i32_0 = arith.constant 0 : i32
    return %arg0, %c0_i32 : i32, i32
  }
}

</mosaic_0001>

<bundles_post_ra>
// kernel: tpu_custom_call.1
= control target key start
LH: loop header
LB: loop body
LE: loop exit
PB: predicated region body
PF: predicated region fallthrough
CT: control target
= control target key end

     0   :  { %8 = vsyncpa [#allocation5], 0  ;;  %s6328_s0 = inlined_call_operand.hbm [shape: f32[8,8,512], index: 0, kind: input, shape index: {}]   ;;  %s6329_s1 = inlined_call_operand.hbm [shape: f32[128,512], index: 1, kind: input, shape index: {}]   ;;  %s6330_s2 = inlined_call_operand.hbm [shape: f32[1,512], index: 2, kind: input, shape index: {}]   ;;  %s6331_s3 = inlined_call_operand.hbm [shape: f32[8,128], index: 3, kind: output, shape index: {}]  }
   0x1   :  { %9 = vsyncpa [#allocation8], 0 }
   0x2   :  { %10 = vsyncpa [#allocation6], 0  ;;  %s4673_s12 = smov [#allocation7]   ;;  %s4674_s14 = smov [#allocation4]  }
   0x3   :  { %s28_s13 = sshll.u32 %s4673_s12, 4  ;;  %s16_s15 = sshll.u32 %s4674_s14, 4  ;;  %s29_s13 = int_to_ptr.vmem [resolvable:$true] %s28_s13  ;;  %s17_s15 = int_to_ptr.vmem [resolvable:$true] %s16_s15 }
   0x4   :  { %s4595_s16 = scalar_lea.vmem %s29_s13, 8192  ;;  %p4600_p1 = scmp.lt.s32.totalorder %s29_s13, %s29_s13 }
   0x5   :  { %p4596_p0 = scmp.ne.s32.totalorder %s29_s13, %s4595_s16  ;;  %p4601_p2 = scmp.lt.s32.totalorder %s4595_s16, %s4595_s16 }
   0x7   :  { %p4602_p3 = por %p4601_p2, %p4600_p1 }
   0x9   :  { %p4603_p4 = pnand %p4602_p3, %p4596_p0 }
   0xb   :  { %4606 = shalt.err (!%p4603_p4)
}
   0xc   :  { %s4675_s17 = smov 512   ;;  %s4676_s18 = smov 32  }
   0xd   :  { %34 = dma.hbm_to_vmem [thread:$0]  %s6329_s1, 8192, %s29_s13, [#allocation8], %s4675_s17, %s4675_s17, %s4676_s18  }
   0xe   :  { %s4615_s21 = scalar_lea.vmem %s17_s15, 4096  ;;  %p4620_p6 = scmp.lt.s32.totalorder %s17_s15, %s17_s15 }
   0xf   :  { %p4616_p5 = scmp.ne.s32.totalorder %s17_s15, %s4615_s21  ;;  %p4621_p7 = scmp.lt.s32.totalorder %s4615_s21, %s4615_s21 }
  0x11   :  { %p4622_p8 = por %p4621_p7, %p4620_p6 }
  0x13   :  { %p4623_p9 = pnand %p4622_p8, %p4616_p5 }
  0x15   :  { %4626 = shalt.err (!%p4623_p9)
}
  0x16   :  { %22 = dma.hbm_to_vmem [thread:$0]  %s6328_s0, 4096, %s17_s15, [#allocation5], %s4675_s17, %s4675_s17, %s4676_s18  }
  0x17   :  { %s4677_s24 = smov [#allocation9]  }
  0x18   :  { %s41_s25 = sshll.u32 %s4677_s24, 4  ;;  %s42_s25 = int_to_ptr.vmem [resolvable:$true] %s41_s25 }
  0x19   :  { %s4635_s26 = scalar_lea.vmem %s42_s25, 64  ;;  %p4640_p11 = scmp.lt.s32.totalorder %s42_s25, %s42_s25 }
  0x1a   :  { %p4636_p10 = scmp.ne.s32.totalorder %s42_s25, %s4635_s26  ;;  %p4641_p12 = scmp.lt.s32.totalorder %s4635_s26, %s4635_s26 }
  0x1c   :  { %p4642_p13 = por %p4641_p12, %p4640_p11 }
  0x1e   :  { %p4643_p0 = pnand %p4642_p13, %p4636_p10 }
  0x20   :  { %4646 = shalt.err (!%p4643_p0)
}
  0x21   :  { %44 = dma.hbm_to_vmem [thread:$0]  %s6330_s2, 64, %s42_s25, [#allocation8]  }
  0x22   :  { %4667 = dma.done.wait [#allocation5], 4096  }
  0x23   :  { %4668 = vsyncadd [#allocation5], 4294963200 }
  0x24   :  { %4669 = dma.done.wait [#allocation8], 8256  }
  0x25   :  { %4670 = vsyncadd [#allocation8], 4294959040  ;;  %v6332_v0 = vmov 0.0   ;;  %v4712_v1 = vld [vmem:[#allocation7 + $0x1e8] sm:$0xff]  ;;  %v4714_v2 = vld [vmem:[#allocation7 + $0x1f8] sm:$0xff]  ;;  %s4680_s0 = smov [#allocation10]  }
  0x26   :  { %307 = vmatprep.mubr.f32.mxu0 %v6332_v0  ;;  %378 = vmatprep.mubr.f32.mxu1 %v6332_v0  ;;  %6488 = vst [vmem:[#allocation14_spill] sm:$0xff] %v4712_v1  ;;  %6489 = vst [vmem:[#allocation15_spill] sm:$0xff] %v4714_v2  ;;  %v4716_v3 = vld [vmem:[#allocation7 + $0x1e0] sm:$0xff]  ;;  %v4720_v4 = vld [vmem:[#allocation7 + $0x1f0] sm:$0xff]  ;;  %s3995_s2 = sshll.u32 %s4680_s0, 4  ;;  %s3996_s2 = int_to_ptr.vmem [resolvable:$true] %s3995_s2 }
  0x27   :  { %243 = vmatprep.subr.mxu0 %v4712_v1  ;;  %314 = vmatprep.subr.mxu1 %v4714_v2  ;;  %v4722_v5 = vld [vmem:[#allocation7 + $0x1c8] sm:$0xff]  ;;  %v4724_v6 = vld [vmem:[#allocation7 + $0x1d8] sm:$0xff]  ;;  %v4728_v7 = vld [vmem:[#allocation7 + $0x1c0] sm:$0xff]  ;;  %s4647_s28 = scalar_lea.vmem %s3996_s2, 128  ;;  %p4652_p2 = scmp.lt.s32.totalorder %s3996_s2, %s3996_s2 }
  0x28   :  { %244 = vmatpush1.msra.mxu0 %v4716_v3  ;;  %315 = vmatpush1.msra.mxu1 %v4720_v4  ;;  %v4730_v8 = vld [vmem:[#allocation7 + $0x1d0] sm:$0xff]  ;;  %v4732_v9 = vld [vmem:[#allocation7 + $0x1a8] sm:$0xff]  ;;  %v4736_v10 = vld [vmem:[#allocation7 + $0x1b8] sm:$0xff]  ;;  %p4648_p1 = scmp.ne.s32.totalorder %s3996_s2, %s4647_s28  ;;  %p4653_p3 = scmp.lt.s32.totalorder %s4647_s28, %s4647_s28 }
  0x29   :  { %245 = vmatprep.subr.mxu0 %v4722_v5  ;;  %316 = vmatprep.subr.mxu1 %v4724_v6  ;;  %v4738_v11 = vld [vmem:[#allocation7 + $0x1a0] sm:$0xff]  ;;  %v4740_v12 = vld [vmem:[#allocation7 + $0x1b0] sm:$0xff]  ;;  %v4744_v13 = vld [vmem:[#allocation7 + $0x188] sm:$0xff] }
  0x2a   :  { %246 = vmatpush1.msra.mxu0 %v4728_v7  ;;  %317 = vmatpush1.msra.mxu1 %v4730_v8  ;;  %v4746_v14 = vld [vmem:[#allocation7 + $0x198] sm:$0xff]  ;;  %v4750_v15 = vld [vmem:[#allocation7 + $0x180] sm:$0xff]  ;;  %v4752_v16 = vld [vmem:[#allocation7 + $0x190] sm:$0xff]  ;;  %p4654_p4 = por %p4653_p3, %p4652_p2 }
  0x2b   :  { %247 = vmatprep.subr.mxu0 %v4732_v9  ;;  %318 = vmatprep.subr.mxu1 %v4736_v10  ;;  %v4756_v17 = vld [vmem:[#allocation7 + $0x168] sm:$0xff]  ;;  %v4758_v18 = vld [vmem:[#allocation7 + $0x178] sm:$0xff]  ;;  %v4762_v19 = vld [vmem:[#allocation7 + $0x160] sm:$0xff] }
  0x2c   :  { %248 = vmatpush1.msra.mxu0 %v4738_v11  ;;  %319 = vmatpush1.msra.mxu1 %v4740_v12  ;;  %v4764_v20 = vld [vmem:[#allocation7 + $0x170] sm:$0xff]  ;;  %v4768_v21 = vld [vmem:[#allocation7 + $0x148] sm:$0xff]  ;;  %v4770_v22 = vld [vmem:[#allocation7 + $0x158] sm:$0xff]  ;;  %p4655_p5 = pnand %p4654_p4, %p4648_p1 }
  0x2d   :  { %249 = vmatprep.subr.mxu0 %v4744_v13  ;;  %320 = vmatprep.subr.mxu1 %v4746_v14  ;;  %v4774_v23 = vld [vmem:[#allocation7 + $0x140] sm:$0xff]  ;;  %v4776_v24 = vld [vmem:[#allocation7 + $0x150] sm:$0xff]  ;;  %v4780_v25 = vld [vmem:[#allocation7 + $0x128] sm:$0xff] }
  0x2e   :  { %250 = vmatpush1.msra.mxu0 %v4750_v15  ;;  %321 = vmatpush1.msra.mxu1 %v4752_v16  ;;  %v4782_v26 = vld [vmem:[#allocation7 + $0x138] sm:$0xff]  ;;  %v4786_v27 = vld [vmem:[#allocation7 + $0x120] sm:$0xff]  ;;  %v4788_v28 = vld [vmem:[#allocation7 + $0x130] sm:$0xff] }
  0x2f   :  { %251 = vmatprep.subr.mxu0 %v4756_v17  ;;  %322 = vmatprep.subr.mxu1 %v4758_v18  ;;  %v4792_v29 = vld [vmem:[#allocation7 + $0x108] sm:$0xff]  ;;  %v4794_v30 = vld [vmem:[#allocation7 + $0x118] sm:$0xff]  ;;  %v4798_v31 = vld [vmem:[#allocation7 + $0x100] sm:$0xff] }
  0x30   :  { %252 = vmatpush1.msra.mxu0 %v4762_v19  ;;  %323 = vmatpush1.msra.mxu1 %v4764_v20  ;;  %6490 = vst [vmem:[#allocation16_spill] sm:$0xff] %v4798_v31  ;;  %v4800_v32 = vld [vmem:[#allocation7 + $0x110] sm:$0xff]  ;;  %v4804_v33 = vld [vmem:[#allocation7 + $0xe8] sm:$0xff]  ;;  %v4806_v34 = vld [vmem:[#allocation7 + $0xf8] sm:$0xff] }
  0x31   :  { %253 = vmatprep.subr.mxu0 %v4768_v21  ;;  %324 = vmatprep.subr.mxu1 %v4770_v22  ;;  %6491 = vst [vmem:[#allocation17_spill] sm:$0xff] %v4800_v32  ;;  %6492 = vst [vmem:[#allocation18_spill] sm:$0xff] %v4804_v33  ;;  %v4810_v35 = vld [vmem:[#allocation7 + $0xe0] sm:$0xff]  ;;  %v4812_v36 = vld [vmem:[#allocation7 + $0xf0] sm:$0xff] }
  0x32   :  { %254 = vmatpush1.msra.mxu0 %v4774_v23  ;;  %325 = vmatpush1.msra.mxu1 %v4776_v24  ;;  %6493 = vst [vmem:[#allocation19_spill] sm:$0xff] %v4806_v34  ;;  %6494 = vst [vmem:[#allocation20_spill] sm:$0xff] %v4810_v35  ;;  %v4816_v37 = vld [vmem:[#allocation7 + $0xc8] sm:$0xff]  ;;  %v4818_v38 = vld [vmem:[#allocation7 + $0xd8] sm:$0xff] }
  0x33   :  { %255 = vmatprep.subr.mxu0 %v4780_v25  ;;  %326 = vmatprep.subr.mxu1 %v4782_v26  ;;  %6495 = vst [vmem:[#allocation21_spill] sm:$0xff] %v4812_v36  ;;  %6496 = vst [vmem:[#allocation22_spill] sm:$0xff] %v4816_v37  ;;  %v4822_v39 = vld [vmem:[#allocation7 + $0xc0] sm:$0xff]  ;;  %v4824_v40 = vld [vmem:[#allocation7 + $0xd0] sm:$0xff] }
  0x34   :  { %256 = vmatpush1.msra.mxu0 %v4786_v27  ;;  %327 = vmatpush1.msra.mxu1 %v4788_v28  ;;  %6497 = vst [vmem:[#allocation23_spill] sm:$0xff] %v4818_v38  ;;  %6498 = vst [vmem:[#allocation24_spill] sm:$0xff] %v4822_v39  ;;  %v4828_v41 = vld [vmem:[#allocation7 + $0xa8] sm:$0xff]  ;;  %v4830_v42 = vld [vmem:[#allocation7 + $0xb8] sm:$0xff] }
  0x35   :  { %257 = vmatprep.subr.mxu0 %v4792_v29  ;;  %328 = vmatprep.subr.mxu1 %v4794_v30  ;;  %6499 = vst [vmem:[#allocation25_spill] sm:$0xff] %v4824_v40  ;;  %6500 = vst [vmem:[#allocation26_spill] sm:$0xff] %v4828_v41  ;;  %v4834_v43 = vld [vmem:[#allocation7 + $0xa0] sm:$0xff]  ;;  %v4836_v44 = vld [vmem:[#allocation7 + $0xb0] sm:$0xff] }
  0x36   :  { %258 = vmatpush1.msra.mxu0 %v4798_v31  ;;  %329 = vmatpush1.msra.mxu1 %v4800_v32  ;;  %6501 = vst [vmem:[#allocation27_spill] sm:$0xff] %v4830_v42  ;;  %6502 = vst [vmem:[#allocation28_spill] sm:$0xff] %v4834_v43  ;;  %v4840_v45 = vld [vmem:[#allocation7 + $0x88] sm:$0xff]  ;;  %v4842_v46 = vld [vmem:[#allocation7 + $0x98] sm:$0xff] }
  0x37   :  { %259 = vmatprep.subr.mxu0 %v4804_v33  ;;  %330 = vmatprep.subr.mxu1 %v4806_v34  ;;  %6503 = vst [vmem:[#allocation29_spill] sm:$0xff] %v4836_v44  ;;  %6504 = vst [vmem:[#allocation30_spill] sm:$0xff] %v4840_v45  ;;  %v4846_v47 = vld [vmem:[#allocation7 + $0x80] sm:$0xff]  ;;  %v4848_v48 = vld [vmem:[#allocation7 + $0x90] sm:$0xff] }
  0x38   :  { %260 = vmatpush1.msra.mxu0 %v4810_v35  ;;  %331 = vmatpush1.msra.mxu1 %v4812_v36  ;;  %6505 = vst [vmem:[#allocation31_spill] sm:$0xff] %v4842_v46  ;;  %6506 = vst [vmem:[#allocation32_spill] sm:$0xff] %v4846_v47  ;;  %v4852_v49 = vld [vmem:[#allocation7 + $0x68] sm:$0xff]  ;;  %v4854_v50 = vld [vmem:[#allocation7 + $0x78] sm:$0xff] }
  0x39   :  { %261 = vmatprep.subr.mxu0 %v4816_v37  ;;  %332 = vmatprep.subr.mxu1 %v4818_v38  ;;  %6507 = vst [vmem:[#allocation33_spill] sm:$0xff] %v4848_v48  ;;  %6508 = vst [vmem:[#allocation34_spill] sm:$0xff] %v4852_v49  ;;  %v4858_v51 = vld [vmem:[#allocation7 + $0x60] sm:$0xff]  ;;  %v4860_v52 = vld [vmem:[#allocation7 + $0x70] sm:$0xff] }
  0x3a   :  { %262 = vmatpush1.msra.mxu0 %v4822_v39  ;;  %333 = vmatpush1.msra.mxu1 %v4824_v40  ;;  %6509 = vst [vmem:[#allocation35_spill] sm:$0xff] %v4854_v50  ;;  %6510 = vst [vmem:[#allocation36_spill] sm:$0xff] %v4858_v51  ;;  %v4864_v53 = vld [vmem:[#allocation7 + $0x48] sm:$0xff]  ;;  %v4866_v54 = vld [vmem:[#allocation7 + $0x58] sm:$0xff] }
  0x3b   :  { %263 = vmatprep.subr.mxu0 %v4828_v41  ;;  %334 = vmatprep.subr.mxu1 %v4830_v42  ;;  %6511 = vst [vmem:[#allocation37_spill] sm:$0xff] %v4860_v52  ;;  %6512 = vst [vmem:[#allocation38_spill] sm:$0xff] %v4864_v53  ;;  %v4870_v55 = vld [vmem:[#allocation7 + $0x40] sm:$0xff]  ;;  %v4872_v56 = vld [vmem:[#allocation7 + $0x50] sm:$0xff] }
  0x3c   :  { %264 = vmatpush1.msra.mxu0 %v4834_v43  ;;  %335 = vmatpush1.msra.mxu1 %v4836_v44  ;;  %6513 = vst [vmem:[#allocation39_spill] sm:$0xff] %v4866_v54  ;;  %6514 = vst [vmem:[#allocation40_spill] sm:$0xff] %v4870_v55  ;;  %v4876_v57 = vld [vmem:[#allocation7 + $0x28] sm:$0xff]  ;;  %v4878_v58 = vld [vmem:[#allocation7 + $0x38] sm:$0xff] }
  0x3d   :  { %265 = vmatprep.subr.mxu0 %v4840_v45  ;;  %336 = vmatprep.subr.mxu1 %v4842_v46  ;;  %6515 = vst [vmem:[#allocation41_spill] sm:$0xff] %v4872_v56  ;;  %6516 = vst [vmem:[#allocation42_spill] sm:$0xff] %v4876_v57  ;;  %v4882_v59 = vld [vmem:[#allocation7 + $0x20] sm:$0xff]  ;;  %v4884_v60 = vld [vmem:[#allocation7 + $0x30] sm:$0xff] }
  0x3e   :  { %266 = vmatpush1.msra.mxu0 %v4846_v47  ;;  %337 = vmatpush1.msra.mxu1 %v4848_v48  ;;  %6517 = vst [vmem:[#allocation43_spill] sm:$0xff] %v4878_v58  ;;  %6518 = vst [vmem:[#allocation44_spill] sm:$0xff] %v4882_v59  ;;  %v4888_v61 = vld [vmem:[#allocation7 + $0x8] sm:$0xff]  ;;  %v4890_v62 = vld [vmem:[#allocation7 + $0x18] sm:$0xff] }
  0x3f   :  { %267 = vmatprep.subr.mxu0 %v4852_v49  ;;  %338 = vmatprep.subr.mxu1 %v4854_v50  ;;  %6519 = vst [vmem:[#allocation45_spill] sm:$0xff] %v4884_v60  ;;  %6520 = vst [vmem:[#allocation46_spill] sm:$0xff] %v4888_v61  ;;  %v4894_v63 = vld [vmem:[#allocation7] sm:$0xff]  ;;  %v4896_v0 = vld [vmem:[#allocation7 + $0x10] sm:$0xff] }
  0x40   :  { %268 = vmatpush1.msra.mxu0 %v4858_v51  ;;  %339 = vmatpush1.msra.mxu1 %v4860_v52  ;;  %6521 = vst [vmem:[#allocation47_spill] sm:$0xff] %v4890_v62  ;;  %6522 = vst [vmem:[#allocation48_spill] sm:$0xff] %v4894_v63 }
  0x41   :  { %269 = vmatprep.subr.mxu0 %v4864_v53  ;;  %340 = vmatprep.subr.mxu1 %v4866_v54  ;;  %6523 = vst [vmem:[#allocation49_spill] sm:$0xff] %v4896_v0 }
  0x42   :  { %270 = vmatpush1.msra.mxu0 %v4870_v55  ;;  %341 = vmatpush1.msra.mxu1 %v4872_v56  ;;  %v6524_v56 = vmov 0.0  }
  0x43   :  { %271 = vmatprep.subr.mxu0 %v4876_v57  ;;  %342 = vmatprep.subr.mxu1 %v4878_v58 }
  0x44   :  { %272 = vmatpush1.msra.mxu0 %v4882_v59  ;;  %343 = vmatpush1.msra.mxu1 %v4884_v60 }
  0x45   :  { %273 = vmatprep.subr.mxu0 %v4888_v61  ;;  %344 = vmatprep.subr.mxu1 %v4890_v62 }
  0x46   :  { %274 = vmatpush1.msra.mxu0 %v4894_v63  ;;  %345 = vmatpush1.msra.mxu1 %v4896_v0 }
  0x47   :  { %308 = vmatmul.mubr.f32.vlgmr.msra.gmra.mxu0 %v6524_v56  ;;  %379 = vmatmul.mubr.f32.vlgmr.msra.gmra.mxu1 %v6524_v56 }
  0x48   :  { %757 = vmatprep.subr.mxu0 %v4712_v1  ;;  %828 = vmatprep.subr.mxu1 %v4714_v2 }
  0x49   :  { %758 = vmatpush1.msra.mxu0 %v4716_v3  ;;  %829 = vmatpush1.msra.mxu1 %v4720_v4 }
  0x4a   :  { %759 = vmatprep.subr.mxu0 %v4722_v5  ;;  %830 = vmatprep.subr.mxu1 %v4724_v6 }
  0x4b   :  { %760 = vmatpush1.msra.mxu0 %v4728_v7  ;;  %831 = vmatpush1.msra.mxu1 %v4730_v8 }
  0x4c   :  { %761 = vmatprep.subr.mxu0 %v4732_v9  ;;  %832 = vmatprep.subr.mxu1 %v4736_v10 }
  0x4d   :  { %762 = vmatpush1.msra.mxu0 %v4738_v11  ;;  %833 = vmatpush1.msra.mxu1 %v4740_v12 }
  0x4e   :  { %763 = vmatprep.subr.mxu0 %v4744_v13  ;;  %834 = vmatprep.subr.mxu1 %v4746_v14 }
  0x4f   :  { %764 = vmatpush1.msra.mxu0 %v4750_v15  ;;  %835 = vmatpush1.msra.mxu1 %v4752_v16 }
  0x50   :  { %765 = vmatprep.subr.mxu0 %v4756_v17  ;;  %836 = vmatprep.subr.mxu1 %v4758_v18 }
  0x51   :  { %766 = vmatpush1.msra.mxu0 %v4762_v19  ;;  %837 = vmatpush1.msra.mxu1 %v4764_v20 }
  0x52   :  { %767 = vmatprep.subr.mxu0 %v4768_v21  ;;  %838 = vmatprep.subr.mxu1 %v4770_v22 }
  0x53   :  { %768 = vmatpush1.msra.mxu0 %v4774_v23  ;;  %839 = vmatpush1.msra.mxu1 %v4776_v24 }
  0x54   :  { %769 = vmatprep.subr.mxu0 %v4780_v25  ;;  %840 = vmatprep.subr.mxu1 %v4782_v26 }
  0x55   :  { %770 = vmatpush1.msra.mxu0 %v4786_v27  ;;  %841 = vmatpush1.msra.mxu1 %v4788_v28 }
  0x56   :  { %771 = vmatprep.subr.mxu0 %v4792_v29  ;;  %842 = vmatprep.subr.mxu1 %v4794_v30 }
  0x57   :  { %772 = vmatpush1.msra.mxu0 %v4798_v31  ;;  %843 = vmatpush1.msra.mxu1 %v4800_v32 }
  0x58   :  { %773 = vmatprep.subr.mxu0 %v4804_v33  ;;  %844 = vmatprep.subr.mxu1 %v4806_v34 }
  0x59   :  { %774 = vmatpush1.msra.mxu0 %v4810_v35  ;;  %845 = vmatpush1.msra.mxu1 %v4812_v36 }
  0x5a   :  { %775 = vmatprep.subr.mxu0 %v4816_v37  ;;  %846 = vmatprep.subr.mxu1 %v4818_v38 }
  0x5b   :  { %776 = vmatpush1.msra.mxu0 %v4822_v39  ;;  %847 = vmatpush1.msra.mxu1 %v4824_v40 }
  0x5c   :  { %777 = vmatprep.subr.mxu0 %v4828_v41  ;;  %848 = vmatprep.subr.mxu1 %v4830_v42  ;;  %v156_v41 = vld [vmem:[#allocation4 + $0xc0] ss:$8 sm:$0xf] }
  0x5d   :  { %778 = vmatpush1.msra.mxu0 %v4834_v43  ;;  %849 = vmatpush1.msra.mxu1 %v4836_v44 }
  0x5e   :  { %779 = vmatprep.subr.mxu0 %v4840_v45  ;;  %850 = vmatprep.subr.mxu1 %v4842_v46  ;;  %v6525_v45 = vld [vmem:[#allocation41_spill] sm:$0xff] }
  0x5f   :  { %780 = vmatpush1.msra.mxu0 %v4846_v47  ;;  %851 = vmatpush1.msra.mxu1 %v4848_v48 }
  0x60   :  { %781 = vmatprep.subr.mxu0 %v4852_v49  ;;  %852 = vmatprep.subr.mxu1 %v4854_v50 }
  0x61   :  { %782 = vmatpush1.msra.mxu0 %v4858_v51  ;;  %853 = vmatpush1.msra.mxu1 %v4860_v52 }
  0x62   :  { %783 = vmatprep.subr.mxu0 %v4864_v53  ;;  %854 = vmatprep.subr.mxu1 %v4866_v54  ;;  %v124_v54 = vld [vmem:[#allocation9] sm:$0xf] }
  0x63   :  { %784 = vmatpush1.msra.mxu0 %v4870_v55  ;;  %855 = vmatpush1.msra.mxu1 %v6525_v45 }
  0x64   :  { %785 = vmatprep.subr.mxu0 %v4876_v57  ;;  %856 = vmatprep.subr.mxu1 %v4878_v58  ;;  %v126_v58 = vlaneseq  ;;  %v4679_v57 = vmov 1966171168  }
  0x65   :  { %786 = vmatpush1.msra.mxu0 %v4882_v59  ;;  %857 = vmatpush1.msra.mxu1 %v4884_v60  ;;  %v164_v60 = vunpack.c.l.s4 %v4679_v57 }
  0x66   :  { %787 = vmatprep.subr.mxu0 %v4888_v61  ;;  %858 = vmatprep.subr.mxu1 %v4890_v62  ;;  %v127_v59 = vshrl.u32 %v126_v58, 7 }
  0x67   :  { %788 = vmatpush1.msra.mxu0 %v4894_v63  ;;  %821 = vmatprep.mubr.f32.mxu0 %v6524_v56  ;;  %v165_v63 = vunpack.c.0.s8 %v164_v60 }
  0x68   :  { %859 = vmatpush1.msra.mxu1 %v4896_v0  ;;  %892 = vmatprep.mubr.f32.mxu1 %v6524_v56  ;;  %v128_v45 = vsub.s32 0, %v127_v59  ;;  %v132_v61 = vsub.s32 1, %v127_v59  ;;  %v136_v55 = vsub.s32 2, %v127_v59  ;;  %v140_v62 = vsub.s32 3, %v127_v59 }
  0x69   :  { %1213 = vmatprep.subr.mxu0 %v4712_v1  ;;  %1284 = vmatprep.subr.mxu1 %v4714_v2  ;;  %v4974_v50 = vsub.s32 %v165_v63, %v127_v59  ;;  %v148_v63 = vld [vmem:[#allocation4 + $0x40] ss:$8 sm:$0xf] }
  0x6a   :  { %v129_v53 = vrot.slane %v124_v54, %v128_v45  ;;  %v133_v52 = vrot.slane %v124_v54, %v132_v61  ;;  %v137_v51 = vrot.slane %v124_v54, %v136_v55  ;;  %v141_v0 = vrot.slane %v124_v54, %v140_v62 }
  0x6c   :  { %v159_v49 = vcombine.low %v129_v53, %v133_v52  ;;  %v161_v1 = vcombine.low %v137_v51, %v141_v0  ;;  %v160_v48 = vcombine.high %v129_v53, %v133_v52  ;;  %v162_v2 = vcombine.high %v137_v51, %v141_v0  ;;  %v144_v53 = vld [vmem:[#allocation4] ss:$8 sm:$0xf] }
  0x6e   :  { %v169_v58 = vrot.slane %v159_v49, %v4974_v50  ;;  %v183_v57 = vrot.slane %v161_v1, %v4974_v50  ;;  %v176_v47 = vrot.slane %v160_v48, %v4974_v50  ;;  %v190_v46 = vrot.slane %v162_v2, %v4974_v50 }
  0x70   :  { %v191_v44 = vcombine.low %v169_v58, %v183_v57  ;;  %v192_v60 = vcombine.high %v169_v58, %v183_v57  ;;  %v193_v45 = vcombine.low %v176_v47, %v190_v46  ;;  %v194_v61 = vcombine.high %v176_v47, %v190_v46  ;;  %v146_v46 = vld [vmem:[#allocation4 + $0x20] ss:$8 sm:$0xf] }
  0x72   :  { %v4981_v59 = vrot.slane %v191_v44, %v4974_v50  ;;  %v4984_v52 = vrot.slane %v192_v60, %v4974_v50  ;;  %v4987_v49 = vrot.slane %v193_v45, %v4974_v50  ;;  %v4990_v1 = vrot.slane %v194_v61, %v4974_v50  ;;  %v150_v44 = vld [vmem:[#allocation4 + $0x60] ss:$8 sm:$0xf] }
  0x73   :  { %v152_v61 = vld [vmem:[#allocation4 + $0x80] ss:$8 sm:$0xf] }
  0x74   :  { %6526 = vst [vmem:[#allocation50_spill] sm:$0xff] %v4981_v59  ;;  %6527 = vst [vmem:[#allocation51_spill] sm:$0xff] %v4984_v52  ;;  %v4994_v58 = vcombine.high %v4981_v59, %v4981_v59  ;;  %v4998_v57 = vcombine.high %v4984_v52, %v4984_v52  ;;  %v5010_v43 = vcombine.high %v4990_v1, %v4990_v1 }
  0x75   :  { %6528 = vst [vmem:[#allocation52_spill] sm:$0xff] %v4987_v49  ;;  %6529 = vst [vmem:[#allocation53_spill] sm:$0xff] %v4990_v1  ;;  %v235_v42 = vadd.f32 %v4981_v59, %v144_v53  ;;  %v239_v36 = vadd.f32 %v4987_v49, %v152_v61 }
  0x76   :  { %6530 = vst [vmem:[#allocation54_spill] sm:$0xff] %v4994_v58  ;;  %6531 = vst [vmem:[#allocation55_spill] sm:$0xff] %v4998_v57  ;;  %v238_v37 = vadd.f32 %v4998_v57, %v150_v44 }
  0x77   :  { %6533 = vst [vmem:[#allocation57_spill] sm:$0xff] %v5010_v43 }
 0x107   :  { %v309_v55 = vpop.f32.mrf.mxu0  ;;  %v380_v54 = vpop.f32.mrf.mxu1 }
 0x109   :  { %v311_v0 = vpop.f32.mrf.mxu0  ;;  %v382_v2 = vpop.f32.mrf.mxu1 }
 0x10a   :  { %v389_v48 = vcombine.low %v309_v55, %v311_v0  ;;  %v390_v51 = vcombine.high %v309_v55, %v311_v0  ;;  %v391_v47 = vcombine.low %v380_v54, %v382_v2  ;;  %v392_v62 = vcombine.high %v380_v54, %v382_v2  ;;  %v154_v55 = vld [vmem:[#allocation4 + $0xa0] ss:$8 sm:$0xf] }
 0x10b   :  { %v5006_v2 = vcombine.high %v4987_v49, %v4987_v49  ;;  %v240_v35 = vadd.f32 %v4990_v1, %v154_v55 }
 0x10c   :  { %v399_v60 = vrot.slane %v389_v48, %v4974_v50  ;;  %v406_v45 = vrot.slane %v390_v51, %v4974_v50  ;;  %v413_v0 = vrot.slane %v391_v47, %v4974_v50  ;;  %v420_v54 = vrot.slane %v392_v62, %v4974_v50  ;;  %v158_v51 = vld [vmem:[#allocation4 + $0xe0] ss:$8 sm:$0xf] }
 0x10d   :  { %6532 = vst [vmem:[#allocation56_spill] sm:$0xff] %v5006_v2  ;;  %v236_v48 = vadd.f32 %v4984_v52, %v146_v46  ;;  %v237_v62 = vadd.f32 %v4994_v58, %v148_v63 }
 0x10e   :  { %v421_v40 = vcombine.low %v399_v60, %v413_v0  ;;  %v422_v39 = vcombine.high %v399_v60, %v413_v0  ;;  %v423_v38 = vcombine.low %v406_v45, %v420_v54  ;;  %v424_v47 = vcombine.high %v406_v45, %v420_v54 }
 0x10f   :  { %v241_v60 = vadd.f32 %v5006_v2, %v156_v41  ;;  %v242_v45 = vadd.f32 %v5010_v43, %v158_v51 }
 0x110   :  { %v431_v34 = vrot.slane %v421_v40, %v4974_v50  ;;  %v438_v53 = vrot.slane %v423_v38, %v4974_v50  ;;  %v445_v46 = vrot.slane %v422_v39, %v4974_v50  ;;  %v452_v52 = vrot.slane %v424_v47, %v4974_v50 }
 0x112   :  { %v453_v0 = vcombine.high %v431_v34, %v431_v34  ;;  %v454_v63 = vcombine.high %v438_v53, %v438_v53  ;;  %v455_v54 = vcombine.high %v445_v46, %v445_v46  ;;  %v456_v44 = vcombine.high %v452_v52, %v452_v52 }
 0x113   :  { %v465_v57 = vadd.f32 %v431_v34, %v235_v42  ;;  %v466_v61 = vadd.f32 %v445_v46, %v236_v48  ;;  %v469_v49 = vadd.f32 %v438_v53, %v239_v36  ;;  %v470_v40 = vadd.f32 %v452_v52, %v240_v35 }
 0x114   :  { %v467_v55 = vadd.f32 %v453_v0, %v237_v62  ;;  %v468_v1 = vadd.f32 %v455_v54, %v238_v37  ;;  %v471_v58 = vadd.f32 %v454_v63, %v241_v60  ;;  %v472_v39 = vadd.f32 %v456_v44, %v242_v45 }
 0x115   :  { %v473_v38 = vmul.f32 0.5, %v465_v57  ;;  %v474_v59 = vmul.f32 0.5, %v466_v61  ;;  %v477_v32 = vmul.f32 0.5, %v469_v49  ;;  %v478_v41 = vmul.f32 0.5, %v470_v40 }
 0x116   :  { %v475_v33 = vmul.f32 0.5, %v467_v55  ;;  %v476_v47 = vmul.f32 0.5, %v468_v1  ;;  %v479_v51 = vmul.f32 0.5, %v471_v58  ;;  %v480_v43 = vmul.f32 0.5, %v472_v39 }
 0x117   :  { %4013 = vtanh.f32 %v473_v38  ;;  %v562_v34 = vcombine.high %v6524_v56, %v6524_v56  ;;  %v513_v36 = vrot.slane %v465_v57, 3  ;;  %v514_v35 = vrot.slane %v466_v61, 3 }
 0x118   :  { %4015 = vtanh.f32 %v474_v59  ;;  %v515_v37 = vrot.slane %v467_v55, 3  ;;  %v569_v42 = vrot.slane %v6524_v56, %v4974_v50  ;;  %v516_v52 = vrot.slane %v468_v1, 3 }
 0x119   :  { %4017 = vtanh.f32 %v475_v33  ;;  %v576_v59 = vrot.slane %v562_v34, %v4974_v50  ;;  %v517_v48 = vrot.slane %v469_v49, 3  ;;  %v518_v33 = vrot.slane %v470_v40, 3 }
 0x11a   :  { %4019 = vtanh.f32 %v476_v47  ;;  %v519_v62 = vrot.slane %v471_v58, 3  ;;  %v577_v53 = vcombine.high %v569_v42, %v569_v42  ;;  %v585_v60 = vrot.slane %v569_v42, %v4974_v50 }
 0x11b   :  { %4021 = vtanh.f32 %v477_v32  ;;  %v520_v32 = vrot.slane %v472_v39, 3  ;;  %v578_v57 = vcombine.high %v576_v59, %v576_v59 }
 0x11c   :  { %4023 = vtanh.f32 %v478_v41  ;;  %v599_v49 = vrot.slane %v577_v53, %v4974_v50  ;;  %v607_v39 = vcombine.high %v585_v60, %v585_v60 }
 0x11d   :  { %4025 = vtanh.f32 %v479_v51  ;;  %v606_v58 = vrot.slane %v578_v57, %v4974_v50 }
 0x11e   :  { %4027 = vtanh.f32 %v480_v43  ;;  %v592_v43 = vrot.slane %v576_v59, %v4974_v50 }
 0x11f   :  { %4029 = vtanh.f32 %v513_v36 }
 0x120   :  { %4031 = vtanh.f32 %v514_v35  ;;  %v608_v47 = vcombine.high %v592_v43, %v592_v43  ;;  %v609_v35 = vcombine.high %v599_v49, %v599_v49 }
 0x121   :  { %4033 = vtanh.f32 %v515_v37 }
 0x122   :  { %4035 = vtanh.f32 %v516_v52 }
 0x123   :  { %4037 = vtanh.f32 %v517_v48  ;;  %v610_v48 = vcombine.high %v606_v58, %v606_v58 }
 0x124   :  { %v4014_v46 = vpop.eup %4013  ;;  %4039 = vtanh.f32 %v518_v33 }
 0x125   :  { %v4016_v1 = vpop.eup %4015  ;;  %v489_v45 = vmul.f32 0.5, %v4014_v46  ;;  %4041 = vtanh.f32 %v519_v62 }
 0x126   :  { %v4018_v0 = vpop.eup %4017  ;;  %v490_v63 = vmul.f32 0.5, %v4016_v1  ;;  %4043 = vtanh.f32 %v520_v32 }
 0x127   :  { %v4020_v54 = vpop.eup %4019  ;;  %v491_v44 = vmul.f32 0.5, %v4018_v0  ;;  %v5033_v61 = vadd.f32 0.5, %v489_v45 }
 0x128   :  { %v4022_v55 = vpop.eup %4021  ;;  %v492_v40 = vmul.f32 0.5, %v4020_v54  ;;  %v5035_v38 = vadd.f32 0.5, %v490_v63 }
 0x129   :  { %v4024_v41 = vpop.eup %4023  ;;  %v493_v51 = vmul.f32 0.5, %v4022_v55  ;;  %v5037_v34 = vadd.f32 0.5, %v491_v44  ;;  %v545_v36 = vrot.slane %v5033_v61, 1 }
 0x12a   :  { %v4026_v37 = vpop.eup %4025  ;;  %v494_v42 = vmul.f32 0.5, %v4024_v41  ;;  %v5040_v52 = vadd.f32 0.5, %v492_v40  ;;  %v546_v59 = vrot.slane %v5035_v38, 1 }
 0x12b   :  { %v4028_v33 = vpop.eup %4027  ;;  %v495_v62 = vmul.f32 0.5, %v4026_v37  ;;  %v5043_v53 = vadd.f32 0.5, %v493_v51  ;;  %v547_v32 = vrot.slane %v5037_v34, 1  ;;  %v619_v57 = vmul.f32 %v585_v60, %v545_v36 }
 0x12c   :  { %v4030_v46 = vpop.eup %4029  ;;  %v496_v1 = vmul.f32 0.5, %v4028_v33  ;;  %v5046_v45 = vadd.f32 0.5, %v494_v42  ;;  %v548_v0 = vrot.slane %v5040_v52, 1  ;;  %v620_v63 = vmul.f32 %v599_v49, %v546_v59 }
 0x12d   :  { %v4032_v54 = vpop.eup %4031  ;;  %v5049_v44 = vadd.f32 0.5, %v495_v62  ;;  %v549_v55 = vrot.slane %v5043_v53, 1  ;;  %v621_v40 = vmul.f32 %v607_v39, %v547_v32  ;;  %v627_v41 = vmul.f32 %v4030_v46, %v5033_v61 }
 0x12e   :  { %v4034_v51 = vpop.eup %4033  ;;  %v5053_v37 = vadd.f32 0.5, %v496_v1  ;;  %v550_v60 = vrot.slane %v5046_v45, 1  ;;  %v622_v36 = vmul.f32 %v609_v35, %v548_v0  ;;  %v628_v42 = vmul.f32 %v4032_v54, %v5035_v38 }
 0x12f   :  { %v4036_v33 = vpop.eup %4035  ;;  %v551_v2 = vrot.slane %v5049_v44, 1  ;;  %v623_v49 = vmul.f32 %v592_v43, %v549_v55  ;;  %v629_v59 = vmul.f32 %v4034_v51, %v5037_v34  ;;  %v5059_v62 = vadd.f32 %v627_v41, %v619_v57 }
 0x130   :  { %v4038_v56 = vpop.eup %4037  ;;  %v552_v39 = vrot.slane %v5053_v37, 1  ;;  %v624_v32 = vmul.f32 %v606_v58, %v550_v60  ;;  %v630_v46 = vmul.f32 %v4036_v33, %v5040_v52  ;;  %v5063_v1 = vadd.f32 %v628_v42, %v620_v63 }
 0x131   :  { %v4040_v31 = vpop.eup %4039  ;;  %v625_v35 = vmul.f32 %v608_v47, %v551_v2  ;;  %v631_v0 = vmul.f32 %v4038_v56, %v5043_v53  ;;  %v5066_v54 = vadd.f32 %v629_v59, %v621_v40  ;;  %4045 = vtanh.f32 %v5059_v62 }
 0x132   :  { %v4042_v43 = vpop.eup %4041  ;;  %v626_v55 = vmul.f32 %v610_v48, %v552_v39  ;;  %v632_v57 = vmul.f32 %v4040_v31, %v5046_v45  ;;  %v5070_v41 = vadd.f32 %v630_v46, %v622_v36  ;;  %4047 = vtanh.f32 %v5063_v1 }
 0x133   :  { %v4044_v58 = vpop.eup %4043  ;;  %v633_v63 = vmul.f32 %v4042_v43, %v5049_v44  ;;  %v5074_v51 = vadd.f32 %v631_v0, %v623_v49  ;;  %4049 = vtanh.f32 %v5066_v54  ;;  %v651_v48 = vrot.slane %v5033_v61, 2 }
 0x134   :  { %v634_v56 = vmul.f32 %v4044_v58, %v5053_v37  ;;  %v5078_v2 = vadd.f32 %v632_v57, %v624_v32  ;;  %4051 = vtanh.f32 %v5070_v41  ;;  %v652_v60 = vrot.slane %v5035_v38, 2 }
 0x135   :  { %v5081_v47 = vadd.f32 %v633_v63, %v625_v35  ;;  %4053 = vtanh.f32 %v5074_v51  ;;  %v653_v42 = vrot.slane %v5037_v34, 2  ;;  %v654_v59 = vrot.slane %v5040_v52, 2 }
 0x136   :  { %v5084_v31 = vadd.f32 %v634_v56, %v626_v55  ;;  %4055 = vtanh.f32 %v5078_v2  ;;  %v655_v46 = vrot.slane %v5043_v53, 2  ;;  %v656_v43 = vrot.slane %v5046_v45, 2 }
 0x137   :  { %4057 = vtanh.f32 %v5081_v47  ;;  %v657_v38 = vrot.slane %v5049_v44, 2  ;;  %v658_v34 = vrot.slane %v5053_v37, 2 }
 0x138   :  { %4059 = vtanh.f32 %v5084_v31 }
 0x13e   :  { %v4046_v40 = vpop.eup %4045 }
 0x13f   :  { %v4048_v36 = vpop.eup %4047  ;;  %v667_v33 = vmul.f32 %v4046_v40, %v651_v48 }
 0x140   :  { %v4050_v49 = vpop.eup %4049  ;;  %v668_v39 = vmul.f32 %v4048_v36, %v652_v60 }
 0x141   :  { %v4052_v32 = vpop.eup %4051  ;;  %v669_v35 = vmul.f32 %v4050_v49, %v653_v42 }
 0x142   :  { %v4054_v0 = vpop.eup %4053  ;;  %v670_v55 = vmul.f32 %v4052_v32, %v654_v59  ;;  %v707_v61 = vcombine.low %v667_v33, %v668_v39 }
 0x143   :  { %v4056_v57 = vpop.eup %4055  ;;  %v671_v58 = vmul.f32 %v4054_v0, %v655_v46  ;;  %v6562_v46 = vld [vmem:[#allocation44_spill] sm:$0xff]  ;;  %v6564_v0 = vld [vmem:[#allocation46_spill] sm:$0xff] }
 0x144   :  { %v4058_v63 = vpop.eup %4057  ;;  %v672_v56 = vmul.f32 %v4056_v57, %v656_v43  ;;  %v708_v48 = vcombine.low %v669_v35, %v670_v55  ;;  %v717_v53 = vrot.slane %v707_v61, %v4974_v50  ;;  %v6563_v35 = vld [vmem:[#allocation45_spill] sm:$0xff]  ;;  %v6565_v43 = vld [vmem:[#allocation47_spill] sm:$0xff]  ;;  %v6566_v55 = vld [vmem:[#allocation48_spill] sm:$0xff]  ;;  %v6567_v61 = vmov 0.0  }
 0x145   :  { %v4060_v52 = vpop.eup %4059  ;;  %v673_v40 = vmul.f32 %v4058_v63, %v657_v38  ;;  %v6568_v57 = vld [vmem:[#allocation49_spill] sm:$0xff]  ;;  %v6569_v38 = vld [vmem:[#allocation14_spill] sm:$0xff] }
 0x146   :  { %v674_v60 = vmul.f32 %v4060_v52, %v658_v34  ;;  %v709_v36 = vcombine.low %v671_v58, %v672_v56  ;;  %v724_v42 = vrot.slane %v708_v48, %v4974_v50  ;;  %v6570_v58 = vld [vmem:[#allocation15_spill] sm:$0xff] }
 0x148   :  { %v710_v45 = vcombine.low %v673_v40, %v674_v60  ;;  %v739_v49 = vcombine.low %v717_v53, %v724_v42  ;;  %v731_v33 = vrot.slane %v709_v36, %v4974_v50  ;;  %v676_v60 = vld [vmem:[#allocation4 + $0x1] ss:$8 sm:$0xf] }
 0x149   :  { %v678_v36 = vld [vmem:[#allocation4 + $0x21] ss:$8 sm:$0xf] }
 0x14a   :  { %v738_v44 = vrot.slane %v710_v45, %v4974_v50  ;;  %v747_v39 = vrot.slane %v739_v49, %v4974_v50  ;;  %v680_v45 = vld [vmem:[#allocation4 + $0x41] ss:$8 sm:$0xf] }
 0x14b   :  { %v682_v49 = vld [vmem:[#allocation4 + $0x61] ss:$8 sm:$0xf] }
 0x14c   :  { %v740_v59 = vcombine.low %v731_v33, %v738_v44 }
 0x14e   :  { %v754_v37 = vrot.slane %v740_v59, %v4974_v50  ;;  %v684_v59 = vld [vmem:[#allocation4 + $0x81] ss:$8 sm:$0xf] }
 0x150   :  { %v755_v32 = vcombine.low %v747_v39, %v754_v37  ;;  %v686_v39 = vld [vmem:[#allocation4 + $0xa1] ss:$8 sm:$0xf] }
 0x152   :  { %822 = vmatmul.mubr.f32.vlgmr.msra.gmra.mxu0 %v755_v32  ;;  %893 = vmatmul.mubr.f32.vlgmr.msra.gmra.mxu1 %v755_v32 }
 0x153   :  { %1214 = vmatpush1.msra.mxu0 %v4716_v3  ;;  %1285 = vmatpush1.msra.mxu1 %v4720_v4  ;;  %v6534_v3 = vld [vmem:[#allocation16_spill] sm:$0xff]  ;;  %v6535_v4 = vld [vmem:[#allocation17_spill] sm:$0xff] }
 0x154   :  { %1215 = vmatprep.subr.mxu0 %v4722_v5  ;;  %1286 = vmatprep.subr.mxu1 %v4724_v6  ;;  %v6536_v5 = vld [vmem:[#allocation18_spill] sm:$0xff]  ;;  %v6537_v6 = vld [vmem:[#allocation19_spill] sm:$0xff] }
 0x155   :  { %1216 = vmatpush1.msra.mxu0 %v4728_v7  ;;  %1287 = vmatpush1.msra.mxu1 %v4730_v8  ;;  %v6538_v7 = vld [vmem:[#allocation20_spill] sm:$0xff]  ;;  %v6539_v8 = vld [vmem:[#allocation21_spill] sm:$0xff] }
 0x156   :  { %1217 = vmatprep.subr.mxu0 %v4732_v9  ;;  %1288 = vmatprep.subr.mxu1 %v4736_v10  ;;  %v6540_v9 = vld [vmem:[#allocation22_spill] sm:$0xff]  ;;  %v6541_v10 = vld [vmem:[#allocation23_spill] sm:$0xff] }
 0x157   :  { %1218 = vmatpush1.msra.mxu0 %v4738_v11  ;;  %1289 = vmatpush1.msra.mxu1 %v4740_v12  ;;  %v6542_v11 = vld [vmem:[#allocation24_spill] sm:$0xff]  ;;  %v6543_v12 = vld [vmem:[#allocation25_spill] sm:$0xff] }
 0x158   :  { %1219 = vmatprep.subr.mxu0 %v4744_v13  ;;  %1290 = vmatprep.subr.mxu1 %v4746_v14  ;;  %v6544_v13 = vld [vmem:[#allocation26_spill] sm:$0xff]  ;;  %v6545_v14 = vld [vmem:[#allocation27_spill] sm:$0xff] }
 0x159   :  { %1220 = vmatpush1.msra.mxu0 %v4750_v15  ;;  %1291 = vmatpush1.msra.mxu1 %v4752_v16  ;;  %v6546_v15 = vld [vmem:[#allocation28_spill] sm:$0xff]  ;;  %v6547_v16 = vld [vmem:[#allocation29_spill] sm:$0xff] }
 0x15a   :  { %1221 = vmatprep.subr.mxu0 %v4756_v17  ;;  %1292 = vmatprep.subr.mxu1 %v4758_v18  ;;  %v6548_v17 = vld [vmem:[#allocation30_spill] sm:$0xff]  ;;  %v6549_v18 = vld [vmem:[#allocation31_spill] sm:$0xff] }
 0x15b   :  { %1222 = vmatpush1.msra.mxu0 %v4762_v19  ;;  %1293 = vmatpush1.msra.mxu1 %v4764_v20  ;;  %v6550_v19 = vld [vmem:[#allocation32_spill] sm:$0xff]  ;;  %v6551_v20 = vld [vmem:[#allocation33_spill] sm:$0xff] }
 0x15c   :  { %1223 = vmatprep.subr.mxu0 %v4768_v21  ;;  %1294 = vmatprep.subr.mxu1 %v4770_v22  ;;  %v6552_v21 = vld [vmem:[#allocation34_spill] sm:$0xff]  ;;  %v6553_v22 = vld [vmem:[#allocation35_spill] sm:$0xff] }
 0x15d   :  { %1224 = vmatpush1.msra.mxu0 %v4774_v23  ;;  %1295 = vmatpush1.msra.mxu1 %v4776_v24  ;;  %v6554_v23 = vld [vmem:[#allocation36_spill] sm:$0xff]  ;;  %v6555_v24 = vld [vmem:[#allocation37_spill] sm:$0xff] }
 0x15e   :  { %1225 = vmatprep.subr.mxu0 %v4780_v25  ;;  %1296 = vmatprep.subr.mxu1 %v4782_v26  ;;  %v6556_v25 = vld [vmem:[#allocation38_spill] sm:$0xff]  ;;  %v6557_v26 = vld [vmem:[#allocation39_spill] sm:$0xff] }
 0x15f   :  { %1226 = vmatpush1.msra.mxu0 %v4786_v27  ;;  %1297 = vmatpush1.msra.mxu1 %v4788_v28  ;;  %v6558_v27 = vld [vmem:[#allocation40_spill] sm:$0xff]  ;;  %v6559_v28 = vld [vmem:[#allocation41_spill] sm:$0xff] }
 0x160   :  { %1227 = vmatprep.subr.mxu0 %v4792_v29  ;;  %1298 = vmatprep.subr.mxu1 %v4794_v30  ;;  %v6560_v29 = vld [vmem:[#allocation42_spill] sm:$0xff]  ;;  %v6561_v30 = vld [vmem:[#allocation43_spill] sm:$0xff] }
 0x161   :  { %1228 = vmatpush1.msra.mxu0 %v6534_v3  ;;  %1299 = vmatpush1.msra.mxu1 %v6535_v4  ;;  %v6571_v3 = vld [vmem:[#allocation50_spill] sm:$0xff] }
 0x162   :  { %1229 = vmatprep.subr.mxu0 %v6536_v5  ;;  %1300 = vmatprep.subr.mxu1 %v6537_v6  ;;  %v691_v4 = vadd.f32 %v676_v60, %v6571_v3  ;;  %v6572_v5 = vld [vmem:[#allocation51_spill] sm:$0xff] }
 0x163   :  { %1230 = vmatpush1.msra.mxu0 %v6538_v7  ;;  %1301 = vmatpush1.msra.mxu1 %v6539_v8  ;;  %v692_v6 = vadd.f32 %v678_v36, %v6572_v5  ;;  %v688_v7 = vld [vmem:[#allocation4 + $0xc1] ss:$8 sm:$0xf] }
 0x164   :  { %1231 = vmatprep.subr.mxu0 %v6540_v9  ;;  %1302 = vmatprep.subr.mxu1 %v6541_v10  ;;  %v690_v8 = vld [vmem:[#allocation4 + $0xe1] ss:$8 sm:$0xf] }
 0x165   :  { %1232 = vmatpush1.msra.mxu0 %v6542_v11  ;;  %1303 = vmatpush1.msra.mxu1 %v6543_v12 }
 0x166   :  { %1233 = vmatprep.subr.mxu0 %v6544_v13  ;;  %1304 = vmatprep.subr.mxu1 %v6545_v14  ;;  %v6573_v13 = vld [vmem:[#allocation54_spill] sm:$0xff] }
 0x167   :  { %1234 = vmatpush1.msra.mxu0 %v6546_v15  ;;  %1305 = vmatpush1.msra.mxu1 %v6547_v16  ;;  %v693_v14 = vadd.f32 %v680_v45, %v6573_v13  ;;  %v6574_v15 = vld [vmem:[#allocation55_spill] sm:$0xff] }
 0x168   :  { %1235 = vmatprep.subr.mxu0 %v6548_v17  ;;  %1306 = vmatprep.subr.mxu1 %v6549_v18  ;;  %v694_v16 = vadd.f32 %v682_v49, %v6574_v15  ;;  %v6575_v17 = vld [vmem:[#allocation52_spill] sm:$0xff] }
 0x169   :  { %1236 = vmatpush1.msra.mxu0 %v6550_v19  ;;  %1307 = vmatpush1.msra.mxu1 %v6551_v20  ;;  %v695_v18 = vadd.f32 %v684_v59, %v6575_v17  ;;  %v6576_v19 = vld [vmem:[#allocation53_spill] sm:$0xff] }
 0x16a   :  { %1237 = vmatprep.subr.mxu0 %v6552_v21  ;;  %1308 = vmatprep.subr.mxu1 %v6553_v22  ;;  %v696_v20 = vadd.f32 %v686_v39, %v6576_v19 }
 0x16b   :  { %1238 = vmatpush1.msra.mxu0 %v6554_v23  ;;  %1309 = vmatpush1.msra.mxu1 %v6555_v24 }
 0x16c   :  { %1239 = vmatprep.subr.mxu0 %v6556_v25  ;;  %1310 = vmatprep.subr.mxu1 %v6557_v26  ;;  %v6577_v25 = vld [vmem:[#allocation56_spill] sm:$0xff] }
 0x16d   :  { %1240 = vmatpush1.msra.mxu0 %v6558_v27  ;;  %1311 = vmatpush1.msra.mxu1 %v6559_v28  ;;  %v697_v26 = vadd.f32 %v688_v7, %v6577_v25  ;;  %v6578_v27 = vld [vmem:[#allocation57_spill] sm:$0xff] }
 0x16e   :  { %1241 = vmatprep.subr.mxu0 %v6560_v29  ;;  %1312 = vmatprep.subr.mxu1 %v6561_v30  ;;  %v698_v28 = vadd.f32 %v690_v8, %v6578_v27 }
 0x16f   :  { %1242 = vmatpush1.msra.mxu0 %v6562_v46  ;;  %1313 = vmatpush1.msra.mxu1 %v6563_v35 }
 0x170   :  { %1243 = vmatprep.subr.mxu0 %v6564_v0  ;;  %1314 = vmatprep.subr.mxu1 %v6565_v43 }
 0x171   :  { %1244 = vmatpush1.msra.mxu0 %v6566_v55  ;;  %1277 = vmatprep.mubr.f32.mxu0 %v6567_v61 }
 0x172   :  { %1315 = vmatpush1.msra.mxu1 %v6568_v57  ;;  %1348 = vmatprep.mubr.f32.mxu1 %v6567_v61 }
 0x173   :  { %1669 = vmatprep.subr.mxu0 %v6569_v38  ;;  %1740 = vmatprep.subr.mxu1 %v6570_v58 }
 0x212   :  { %v823_v63 = vpop.f32.mrf.mxu0  ;;  %v894_v34 = vpop.f32.mrf.mxu1 }
 0x214   :  { %v825_v56 = vpop.f32.mrf.mxu0  ;;  %v896_v48 = vpop.f32.mrf.mxu1 }
 0x215   :  { %v903_v52 = vcombine.low %v823_v63, %v825_v56  ;;  %v904_v40 = vcombine.high %v823_v63, %v825_v56  ;;  %v905_v53 = vcombine.low %v894_v34, %v896_v48  ;;  %v906_v42 = vcombine.high %v894_v34, %v896_v48 }
 0x217   :  { %v913_v33 = vrot.slane %v903_v52, %v4974_v50  ;;  %v920_v44 = vrot.slane %v904_v40, %v4974_v50  ;;  %v927_v37 = vrot.slane %v905_v53, %v4974_v50  ;;  %v934_v32 = vrot.slane %v906_v42, %v4974_v50 }
 0x219   :  { %v935_v9 = vcombine.low %v913_v33, %v927_v37  ;;  %v936_v10 = vcombine.high %v913_v33, %v927_v37  ;;  %v937_v11 = vcombine.low %v920_v44, %v934_v32  ;;  %v938_v12 = vcombine.high %v920_v44, %v934_v32 }
 0x21b   :  { %v945_v21 = vrot.slane %v935_v9, %v4974_v50  ;;  %v952_v22 = vrot.slane %v937_v11, %v4974_v50  ;;  %v959_v23 = vrot.slane %v936_v10, %v4974_v50  ;;  %v966_v24 = vrot.slane %v938_v12, %v4974_v50 }
 0x21d   :  { %v967_v29 = vcombine.high %v945_v21, %v945_v21  ;;  %v968_v30 = vcombine.high %v952_v22, %v952_v22  ;;  %v969_v46 = vcombine.high %v959_v23, %v959_v23  ;;  %v970_v35 = vcombine.high %v966_v24, %v966_v24 }
 0x21e   :  { %v979_v0 = vadd.f32 %v945_v21, %v691_v4  ;;  %v980_v43 = vadd.f32 %v959_v23, %v692_v6  ;;  %v983_v55 = vadd.f32 %v952_v22, %v695_v18  ;;  %v984_v58 = vadd.f32 %v966_v24, %v696_v20 }
 0x21f   :  { %v981_v57 = vadd.f32 %v967_v29, %v693_v14  ;;  %v982_v38 = vadd.f32 %v969_v46, %v694_v16  ;;  %v985_v63 = vadd.f32 %v968_v30, %v697_v26  ;;  %v986_v48 = vadd.f32 %v970_v35, %v698_v28 }
 0x220   :  { %v987_v34 = vmul.f32 0.5, %v979_v0  ;;  %v988_v56 = vmul.f32 0.5, %v980_v43  ;;  %v991_v60 = vmul.f32 0.5, %v983_v55  ;;  %v992_v36 = vmul.f32 0.5, %v984_v58 }
 0x221   :  { %v989_v52 = vmul.f32 0.5, %v981_v57  ;;  %v990_v40 = vmul.f32 0.5, %v982_v38  ;;  %v993_v53 = vmul.f32 0.5, %v985_v63  ;;  %v994_v42 = vmul.f32 0.5, %v986_v48 }
 0x222   :  { %4061 = vtanh.f32 %v987_v34  ;;  %v1027_v45 = vrot.slane %v979_v0, 3  ;;  %v1028_v49 = vrot.slane %v980_v43, 3  ;;  %v1029_v33 = vrot.slane %v981_v57, 3 }
 0x223   :  { %4063 = vtanh.f32 %v988_v56  ;;  %v1030_v44 = vrot.slane %v982_v38, 3  ;;  %v1031_v59 = vrot.slane %v983_v55, 3  ;;  %v1032_v39 = vrot.slane %v984_v58, 3 }
 0x224   :  { %4065 = vtanh.f32 %v989_v52  ;;  %v1033_v37 = vrot.slane %v985_v63, 3  ;;  %v1034_v32 = vrot.slane %v986_v48, 3 }
 0x225   :  { %4067 = vtanh.f32 %v990_v40 }
 0x226   :  { %4069 = vtanh.f32 %v991_v60 }
 0x227   :  { %4071 = vtanh.f32 %v992_v36 }
 0x228   :  { %4073 = vtanh.f32 %v993_v53 }
 0x229   :  { %4075 = vtanh.f32 %v994_v42 }
 0x22a   :  { %4077 = vtanh.f32 %v1027_v45 }
 0x22b   :  { %4079 = vtanh.f32 %v1028_v49 }
 0x22c   :  { %4081 = vtanh.f32 %v1029_v33 }
 0x22d   :  { %4083 = vtanh.f32 %v1030_v44 }
 0x22e   :  { %4085 = vtanh.f32 %v1031_v59 }
 0x22f   :  { %v4062_v4 = vpop.eup %4061  ;;  %4087 = vtanh.f32 %v1032_v39 }
 0x230   :  { %v4064_v6 = vpop.eup %4063  ;;  %v1003_v7 = vmul.f32 0.5, %v4062_v4  ;;  %4089 = vtanh.f32 %v1033_v37 }
 0x231   :  { %v4066_v8 = vpop.eup %4065  ;;  %v1004_v9 = vmul.f32 0.5, %v4064_v6  ;;  %4091 = vtanh.f32 %v1034_v32 }
 0x232   :  { %v4068_v10 = vpop.eup %4067  ;;  %v1005_v11 = vmul.f32 0.5, %v4066_v8  ;;  %v5185_v12 = vadd.f32 0.5, %v1003_v7 }
 0x233   :  { %v4070_v14 = vpop.eup %4069  ;;  %v1006_v16 = vmul.f32 0.5, %v4068_v10  ;;  %v5187_v18 = vadd.f32 0.5, %v1004_v9 }
 0x234   :  { %v4072_v20 = vpop.eup %4071  ;;  %v1007_v21 = vmul.f32 0.5, %v4070_v14  ;;  %v5189_v22 = vadd.f32 0.5, %v1005_v11  ;;  %v1059_v23 = vrot.slane %v5185_v12, 1 }
 0x235   :  { %v4074_v24 = vpop.eup %4073  ;;  %v1008_v26 = vmul.f32 0.5, %v4072_v20  ;;  %v5192_v28 = vadd.f32 0.5, %v1006_v16  ;;  %v1060_v29 = vrot.slane %v5187_v18, 1 }
 0x236   :  { %v4076_v30 = vpop.eup %4075  ;;  %v1009_v46 = vmul.f32 0.5, %v4074_v24  ;;  %v5195_v35 = vadd.f32 0.5, %v1007_v21  ;;  %v1061_v0 = vrot.slane %v5189_v22, 1  ;;  %v1075_v43 = vmul.f32 %v1059_v23, %v5059_v62 }
 0x237   :  { %v4078_v55 = vpop.eup %4077  ;;  %v1010_v57 = vmul.f32 0.5, %v4076_v30  ;;  %v5199_v38 = vadd.f32 0.5, %v1008_v26  ;;  %v1062_v58 = vrot.slane %v5192_v28, 1  ;;  %v1076_v63 = vmul.f32 %v1060_v29, %v5063_v1 }
 0x238   :  { %v4080_v34 = vpop.eup %4079  ;;  %v5203_v56 = vadd.f32 0.5, %v1009_v46  ;;  %v1063_v48 = vrot.slane %v5195_v35, 1  ;;  %v1077_v52 = vmul.f32 %v1061_v0, %v5066_v54  ;;  %v1083_v40 = vmul.f32 %v4078_v55, %v5185_v12 }
 0x239   :  { %v4082_v60 = vpop.eup %4081  ;;  %v5208_v36 = vadd.f32 0.5, %v1010_v57  ;;  %v1064_v62 = vrot.slane %v5199_v38, 1  ;;  %v1078_v53 = vmul.f32 %v1062_v58, %v5070_v41  ;;  %v1084_v42 = vmul.f32 %v4080_v34, %v5187_v18 }
 0x23a   :  { %v4084_v45 = vpop.eup %4083  ;;  %v1065_v1 = vrot.slane %v5203_v56, 1  ;;  %v1079_v49 = vmul.f32 %v1063_v48, %v5074_v51  ;;  %v1085_v33 = vmul.f32 %v4082_v60, %v5189_v22  ;;  %v5216_v44 = vadd.f32 %v1083_v40, %v1075_v43 }
 0x23b   :  { %v4086_v54 = vpop.eup %4085  ;;  %v1066_v59 = vrot.slane %v5208_v36, 1  ;;  %v1080_v39 = vmul.f32 %v1064_v62, %v5078_v2  ;;  %v1086_v37 = vmul.f32 %v4084_v45, %v5192_v28  ;;  %v5221_v32 = vadd.f32 %v1084_v42, %v1076_v63 }
 0x23c   :  { %v4088_v41 = vpop.eup %4087  ;;  %v1081_v4 = vmul.f32 %v1065_v1, %v5081_v47  ;;  %v1087_v6 = vmul.f32 %v4086_v54, %v5195_v35  ;;  %v5225_v7 = vadd.f32 %v1085_v33, %v1077_v52  ;;  %4093 = vtanh.f32 %v5216_v44 }
 0x23d   :  { %v4090_v51 = vpop.eup %4089  ;;  %v1082_v8 = vmul.f32 %v1066_v59, %v5084_v31  ;;  %v1088_v9 = vmul.f32 %v4088_v41, %v5199_v38  ;;  %v5230_v10 = vadd.f32 %v1086_v37, %v1078_v53  ;;  %4095 = vtanh.f32 %v5221_v32  ;;  %v5263_v41 = vld [vmem:[#allocation7 + $0x1e0] sm:$0xff] }
 0x23e   :  { %v4092_v2 = vpop.eup %4091  ;;  %v1089_v11 = vmul.f32 %v4090_v51, %v5203_v56  ;;  %v5234_v14 = vadd.f32 %v1087_v6, %v1079_v49  ;;  %4097 = vtanh.f32 %v5225_v7  ;;  %v1107_v21 = vrot.slane %v5185_v12, 2  ;;  %v5269_v6 = vld [vmem:[#allocation7 + $0x1c8] sm:$0xff]  ;;  %v5272_v51 = vld [vmem:[#allocation7 + $0x1d8] sm:$0xff] }
 0x23f   :  { %v1090_v47 = vmul.f32 %v4092_v2, %v5208_v36  ;;  %v5238_v16 = vadd.f32 %v1088_v9, %v1080_v39  ;;  %4099 = vtanh.f32 %v5230_v10  ;;  %v1108_v24 = vrot.slane %v5187_v18, 2  ;;  %v5278_v9 = vld [vmem:[#allocation7 + $0x1d0] sm:$0xff]  ;;  %v5281_v2 = vld [vmem:[#allocation7 + $0x1a8] sm:$0xff] }
 0x240   :  { %v5241_v31 = vadd.f32 %v1089_v11, %v1081_v4  ;;  %4101 = vtanh.f32 %v5234_v14  ;;  %v1109_v29 = vrot.slane %v5189_v22, 2  ;;  %v1110_v0 = vrot.slane %v5192_v28, 2  ;;  %v5266_v4 = vld [vmem:[#allocation7 + $0x1f0] sm:$0xff]  ;;  %v5284_v11 = vld [vmem:[#allocation7 + $0x1b8] sm:$0xff] }
 0x241   :  { %v5244_v20 = vadd.f32 %v1090_v47, %v1082_v8  ;;  %4103 = vtanh.f32 %v5238_v16  ;;  %v1111_v57 = vrot.slane %v5195_v35, 2  ;;  %v1112_v34 = vrot.slane %v5199_v38, 2  ;;  %v5275_v8 = vld [vmem:[#allocation7 + $0x1c0] sm:$0xff] }
 0x242   :  { %4105 = vtanh.f32 %v5241_v31  ;;  %v1113_v18 = vrot.slane %v5203_v56, 2  ;;  %v1114_v22 = vrot.slane %v5208_v36, 2  ;;  %v5287_v47 = vld [vmem:[#allocation7 + $0x1a0] sm:$0xff] }
 0x243   :  { %4107 = vtanh.f32 %v5244_v20 }
 0x249   :  { %v4094_v23 = vpop.eup %4093 }
 0x24a   :  { %v4096_v26 = vpop.eup %4095  ;;  %v1123_v30 = vmul.f32 %v4094_v23, %v1107_v21  ;;  %v5290_v21 = vld [vmem:[#allocation7 + $0x1b0] sm:$0xff]  ;;  %v5293_v23 = vld [vmem:[#allocation7 + $0x188] sm:$0xff] }
 0x24b   :  { %v4098_v46 = vpop.eup %4097  ;;  %v1124_v43 = vmul.f32 %v4096_v26, %v1108_v24  ;;  %v5296_v24 = vld [vmem:[#allocation7 + $0x198] sm:$0xff]  ;;  %v5299_v26 = vld [vmem:[#allocation7 + $0x180] sm:$0xff] }
 0x24c   :  { %v4100_v55 = vpop.eup %4099  ;;  %v1125_v58 = vmul.f32 %v4098_v46, %v1109_v29  ;;  %v5302_v29 = vld [vmem:[#allocation7 + $0x190] sm:$0xff]  ;;  %v5308_v46 = vld [vmem:[#allocation7 + $0x178] sm:$0xff] }
 0x24d   :  { %v4102_v63 = vpop.eup %4101  ;;  %v1126_v48 = vmul.f32 %v4100_v55, %v1110_v0  ;;  %v1163_v12 = vcombine.low %v1123_v30, %v1124_v43  ;;  %v5305_v30 = vld [vmem:[#allocation7 + $0x168] sm:$0xff]  ;;  %v5311_v0 = vld [vmem:[#allocation7 + $0x160] sm:$0xff]  ;;  %v5314_v43 = vld [vmem:[#allocation7 + $0x170] sm:$0xff] }
 0x24e   :  { %v4104_v52 = vpop.eup %4103  ;;  %v1127_v40 = vmul.f32 %v4102_v63, %v1111_v57  ;;  %v5317_v55 = vld [vmem:[#allocation7 + $0x148] sm:$0xff]  ;;  %v5320_v57 = vld [vmem:[#allocation7 + $0x158] sm:$0xff]  ;;  %v5326_v63 = vld [vmem:[#allocation7 + $0x150] sm:$0xff] }
 0x24f   :  { %v4106_v60 = vpop.eup %4105  ;;  %v1128_v62 = vmul.f32 %v4104_v52, %v1112_v34  ;;  %v1164_v53 = vcombine.low %v1125_v58, %v1126_v48  ;;  %v1173_v35 = vrot.slane %v1163_v12, %v4974_v50  ;;  %v5323_v58 = vld [vmem:[#allocation7 + $0x140] sm:$0xff]  ;;  %v5329_v34 = vld [vmem:[#allocation7 + $0x128] sm:$0xff]  ;;  %v5332_v48 = vld [vmem:[#allocation7 + $0x138] sm:$0xff] }
 0x250   :  { %v4108_v28 = vpop.eup %4107  ;;  %v1129_v42 = vmul.f32 %v4106_v60, %v1113_v18  ;;  %6579 = vst [vmem:[#allocation16_spill] sm:$0xff] %v5329_v34  ;;  %6580 = vst [vmem:[#allocation17_spill] sm:$0xff] %v5332_v48  ;;  %v5335_v12 = vld [vmem:[#allocation7 + $0x120] sm:$0xff]  ;;  %v5338_v52 = vld [vmem:[#allocation7 + $0x130] sm:$0xff] }
 0x251   :  { %v1130_v45 = vmul.f32 %v4108_v28, %v1114_v22  ;;  %v1165_v1 = vcombine.low %v1127_v40, %v1128_v62  ;;  %v1180_v49 = vrot.slane %v1164_v53, %v4974_v50  ;;  %6581 = vst [vmem:[#allocation18_spill] sm:$0xff] %v5335_v12  ;;  %6582 = vst [vmem:[#allocation19_spill] sm:$0xff] %v5338_v52  ;;  %v5341_v18 = vld [vmem:[#allocation7 + $0x108] sm:$0xff]  ;;  %v5344_v40 = vld [vmem:[#allocation7 + $0x118] sm:$0xff] }
 0x252   :  { %6583 = vst [vmem:[#allocation20_spill] sm:$0xff] %v5341_v18  ;;  %6584 = vst [vmem:[#allocation21_spill] sm:$0xff] %v5344_v40  ;;  %v5347_v60 = vld [vmem:[#allocation7 + $0x100] sm:$0xff]  ;;  %v5350_v22 = vld [vmem:[#allocation7 + $0x110] sm:$0xff] }
 0x253   :  { %v1166_v38 = vcombine.low %v1129_v42, %v1130_v45  ;;  %v1195_v33 = vcombine.low %v1173_v35, %v1180_v49  ;;  %v1187_v54 = vrot.slane %v1165_v1, %v4974_v50  ;;  %6585 = vst [vmem:[#allocation22_spill] sm:$0xff] %v5347_v60  ;;  %6586 = vst [vmem:[#allocation23_spill] sm:$0xff] %v5350_v22  ;;  %v5353_v62 = vld [vmem:[#allocation7 + $0xe8] sm:$0xff]  ;;  %v5356_v53 = vld [vmem:[#allocation7 + $0xf8] sm:$0xff] }
 0x254   :  { %6587 = vst [vmem:[#allocation24_spill] sm:$0xff] %v5353_v62  ;;  %6588 = vst [vmem:[#allocation25_spill] sm:$0xff] %v5356_v53  ;;  %v5359_v28 = vld [vmem:[#allocation7 + $0xe0] sm:$0xff]  ;;  %v5362_v42 = vld [vmem:[#allocation7 + $0xf0] sm:$0xff] }
 0x255   :  { %v1194_v56 = vrot.slane %v1166_v38, %v4974_v50  ;;  %v1203_v39 = vrot.slane %v1195_v33, %v4974_v50  ;;  %6589 = vst [vmem:[#allocation26_spill] sm:$0xff] %v5359_v28  ;;  %6590 = vst [vmem:[#allocation27_spill] sm:$0xff] %v5362_v42  ;;  %v5365_v45 = vld [vmem:[#allocation7 + $0xc8] sm:$0xff]  ;;  %v5368_v1 = vld [vmem:[#allocation7 + $0xd8] sm:$0xff] }
 0x256   :  { %6591 = vst [vmem:[#allocation28_spill] sm:$0xff] %v5365_v45  ;;  %6592 = vst [vmem:[#allocation29_spill] sm:$0xff] %v5368_v1  ;;  %v5371_v35 = vld [vmem:[#allocation7 + $0xc0] sm:$0xff]  ;;  %v5374_v49 = vld [vmem:[#allocation7 + $0xd0] sm:$0xff] }
 0x257   :  { %v1196_v59 = vcombine.low %v1187_v54, %v1194_v56  ;;  %6593 = vst [vmem:[#allocation30_spill] sm:$0xff] %v5371_v35  ;;  %6594 = vst [vmem:[#allocation31_spill] sm:$0xff] %v5374_v49  ;;  %v5377_v38 = vld [vmem:[#allocation7 + $0xa8] sm:$0xff]  ;;  %v5380_v33 = vld [vmem:[#allocation7 + $0xb8] sm:$0xff] }
 0x258   :  { %6595 = vst [vmem:[#allocation32_spill] sm:$0xff] %v5377_v38  ;;  %6596 = vst [vmem:[#allocation33_spill] sm:$0xff] %v5380_v33  ;;  %v5383_v54 = vld [vmem:[#allocation7 + $0xa0] sm:$0xff]  ;;  %v5386_v56 = vld [vmem:[#allocation7 + $0xb0] sm:$0xff] }
 0x259   :  { %v1210_v36 = vrot.slane %v1196_v59, %v4974_v50  ;;  %6597 = vst [vmem:[#allocation34_spill] sm:$0xff] %v5383_v54  ;;  %6598 = vst [vmem:[#allocation35_spill] sm:$0xff] %v5386_v56  ;;  %v5389_v59 = vld [vmem:[#allocation7 + $0x88] sm:$0xff] }
 0x25a   :  { %6599 = vst [vmem:[#allocation36_spill] sm:$0xff] %v5389_v59 }
 0x25b   :  { %v1211_v37 = vcombine.low %v1203_v39, %v1210_v36  ;;  %v5392_v39 = vld [vmem:[#allocation7 + $0x98] sm:$0xff]  ;;  %v5395_v36 = vld [vmem:[#allocation7 + $0x80] sm:$0xff] }
 0x25c   :  { %6600 = vst [vmem:[#allocation37_spill] sm:$0xff] %v5392_v39  ;;  %6601 = vst [vmem:[#allocation38_spill] sm:$0xff] %v5395_v36 }
 0x25d   :  { %1278 = vmatmul.mubr.f32.vlgmr.msra.gmra.mxu0 %v1211_v37  ;;  %1349 = vmatmul.mubr.f32.vlgmr.msra.gmra.mxu1 %v1211_v37  ;;  %v5398_v37 = vld [vmem:[#allocation7 + $0x90] sm:$0xff] }
 0x25e   :  { %1670 = vmatpush1.msra.mxu0 %v5263_v41  ;;  %1741 = vmatpush1.msra.mxu1 %v5266_v4  ;;  %6602 = vst [vmem:[#allocation39_spill] sm:$0xff] %v5398_v37 }
 0x25f   :  { %1671 = vmatprep.subr.mxu0 %v5269_v6  ;;  %1742 = vmatprep.subr.mxu1 %v5272_v51 }
 0x260   :  { %1672 = vmatpush1.msra.mxu0 %v5275_v8  ;;  %1743 = vmatpush1.msra.mxu1 %v5278_v9 }
 0x261   :  { %1673 = vmatprep.subr.mxu0 %v5281_v2  ;;  %1744 = vmatprep.subr.mxu1 %v5284_v11 }
 0x262   :  { %1674 = vmatpush1.msra.mxu0 %v5287_v47  ;;  %1745 = vmatpush1.msra.mxu1 %v5290_v21 }
 0x263   :  { %1675 = vmatprep.subr.mxu0 %v5293_v23  ;;  %1746 = vmatprep.subr.mxu1 %v5296_v24 }
 0x264   :  { %1676 = vmatpush1.msra.mxu0 %v5299_v26  ;;  %1747 = vmatpush1.msra.mxu1 %v5302_v29 }
 0x265   :  { %1677 = vmatprep.subr.mxu0 %v5305_v30  ;;  %1748 = vmatprep.subr.mxu1 %v5308_v46 }
 0x266   :  { %1678 = vmatpush1.msra.mxu0 %v5311_v0  ;;  %1749 = vmatpush1.msra.mxu1 %v5314_v43 }
 0x267   :  { %1679 = vmatprep.subr.mxu0 %v5317_v55  ;;  %1750 = vmatprep.subr.mxu1 %v5320_v57 }
 0x268   :  { %1680 = vmatpush1.msra.mxu0 %v5323_v58  ;;  %1751 = vmatpush1.msra.mxu1 %v5326_v63 }
 0x269   :  { %1681 = vmatprep.subr.mxu0 %v5329_v34  ;;  %1752 = vmatprep.subr.mxu1 %v5332_v48 }
 0x26a   :  { %1682 = vmatpush1.msra.mxu0 %v5335_v12  ;;  %1753 = vmatpush1.msra.mxu1 %v5338_v52 }
 0x26b   :  { %1683 = vmatprep.subr.mxu0 %v5341_v18  ;;  %1754 = vmatprep.subr.mxu1 %v5344_v40  ;;  %v1146_v40 = vld [vmem:[#allocation4 + $0xe2] ss:$8 sm:$0xf] }
 0x26c   :  { %1684 = vmatpush1.msra.mxu0 %v5347_v60  ;;  %1755 = vmatpush1.msra.mxu1 %v5350_v22 }
 0x26d   :  { %1685 = vmatprep.subr.mxu0 %v5353_v62  ;;  %1756 = vmatprep.subr.mxu1 %v5356_v53  ;;  %v1140_v53 = vld [vmem:[#allocation4 + $0x82] ss:$8 sm:$0xf] }
 0x26e   :  { %1686 = vmatpush1.msra.mxu0 %v5359_v28  ;;  %1757 = vmatpush1.msra.mxu1 %v5362_v42  ;;  %v1136_v42 = vld [vmem:[#allocation4 + $0x42] ss:$8 sm:$0xf]  ;;  %v1151_v12 = vadd.f32 %v1140_v53, %v6575_v17 }
 0x26f   :  { %1687 = vmatprep.subr.mxu0 %v5365_v45  ;;  %1758 = vmatprep.subr.mxu1 %v5368_v1  ;;  %v1134_v1 = vld [vmem:[#allocation4 + $0x22] ss:$8 sm:$0xf] }
 0x270   :  { %1688 = vmatpush1.msra.mxu0 %v5371_v35  ;;  %1759 = vmatpush1.msra.mxu1 %v5374_v49  ;;  %v1132_v35 = vld [vmem:[#allocation4 + $0x2] ss:$8 sm:$0xf] }
 0x271   :  { %1689 = vmatprep.subr.mxu0 %v5377_v38  ;;  %1760 = vmatprep.subr.mxu1 %v5380_v33  ;;  %v1142_v62 = vld [vmem:[#allocation4 + $0xa2] ss:$8 sm:$0xf]  ;;  %v1147_v60 = vadd.f32 %v1132_v35, %v6571_v3 }
 0x272   :  { %1690 = vmatpush1.msra.mxu0 %v5383_v54  ;;  %1761 = vmatpush1.msra.mxu1 %v5386_v56  ;;  %v5401_v54 = vld [vmem:[#allocation7 + $0x68] sm:$0xff]  ;;  %v5404_v56 = vld [vmem:[#allocation7 + $0x78] sm:$0xff] }
 0x273   :  { %1691 = vmatprep.subr.mxu0 %v5389_v59  ;;  %1762 = vmatprep.subr.mxu1 %v5392_v39  ;;  %6603 = vst [vmem:[#allocation40_spill] sm:$0xff] %v5401_v54  ;;  %6604 = vst [vmem:[#allocation41_spill] sm:$0xff] %v5404_v56  ;;  %v5407_v59 = vld [vmem:[#allocation7 + $0x60] sm:$0xff]  ;;  %v5410_v39 = vld [vmem:[#allocation7 + $0x70] sm:$0xff] }
 0x274   :  { %1692 = vmatpush1.msra.mxu0 %v5395_v36  ;;  %1763 = vmatpush1.msra.mxu1 %v5398_v37  ;;  %6605 = vst [vmem:[#allocation42_spill] sm:$0xff] %v5407_v59  ;;  %6606 = vst [vmem:[#allocation43_spill] sm:$0xff] %v5410_v39  ;;  %v5413_v36 = vld [vmem:[#allocation7 + $0x48] sm:$0xff]  ;;  %v5416_v37 = vld [vmem:[#allocation7 + $0x58] sm:$0xff] }
 0x275   :  { %1693 = vmatprep.subr.mxu0 %v5401_v54  ;;  %1764 = vmatprep.subr.mxu1 %v5404_v56  ;;  %6607 = vst [vmem:[#allocation44_spill] sm:$0xff] %v5413_v36  ;;  %6608 = vst [vmem:[#allocation45_spill] sm:$0xff] %v5416_v37  ;;  %v5419_v54 = vld [vmem:[#allocation7 + $0x40] sm:$0xff]  ;;  %v5422_v56 = vld [vmem:[#allocation7 + $0x50] sm:$0xff] }
 0x276   :  { %1694 = vmatpush1.msra.mxu0 %v5407_v59  ;;  %1765 = vmatpush1.msra.mxu1 %v5410_v39  ;;  %6609 = vst [vmem:[#allocation46_spill] sm:$0xff] %v5419_v54  ;;  %6610 = vst [vmem:[#allocation47_spill] sm:$0xff] %v5422_v56  ;;  %v5425_v59 = vld [vmem:[#allocation7 + $0x28] sm:$0xff]  ;;  %v5428_v39 = vld [vmem:[#allocation7 + $0x38] sm:$0xff] }
 0x277   :  { %1695 = vmatprep.subr.mxu0 %v5413_v36  ;;  %1766 = vmatprep.subr.mxu1 %v5416_v37  ;;  %6611 = vst [vmem:[#allocation48_spill] sm:$0xff] %v5425_v59  ;;  %6612 = vst [vmem:[#allocation49_spill] sm:$0xff] %v5428_v39  ;;  %v5431_v36 = vld [vmem:[#allocation7 + $0x20] sm:$0xff]  ;;  %v5434_v37 = vld [vmem:[#allocation7 + $0x30] sm:$0xff] }
 0x278   :  { %1696 = vmatpush1.msra.mxu0 %v5419_v54  ;;  %1767 = vmatpush1.msra.mxu1 %v5422_v56  ;;  %6613 = vst [vmem:[#allocation14_spill] sm:$0xff] %v5431_v36  ;;  %6614 = vst [vmem:[#allocation15_spill] sm:$0xff] %v5434_v37  ;;  %v5437_v54 = vld [vmem:[#allocation7 + $0x8] sm:$0xff]  ;;  %v5440_v56 = vld [vmem:[#allocation7 + $0x18] sm:$0xff] }
 0x279   :  { %1697 = vmatprep.subr.mxu0 %v5425_v59  ;;  %1768 = vmatprep.subr.mxu1 %v5428_v39  ;;  %6615 = vst [vmem:[#allocation56_spill] sm:$0xff] %v5437_v54  ;;  %6616 = vst [vmem:[#allocation58_spill] sm:$0xff] %v5440_v56  ;;  %v5443_v59 = vld [vmem:[#allocation7] sm:$0xff]  ;;  %v5447_v39 = vld [vmem:[#allocation7 + $0x10] sm:$0xff] }
 0x27a   :  { %1698 = vmatpush1.msra.mxu0 %v5431_v36  ;;  %1769 = vmatpush1.msra.mxu1 %v5434_v37  ;;  %6617 = vst [vmem:[#allocation59_spill] sm:$0xff] %v5443_v59  ;;  %6618 = vst [vmem:[#allocation60_spill] sm:$0xff] %v5447_v39  ;;  %v5451_v37 = vld [vmem:[#allocation7 + $0x1e8] sm:$0xff] }
 0x27b   :  { %1699 = vmatprep.subr.mxu0 %v5437_v54  ;;  %1770 = vmatprep.subr.mxu1 %v5440_v56  ;;  %6619 = vst [vmem:[#allocation61_spill] sm:$0xff] %v5451_v37  ;;  %v5454_v54 = vld [vmem:[#allocation7 + $0x1f8] sm:$0xff] }
 0x27c   :  { %1700 = vmatpush1.msra.mxu0 %v5443_v59  ;;  %1733 = vmatprep.mubr.f32.mxu0 %v6567_v61  ;;  %6620 = vst [vmem:[#allocation62_spill] sm:$0xff] %v5454_v54 }
 0x27d   :  { %1771 = vmatpush1.msra.mxu1 %v5447_v39  ;;  %1804 = vmatprep.mubr.f32.mxu1 %v6567_v61  ;;  %v1138_v61 = vld [vmem:[#allocation4 + $0x62] ss:$8 sm:$0xf] }
 0x27e   :  { %2125 = vmatprep.subr.mxu0 %v5451_v37  ;;  %2196 = vmatprep.subr.mxu1 %v5454_v54 }
 0x31d   :  { %v1279_v56 = vpop.f32.mrf.mxu0  ;;  %v1350_v36 = vpop.f32.mrf.mxu1 }
 0x31f   :  { %v1281_v33 = vpop.f32.mrf.mxu0  ;;  %v1352_v59 = vpop.f32.mrf.mxu1 }
 0x320   :  { %v1359_v38 = vcombine.low %v1279_v56, %v1281_v33  ;;  %v1360_v49 = vcombine.high %v1279_v56, %v1281_v33  ;;  %v1361_v45 = vcombine.low %v1350_v36, %v1352_v59  ;;  %v1362_v39 = vcombine.high %v1350_v36, %v1352_v59  ;;  %v1144_v56 = vld [vmem:[#allocation4 + $0xc2] ss:$8 sm:$0xf] }
 0x321   :  { %v1148_v33 = vadd.f32 %v1134_v1, %v6572_v5 }
 0x322   :  { %v1369_v28 = vrot.slane %v1359_v38, %v4974_v50  ;;  %v1376_v37 = vrot.slane %v1360_v49, %v4974_v50  ;;  %v1383_v54 = vrot.slane %v1361_v45, %v4974_v50  ;;  %v1390_v22 = vrot.slane %v1362_v39, %v4974_v50 }
 0x323   :  { %v1149_v38 = vadd.f32 %v1136_v42, %v6573_v13  ;;  %v1150_v49 = vadd.f32 %v1138_v61, %v6574_v15  ;;  %v1152_v45 = vadd.f32 %v1142_v62, %v6576_v19 }
 0x324   :  { %v1391_v18 = vcombine.low %v1369_v28, %v1383_v54  ;;  %v1392_v59 = vcombine.high %v1369_v28, %v1383_v54  ;;  %v1393_v36 = vcombine.low %v1376_v37, %v1390_v22  ;;  %v1394_v52 = vcombine.high %v1376_v37, %v1390_v22 }
 0x325   :  { %v1153_v28 = vadd.f32 %v1144_v56, %v6577_v25  ;;  %v1154_v22 = vadd.f32 %v1146_v40, %v6578_v27 }
 0x326   :  { %v1401_v39 = vrot.slane %v1391_v18, %v4974_v50  ;;  %v1408_v35 = vrot.slane %v1393_v36, %v4974_v50  ;;  %v1415_v1 = vrot.slane %v1392_v59, %v4974_v50  ;;  %v1422_v5 = vrot.slane %v1394_v52, %v4974_v50 }
 0x328   :  { %v1423_v54 = vcombine.high %v1401_v39, %v1401_v39  ;;  %v1424_v42 = vcombine.high %v1408_v35, %v1408_v35  ;;  %v1425_v37 = vcombine.high %v1415_v1, %v1415_v1  ;;  %v1426_v61 = vcombine.high %v1422_v5, %v1422_v5 }
 0x329   :  { %v1435_v15 = vadd.f32 %v1401_v39, %v1147_v60  ;;  %v1436_v53 = vadd.f32 %v1415_v1, %v1148_v33  ;;  %v1439_v17 = vadd.f32 %v1408_v35, %v1151_v12  ;;  %v1440_v18 = vadd.f32 %v1422_v5, %v1152_v45 }
 0x32a   :  { %v1437_v62 = vadd.f32 %v1423_v54, %v1149_v38  ;;  %v1438_v19 = vadd.f32 %v1425_v37, %v1150_v49  ;;  %v1441_v13 = vadd.f32 %v1424_v42, %v1153_v28  ;;  %v1442_v59 = vadd.f32 %v1426_v61, %v1154_v22 }
 0x32b   :  { %v1443_v36 = vmul.f32 0.5, %v1435_v15  ;;  %v1444_v3 = vmul.f32 0.5, %v1436_v53  ;;  %v1447_v34 = vmul.f32 0.5, %v1439_v17  ;;  %v1448_v56 = vmul.f32 0.5, %v1440_v18 }
 0x32c   :  { %v1445_v48 = vmul.f32 0.5, %v1437_v62  ;;  %v1446_v52 = vmul.f32 0.5, %v1438_v19  ;;  %v1449_v40 = vmul.f32 0.5, %v1441_v13  ;;  %v1450_v27 = vmul.f32 0.5, %v1442_v59 }
 0x32d   :  { %4109 = vtanh.f32 %v1443_v36  ;;  %v1483_v60 = vrot.slane %v1435_v15, 3  ;;  %v1484_v12 = vrot.slane %v1436_v53, 3  ;;  %v1485_v5 = vrot.slane %v1437_v62, 3 }
 0x32e   :  { %4111 = vtanh.f32 %v1444_v3  ;;  %v1486_v33 = vrot.slane %v1438_v19, 3  ;;  %v1487_v38 = vrot.slane %v1439_v17, 3  ;;  %v1488_v49 = vrot.slane %v1440_v18, 3 }
 0x32f   :  { %4113 = vtanh.f32 %v1445_v48  ;;  %v1489_v45 = vrot.slane %v1441_v13, 3  ;;  %v1490_v39 = vrot.slane %v1442_v59, 3 }
 0x330   :  { %4115 = vtanh.f32 %v1446_v52 }
 0x331   :  { %4117 = vtanh.f32 %v1447_v34 }
 0x332   :  { %4119 = vtanh.f32 %v1448_v56 }
 0x333   :  { %4121 = vtanh.f32 %v1449_v40 }
 0x334   :  { %4123 = vtanh.f32 %v1450_v27 }
 0x335   :  { %4125 = vtanh.f32 %v1483_v60 }
 0x336   :  { %4127 = vtanh.f32 %v1484_v12 }
 0x337   :  { %4129 = vtanh.f32 %v1485_v5 }
 0x338   :  { %4131 = vtanh.f32 %v1486_v33 }
 0x339   :  { %4133 = vtanh.f32 %v1487_v38 }
 0x33a   :  { %v4110_v3 = vpop.eup %4109  ;;  %4135 = vtanh.f32 %v1488_v49 }
 0x33b   :  { %v4112_v48 = vpop.eup %4111  ;;  %v1459_v34 = vmul.f32 0.5, %v4110_v3  ;;  %4137 = vtanh.f32 %v1489_v45 }
 0x33c   :  { %v4114_v15 = vpop.eup %4113  ;;  %v1460_v35 = vmul.f32 0.5, %v4112_v48  ;;  %4139 = vtanh.f32 %v1490_v39 }
 0x33d   :  { %v4116_v1 = vpop.eup %4115  ;;  %v1461_v27 = vmul.f32 0.5, %v4114_v15  ;;  %v5473_v19 = vadd.f32 0.5, %v1459_v34 }
 0x33e   :  { %v4118_v17 = vpop.eup %4117  ;;  %v1462_v28 = vmul.f32 0.5, %v4116_v1  ;;  %v5475_v22 = vadd.f32 0.5, %v1460_v35 }
 0x33f   :  { %v4120_v13 = vpop.eup %4119  ;;  %v1463_v54 = vmul.f32 0.5, %v4118_v17  ;;  %v5477_v42 = vadd.f32 0.5, %v1461_v27  ;;  %v1515_v37 = vrot.slane %v5473_v19, 1 }
 0x340   :  { %v4122_v61 = vpop.eup %4121  ;;  %v1464_v53 = vmul.f32 0.5, %v4120_v13  ;;  %v5480_v62 = vadd.f32 0.5, %v1462_v28  ;;  %v1516_v18 = vrot.slane %v5475_v22, 1 }
 0x341   :  { %v4124_v36 = vpop.eup %4123  ;;  %v1465_v59 = vmul.f32 0.5, %v4122_v61  ;;  %v5483_v52 = vadd.f32 0.5, %v1463_v54  ;;  %v1517_v56 = vrot.slane %v5477_v42, 1  ;;  %v1531_v40 = vmul.f32 %v1515_v37, %v5216_v44 }
 0x342   :  { %v4126_v60 = vpop.eup %4125  ;;  %v1466_v12 = vmul.f32 0.5, %v4124_v36  ;;  %v5487_v5 = vadd.f32 0.5, %v1464_v53  ;;  %v1518_v33 = vrot.slane %v5480_v62, 1  ;;  %v1532_v38 = vmul.f32 %v1516_v18, %v5221_v32 }
 0x343   :  { %v4128_v49 = vpop.eup %4127  ;;  %v5491_v45 = vadd.f32 0.5, %v1465_v59  ;;  %v1519_v39 = vrot.slane %v5483_v52, 1  ;;  %v1533_v3 = vmul.f32 %v1517_v56, %v5225_v7  ;;  %v1539_v48 = vmul.f32 %v4126_v60, %v5473_v19 }
 0x344   :  { %v4130_v34 = vpop.eup %4129  ;;  %v5496_v15 = vadd.f32 0.5, %v1466_v12  ;;  %v1520_v44 = vrot.slane %v5487_v5, 1  ;;  %v1534_v35 = vmul.f32 %v1518_v33, %v5230_v10  ;;  %v1540_v1 = vmul.f32 %v4128_v49, %v5475_v22 }
 0x345   :  { %v4132_v27 = vpop.eup %4131  ;;  %v1521_v32 = vrot.slane %v5491_v45, 1  ;;  %v1535_v17 = vmul.f32 %v1519_v39, %v5234_v14  ;;  %v1541_v28 = vmul.f32 %v4130_v34, %v5477_v42  ;;  %v5504_v13 = vadd.f32 %v1539_v48, %v1531_v40 }
 0x346   :  { %v4134_v7 = vpop.eup %4133  ;;  %v1522_v54 = vrot.slane %v5496_v15, 1  ;;  %v1536_v37 = vmul.f32 %v1520_v44, %v5238_v16  ;;  %v1542_v61 = vmul.f32 %v4132_v27, %v5480_v62  ;;  %v5509_v53 = vadd.f32 %v1540_v1, %v1532_v38 }
 0x347   :  { %v4136_v10 = vpop.eup %4135  ;;  %v1537_v18 = vmul.f32 %v1521_v32, %v5241_v31  ;;  %v1543_v36 = vmul.f32 %v4134_v7, %v5483_v52  ;;  %v5513_v59 = vadd.f32 %v1541_v28, %v1533_v3  ;;  %4141 = vtanh.f32 %v5504_v13 }
 0x348   :  { %v4138_v14 = vpop.eup %4137  ;;  %v1538_v56 = vmul.f32 %v1522_v54, %v5244_v20  ;;  %v1544_v40 = vmul.f32 %v4136_v10, %v5487_v5  ;;  %v5518_v60 = vadd.f32 %v1542_v61, %v1534_v35  ;;  %4143 = vtanh.f32 %v5509_v53 }
 0x349   :  { %v4140_v16 = vpop.eup %4139  ;;  %v1545_v12 = vmul.f32 %v4138_v14, %v5491_v45  ;;  %v5522_v33 = vadd.f32 %v1543_v36, %v1535_v17  ;;  %4145 = vtanh.f32 %v5513_v59  ;;  %v1563_v39 = vrot.slane %v5473_v19, 2 }
 0x34a   :  { %v1546_v31 = vmul.f32 %v4140_v16, %v5496_v15  ;;  %v5526_v38 = vadd.f32 %v1544_v40, %v1536_v37  ;;  %4147 = vtanh.f32 %v5518_v60  ;;  %v1564_v48 = vrot.slane %v5475_v22, 2 }
 0x34b   :  { %v5529_v20 = vadd.f32 %v1545_v12, %v1537_v18  ;;  %4149 = vtanh.f32 %v5522_v33  ;;  %v1565_v44 = vrot.slane %v5477_v42, 2  ;;  %v1566_v27 = vrot.slane %v5480_v62, 2 }
 0x34c   :  { %v5532_v49 = vadd.f32 %v1546_v31, %v1538_v56  ;;  %4151 = vtanh.f32 %v5526_v38  ;;  %v1567_v28 = vrot.slane %v5483_v52, 2  ;;  %v1568_v37 = vrot.slane %v5487_v5, 2 }
 0x34d   :  { %4153 = vtanh.f32 %v5529_v20  ;;  %v1569_v22 = vrot.slane %v5491_v45, 2  ;;  %v1570_v42 = vrot.slane %v5496_v15, 2 }
 0x34e   :  { %4155 = vtanh.f32 %v5532_v49 }
 0x354   :  { %v4142_v3 = vpop.eup %4141 }
 0x355   :  { %v4144_v34 = vpop.eup %4143  ;;  %v1579_v35 = vmul.f32 %v4142_v3, %v1563_v39 }
 0x356   :  { %v4146_v1 = vpop.eup %4145  ;;  %v1580_v32 = vmul.f32 %v4144_v34, %v1564_v48 }
 0x357   :  { %v4148_v17 = vpop.eup %4147  ;;  %v1581_v7 = vmul.f32 %v4146_v1, %v1565_v44  ;;  %v6644_v1 = vld [vmem:[#allocation39_spill] sm:$0xff] }
 0x358   :  { %v4150_v54 = vpop.eup %4149  ;;  %v1582_v61 = vmul.f32 %v4148_v17, %v1566_v27  ;;  %v1619_v19 = vcombine.low %v1579_v35, %v1580_v32  ;;  %v6643_v35 = vld [vmem:[#allocation38_spill] sm:$0xff]  ;;  %v6645_v27 = vld [vmem:[#allocation40_spill] sm:$0xff]  ;;  %v6646_v32 = vld [vmem:[#allocation41_spill] sm:$0xff] }
 0x359   :  { %v4152_v10 = vpop.eup %4151  ;;  %v1583_v18 = vmul.f32 %v4150_v54, %v1567_v28  ;;  %v6647_v17 = vld [vmem:[#allocation42_spill] sm:$0xff]  ;;  %v6648_v28 = vld [vmem:[#allocation43_spill] sm:$0xff]  ;;  %v6650_v54 = vld [vmem:[#allocation45_spill] sm:$0xff] }
 0x35a   :  { %v4154_v36 = vpop.eup %4153  ;;  %v1584_v14 = vmul.f32 %v4152_v10, %v1568_v37  ;;  %v1620_v56 = vcombine.low %v1581_v7, %v1582_v61  ;;  %v1629_v52 = vrot.slane %v1619_v19, %v4974_v50  ;;  %v6649_v7 = vld [vmem:[#allocation44_spill] sm:$0xff]  ;;  %v6651_v37 = vld [vmem:[#allocation46_spill] sm:$0xff]  ;;  %v6652_v61 = vld [vmem:[#allocation47_spill] sm:$0xff] }
 0x35b   :  { %v4156_v62 = vpop.eup %4155  ;;  %v1585_v40 = vmul.f32 %v4154_v36, %v1569_v22  ;;  %v6653_v19 = vld [vmem:[#allocation48_spill] sm:$0xff]  ;;  %v6654_v10 = vld [vmem:[#allocation49_spill] sm:$0xff]  ;;  %v6655_v22 = vld [vmem:[#allocation14_spill] sm:$0xff] }
 0x35c   :  { %v1586_v16 = vmul.f32 %v4156_v62, %v1570_v42  ;;  %v1621_v12 = vcombine.low %v1583_v18, %v1584_v14  ;;  %v1636_v31 = vrot.slane %v1620_v56, %v4974_v50  ;;  %v6656_v18 = vld [vmem:[#allocation15_spill] sm:$0xff]  ;;  %v6657_v36 = vld [vmem:[#allocation56_spill] sm:$0xff]  ;;  %v6658_v42 = vld [vmem:[#allocation58_spill] sm:$0xff]  ;;  %v6660_v56 = vmov 0.0  }
 0x35d   :  { %v6659_v14 = vld [vmem:[#allocation59_spill] sm:$0xff]  ;;  %v6661_v62 = vld [vmem:[#allocation60_spill] sm:$0xff] }
 0x35e   :  { %v1622_v5 = vcombine.low %v1585_v40, %v1586_v16  ;;  %v1651_v39 = vcombine.low %v1629_v52, %v1636_v31  ;;  %v1643_v3 = vrot.slane %v1621_v12, %v4974_v50  ;;  %v6662_v40 = vld [vmem:[#allocation61_spill] sm:$0xff]  ;;  %v6663_v16 = vld [vmem:[#allocation62_spill] sm:$0xff] }
 0x360   :  { %v1650_v45 = vrot.slane %v1622_v5, %v4974_v50  ;;  %v1659_v34 = vrot.slane %v1651_v39, %v4974_v50 }
 0x362   :  { %v1652_v48 = vcombine.low %v1643_v3, %v1650_v45  ;;  %v1588_v45 = vld [vmem:[#allocation4 + $0x3] ss:$8 sm:$0xf] }
 0x364   :  { %v1666_v15 = vrot.slane %v1652_v48, %v4974_v50  ;;  %v1590_v48 = vld [vmem:[#allocation4 + $0x23] ss:$8 sm:$0xf] }
 0x366   :  { %v1667_v44 = vcombine.low %v1659_v34, %v1666_v15 }
 0x368   :  { %1734 = vmatmul.mubr.f32.vlgmr.msra.gmra.mxu0 %v1667_v44  ;;  %1805 = vmatmul.mubr.f32.vlgmr.msra.gmra.mxu1 %v1667_v44  ;;  %v1592_v44 = vld [vmem:[#allocation4 + $0x43] ss:$8 sm:$0xf] }
 0x369   :  { %2126 = vmatpush1.msra.mxu0 %v5263_v41  ;;  %2197 = vmatpush1.msra.mxu1 %v5266_v4  ;;  %v6621_v41 = vld [vmem:[#allocation16_spill] sm:$0xff]  ;;  %v6622_v4 = vld [vmem:[#allocation17_spill] sm:$0xff] }
 0x36a   :  { %2127 = vmatprep.subr.mxu0 %v5269_v6  ;;  %2198 = vmatprep.subr.mxu1 %v5272_v51  ;;  %v6623_v6 = vld [vmem:[#allocation18_spill] sm:$0xff]  ;;  %v6624_v51 = vld [vmem:[#allocation19_spill] sm:$0xff] }
 0x36b   :  { %2128 = vmatpush1.msra.mxu0 %v5275_v8  ;;  %2199 = vmatpush1.msra.mxu1 %v5278_v9  ;;  %v6625_v8 = vld [vmem:[#allocation20_spill] sm:$0xff]  ;;  %v6626_v9 = vld [vmem:[#allocation21_spill] sm:$0xff] }
 0x36c   :  { %2129 = vmatprep.subr.mxu0 %v5281_v2  ;;  %2200 = vmatprep.subr.mxu1 %v5284_v11  ;;  %v6627_v2 = vld [vmem:[#allocation22_spill] sm:$0xff]  ;;  %v6628_v11 = vld [vmem:[#allocation23_spill] sm:$0xff] }
 0x36d   :  { %2130 = vmatpush1.msra.mxu0 %v5287_v47  ;;  %2201 = vmatpush1.msra.mxu1 %v5290_v21  ;;  %v6629_v47 = vld [vmem:[#allocation24_spill] sm:$0xff]  ;;  %v6630_v21 = vld [vmem:[#allocation25_spill] sm:$0xff] }
 0x36e   :  { %2131 = vmatprep.subr.mxu0 %v5293_v23  ;;  %2202 = vmatprep.subr.mxu1 %v5296_v24  ;;  %v6631_v23 = vld [vmem:[#allocation26_spill] sm:$0xff]  ;;  %v6632_v24 = vld [vmem:[#allocation27_spill] sm:$0xff] }
 0x36f   :  { %2132 = vmatpush1.msra.mxu0 %v5299_v26  ;;  %2203 = vmatpush1.msra.mxu1 %v5302_v29  ;;  %v6633_v26 = vld [vmem:[#allocation28_spill] sm:$0xff]  ;;  %v6634_v29 = vld [vmem:[#allocation29_spill] sm:$0xff] }
 0x370   :  { %2133 = vmatprep.subr.mxu0 %v5305_v30  ;;  %2204 = vmatprep.subr.mxu1 %v5308_v46  ;;  %v6635_v30 = vld [vmem:[#allocation30_spill] sm:$0xff]  ;;  %v6636_v46 = vld [vmem:[#allocation31_spill] sm:$0xff] }
 0x371   :  { %2134 = vmatpush1.msra.mxu0 %v5311_v0  ;;  %2205 = vmatpush1.msra.mxu1 %v5314_v43  ;;  %v6637_v0 = vld [vmem:[#allocation32_spill] sm:$0xff]  ;;  %v6638_v43 = vld [vmem:[#allocation33_spill] sm:$0xff] }
 0x372   :  { %2135 = vmatprep.subr.mxu0 %v5317_v55  ;;  %2206 = vmatprep.subr.mxu1 %v5320_v57  ;;  %v6639_v55 = vld [vmem:[#allocation34_spill] sm:$0xff]  ;;  %v6640_v57 = vld [vmem:[#allocation35_spill] sm:$0xff] }
 0x373   :  { %2136 = vmatpush1.msra.mxu0 %v5323_v58  ;;  %2207 = vmatpush1.msra.mxu1 %v5326_v63  ;;  %v6641_v58 = vld [vmem:[#allocation36_spill] sm:$0xff]  ;;  %v6642_v63 = vld [vmem:[#allocation37_spill] sm:$0xff] }
 0x374   :  { %2137 = vmatprep.subr.mxu0 %v6621_v41  ;;  %2208 = vmatprep.subr.mxu1 %v6622_v4  ;;  %v1594_v41 = vld [vmem:[#allocation4 + $0x63] ss:$8 sm:$0xf] }
 0x375   :  { %2138 = vmatpush1.msra.mxu0 %v6623_v6  ;;  %2209 = vmatpush1.msra.mxu1 %v6624_v51  ;;  %v1596_v51 = vld [vmem:[#allocation4 + $0x83] ss:$8 sm:$0xf] }
 0x376   :  { %2139 = vmatprep.subr.mxu0 %v6625_v8  ;;  %2210 = vmatprep.subr.mxu1 %v6626_v9  ;;  %v1598_v8 = vld [vmem:[#allocation4 + $0xa3] ss:$8 sm:$0xf] }
 0x377   :  { %2140 = vmatpush1.msra.mxu0 %v6627_v2  ;;  %2211 = vmatpush1.msra.mxu1 %v6628_v11  ;;  %v6664_v11 = vld [vmem:[#allocation50_spill] sm:$0xff] }
 0x378   :  { %2141 = vmatprep.subr.mxu0 %v6629_v47  ;;  %2212 = vmatprep.subr.mxu1 %v6630_v21  ;;  %v1603_v47 = vadd.f32 %v1588_v45, %v6664_v11  ;;  %v6665_v21 = vld [vmem:[#allocation51_spill] sm:$0xff] }
 0x379   :  { %2142 = vmatpush1.msra.mxu0 %v6631_v23  ;;  %2213 = vmatpush1.msra.mxu1 %v6632_v24  ;;  %v1604_v23 = vadd.f32 %v1590_v48, %v6665_v21  ;;  %v1600_v24 = vld [vmem:[#allocation4 + $0xc3] ss:$8 sm:$0xf] }
 0x37a   :  { %2143 = vmatprep.subr.mxu0 %v6633_v26  ;;  %2214 = vmatprep.subr.mxu1 %v6634_v29  ;;  %v1602_v26 = vld [vmem:[#allocation4 + $0xe3] ss:$8 sm:$0xf] }
 0x37b   :  { %2144 = vmatpush1.msra.mxu0 %v6635_v30  ;;  %2215 = vmatpush1.msra.mxu1 %v6636_v46 }
 0x37c   :  { %2145 = vmatprep.subr.mxu0 %v6637_v0  ;;  %2216 = vmatprep.subr.mxu1 %v6638_v43  ;;  %v6666_v43 = vld [vmem:[#allocation54_spill] sm:$0xff] }
 0x37d   :  { %2146 = vmatpush1.msra.mxu0 %v6639_v55  ;;  %2217 = vmatpush1.msra.mxu1 %v6640_v57  ;;  %v1605_v55 = vadd.f32 %v1592_v44, %v6666_v43  ;;  %v6667_v57 = vld [vmem:[#allocation55_spill] sm:$0xff] }
 0x37e   :  { %2147 = vmatprep.subr.mxu0 %v6641_v58  ;;  %2218 = vmatprep.subr.mxu1 %v6642_v63  ;;  %v1606_v58 = vadd.f32 %v1594_v41, %v6667_v57  ;;  %v6668_v63 = vld [vmem:[#allocation52_spill] sm:$0xff] }
 0x37f   :  { %2148 = vmatpush1.msra.mxu0 %v6643_v35  ;;  %2219 = vmatpush1.msra.mxu1 %v6644_v1  ;;  %v1607_v35 = vadd.f32 %v1596_v51, %v6668_v63  ;;  %v6669_v1 = vld [vmem:[#allocation53_spill] sm:$0xff] }
 0x380   :  { %2149 = vmatprep.subr.mxu0 %v6645_v27  ;;  %2220 = vmatprep.subr.mxu1 %v6646_v32  ;;  %v1608_v27 = vadd.f32 %v1598_v8, %v6669_v1 }
 0x381   :  { %2150 = vmatpush1.msra.mxu0 %v6647_v17  ;;  %2221 = vmatpush1.msra.mxu1 %v6648_v28 }
 0x382   :  { %2151 = vmatprep.subr.mxu0 %v6649_v7  ;;  %2222 = vmatprep.subr.mxu1 %v6650_v54  ;;  %v1609_v54 = vadd.f32 %v1600_v24, %v6577_v25 }
 0x383   :  { %2152 = vmatpush1.msra.mxu0 %v6651_v37  ;;  %2223 = vmatpush1.msra.mxu1 %v6652_v61  ;;  %v6670_v37 = vld [vmem:[#allocation57_spill] sm:$0xff] }
 0x384   :  { %2153 = vmatprep.subr.mxu0 %v6653_v19  ;;  %2224 = vmatprep.subr.mxu1 %v6654_v10  ;;  %v1610_v61 = vadd.f32 %v1602_v26, %v6670_v37 }
 0x385   :  { %2154 = vmatpush1.msra.mxu0 %v6655_v22  ;;  %2225 = vmatpush1.msra.mxu1 %v6656_v18 }
 0x386   :  { %2155 = vmatprep.subr.mxu0 %v6657_v36  ;;  %2226 = vmatprep.subr.mxu1 %v6658_v42 }
 0x387   :  { %2156 = vmatpush1.msra.mxu0 %v6659_v14  ;;  %2189 = vmatprep.mubr.f32.mxu0 %v6660_v56 }
 0x388   :  { %2227 = vmatpush1.msra.mxu1 %v6661_v62  ;;  %2260 = vmatprep.mubr.f32.mxu1 %v6660_v56 }
 0x389   :  { %2581 = vmatprep.subr.mxu0 %v6662_v40  ;;  %2652 = vmatprep.subr.mxu1 %v6663_v16 }
 0x428   :  { %v1735_v12 = vpop.f32.mrf.mxu0  ;;  %v1806_v52 = vpop.f32.mrf.mxu1 }
 0x42a   :  { %v1737_v31 = vpop.f32.mrf.mxu0  ;;  %v1808_v5 = vpop.f32.mrf.mxu1 }
 0x42b   :  { %v1815_v39 = vcombine.low %v1735_v12, %v1737_v31  ;;  %v1816_v3 = vcombine.high %v1735_v12, %v1737_v31  ;;  %v1817_v34 = vcombine.low %v1806_v52, %v1808_v5  ;;  %v1818_v15 = vcombine.high %v1806_v52, %v1808_v5 }
 0x42d   :  { %v1825_v4 = vrot.slane %v1815_v39, %v4974_v50  ;;  %v1832_v6 = vrot.slane %v1816_v3, %v4974_v50  ;;  %v1839_v9 = vrot.slane %v1817_v34, %v4974_v50  ;;  %v1846_v2 = vrot.slane %v1818_v15, %v4974_v50 }
 0x42f   :  { %v1847_v29 = vcombine.low %v1825_v4, %v1839_v9  ;;  %v1848_v30 = vcombine.high %v1825_v4, %v1839_v9  ;;  %v1849_v46 = vcombine.low %v1832_v6, %v1846_v2  ;;  %v1850_v0 = vcombine.high %v1832_v6, %v1846_v2 }
 0x431   :  { %v1857_v32 = vrot.slane %v1847_v29, %v4974_v50  ;;  %v1864_v17 = vrot.slane %v1849_v46, %v4974_v50  ;;  %v1871_v28 = vrot.slane %v1848_v30, %v4974_v50  ;;  %v1878_v7 = vrot.slane %v1850_v0, %v4974_v50 }
 0x433   :  { %v1879_v19 = vcombine.high %v1857_v32, %v1857_v32  ;;  %v1880_v10 = vcombine.high %v1864_v17, %v1864_v17  ;;  %v1881_v22 = vcombine.high %v1871_v28, %v1871_v28  ;;  %v1882_v18 = vcombine.high %v1878_v7, %v1878_v7 }
 0x434   :  { %v1891_v36 = vadd.f32 %v1857_v32, %v1603_v47  ;;  %v1892_v42 = vadd.f32 %v1871_v28, %v1604_v23  ;;  %v1895_v14 = vadd.f32 %v1864_v17, %v1607_v35  ;;  %v1896_v16 = vadd.f32 %v1878_v7, %v1608_v27 }
 0x435   :  { %v1893_v62 = vadd.f32 %v1879_v19, %v1605_v55  ;;  %v1894_v40 = vadd.f32 %v1881_v22, %v1606_v58  ;;  %v1897_v12 = vadd.f32 %v1880_v10, %v1609_v54  ;;  %v1898_v5 = vadd.f32 %v1882_v18, %v1610_v61 }
 0x436   :  { %v1899_v52 = vmul.f32 0.5, %v1891_v36  ;;  %v1900_v31 = vmul.f32 0.5, %v1892_v42  ;;  %v1903_v45 = vmul.f32 0.5, %v1895_v14  ;;  %v1904_v48 = vmul.f32 0.5, %v1896_v16 }
 0x437   :  { %v1901_v39 = vmul.f32 0.5, %v1893_v62  ;;  %v1902_v3 = vmul.f32 0.5, %v1894_v40  ;;  %v1905_v34 = vmul.f32 0.5, %v1897_v12  ;;  %v1906_v15 = vmul.f32 0.5, %v1898_v5 }
 0x438   :  { %4157 = vtanh.f32 %v1899_v52  ;;  %v1939_v44 = vrot.slane %v1891_v36, 3  ;;  %v1940_v41 = vrot.slane %v1892_v42, 3  ;;  %v1941_v4 = vrot.slane %v1893_v62, 3 }
 0x439   :  { %4159 = vtanh.f32 %v1900_v31  ;;  %v1942_v6 = vrot.slane %v1894_v40, 3  ;;  %v1943_v51 = vrot.slane %v1895_v14, 3  ;;  %v1944_v8 = vrot.slane %v1896_v16, 3 }
 0x43a   :  { %4161 = vtanh.f32 %v1901_v39  ;;  %v1945_v9 = vrot.slane %v1897_v12, 3  ;;  %v1946_v2 = vrot.slane %v1898_v5, 3 }
 0x43b   :  { %4163 = vtanh.f32 %v1902_v3 }
 0x43c   :  { %4165 = vtanh.f32 %v1903_v45 }
 0x43d   :  { %4167 = vtanh.f32 %v1904_v48 }
 0x43e   :  { %4169 = vtanh.f32 %v1905_v34 }
 0x43f   :  { %4171 = vtanh.f32 %v1906_v15 }
 0x440   :  { %4173 = vtanh.f32 %v1939_v44 }
 0x441   :  { %4175 = vtanh.f32 %v1940_v41 }
 0x442   :  { %4177 = vtanh.f32 %v1941_v4 }
 0x443   :  { %4179 = vtanh.f32 %v1942_v6 }
 0x444   :  { %4181 = vtanh.f32 %v1943_v51 }
 0x445   :  { %v4158_v47 = vpop.eup %4157  ;;  %4183 = vtanh.f32 %v1944_v8 }
 0x446   :  { %v4160_v23 = vpop.eup %4159  ;;  %v1915_v24 = vmul.f32 0.5, %v4158_v47  ;;  %4185 = vtanh.f32 %v1945_v9 }
 0x447   :  { %v4162_v26 = vpop.eup %4161  ;;  %v1916_v29 = vmul.f32 0.5, %v4160_v23  ;;  %4187 = vtanh.f32 %v1946_v2 }
 0x448   :  { %v4164_v30 = vpop.eup %4163  ;;  %v1917_v46 = vmul.f32 0.5, %v4162_v26  ;;  %v5633_v0 = vadd.f32 0.5, %v1915_v24 }
 0x449   :  { %v4166_v55 = vpop.eup %4165  ;;  %v1918_v58 = vmul.f32 0.5, %v4164_v30  ;;  %v5635_v35 = vadd.f32 0.5, %v1916_v29 }
 0x44a   :  { %v4168_v27 = vpop.eup %4167  ;;  %v1919_v32 = vmul.f32 0.5, %v4166_v55  ;;  %v5637_v17 = vadd.f32 0.5, %v1917_v46  ;;  %v1971_v28 = vrot.slane %v5633_v0, 1 }
 0x44b   :  { %v4170_v7 = vpop.eup %4169  ;;  %v1920_v54 = vmul.f32 0.5, %v4168_v27  ;;  %v5640_v61 = vadd.f32 0.5, %v1918_v58  ;;  %v1972_v19 = vrot.slane %v5635_v35, 1 }
 0x44c   :  { %v4172_v10 = vpop.eup %4171  ;;  %v1921_v22 = vmul.f32 0.5, %v4170_v7  ;;  %v5643_v18 = vadd.f32 0.5, %v1919_v32  ;;  %v1973_v36 = vrot.slane %v5637_v17, 1  ;;  %v1987_v42 = vmul.f32 %v1971_v28, %v5504_v13 }
 0x44d   :  { %v4174_v14 = vpop.eup %4173  ;;  %v1922_v62 = vmul.f32 0.5, %v4172_v10  ;;  %v5647_v40 = vadd.f32 0.5, %v1920_v54  ;;  %v1974_v16 = vrot.slane %v5640_v61, 1  ;;  %v1988_v12 = vmul.f32 %v1972_v19, %v5509_v53 }
 0x44e   :  { %v4176_v52 = vpop.eup %4175  ;;  %v5651_v31 = vadd.f32 0.5, %v1921_v22  ;;  %v1975_v5 = vrot.slane %v5643_v18, 1  ;;  %v1989_v39 = vmul.f32 %v1973_v36, %v5513_v59  ;;  %v1995_v3 = vmul.f32 %v4174_v14, %v5633_v0 }
 0x44f   :  { %v4178_v45 = vpop.eup %4177  ;;  %v5656_v48 = vadd.f32 0.5, %v1922_v62  ;;  %v1976_v13 = vrot.slane %v5647_v40, 1  ;;  %v1990_v34 = vmul.f32 %v1974_v16, %v5518_v60  ;;  %v1996_v15 = vmul.f32 %v4176_v52, %v5635_v35 }
 0x450   :  { %v4180_v44 = vpop.eup %4179  ;;  %v1977_v53 = vrot.slane %v5651_v31, 1  ;;  %v1991_v41 = vmul.f32 %v1975_v5, %v5522_v33  ;;  %v1997_v4 = vmul.f32 %v4178_v45, %v5637_v17  ;;  %v5664_v6 = vadd.f32 %v1995_v3, %v1987_v42 }
 0x451   :  { %v4182_v59 = vpop.eup %4181  ;;  %v1978_v51 = vrot.slane %v5656_v48, 1  ;;  %v1992_v8 = vmul.f32 %v1976_v13, %v5526_v38  ;;  %v1998_v9 = vmul.f32 %v4180_v44, %v5640_v61  ;;  %v5669_v2 = vadd.f32 %v1996_v15, %v1988_v12 }
 0x452   :  { %v4184_v60 = vpop.eup %4183  ;;  %v1993_v47 = vmul.f32 %v1977_v53, %v5529_v20  ;;  %v1999_v23 = vmul.f32 %v4182_v59, %v5643_v18  ;;  %v5673_v24 = vadd.f32 %v1997_v4, %v1989_v39  ;;  %4189 = vtanh.f32 %v5664_v6 }
 0x453   :  { %v4186_v33 = vpop.eup %4185  ;;  %v1994_v26 = vmul.f32 %v1978_v51, %v5532_v49  ;;  %v2000_v29 = vmul.f32 %v4184_v60, %v5647_v40  ;;  %v5678_v30 = vadd.f32 %v1998_v9, %v1990_v34  ;;  %4191 = vtanh.f32 %v5669_v2  ;;  %v5711_v60 = vld [vmem:[#allocation7 + $0x1e0] sm:$0xff] }
 0x454   :  { %v4188_v38 = vpop.eup %4187  ;;  %v2001_v46 = vmul.f32 %v4186_v33, %v5651_v31  ;;  %v5682_v55 = vadd.f32 %v1999_v23, %v1991_v41  ;;  %4193 = vtanh.f32 %v5673_v24  ;;  %v2019_v32 = vrot.slane %v5633_v0, 2  ;;  %v5717_v23 = vld [vmem:[#allocation7 + $0x1c8] sm:$0xff]  ;;  %v5720_v33 = vld [vmem:[#allocation7 + $0x1d8] sm:$0xff] }
 0x455   :  { %v2002_v20 = vmul.f32 %v4188_v38, %v5656_v48  ;;  %v5686_v58 = vadd.f32 %v2000_v29, %v1992_v8  ;;  %4195 = vtanh.f32 %v5678_v30  ;;  %v2020_v7 = vrot.slane %v5635_v35, 2  ;;  %v5726_v29 = vld [vmem:[#allocation7 + $0x1d0] sm:$0xff]  ;;  %v5729_v38 = vld [vmem:[#allocation7 + $0x1a8] sm:$0xff] }
 0x456   :  { %v5689_v49 = vadd.f32 %v2001_v46, %v1993_v47  ;;  %4197 = vtanh.f32 %v5682_v55  ;;  %v2021_v19 = vrot.slane %v5637_v17, 2  ;;  %v2022_v36 = vrot.slane %v5640_v61, 2  ;;  %v5714_v47 = vld [vmem:[#allocation7 + $0x1f0] sm:$0xff]  ;;  %v5732_v46 = vld [vmem:[#allocation7 + $0x1b8] sm:$0xff] }
 0x457   :  { %v5692_v27 = vadd.f32 %v2002_v20, %v1994_v26  ;;  %4199 = vtanh.f32 %v5686_v58  ;;  %v2023_v62 = vrot.slane %v5643_v18, 2  ;;  %v2024_v52 = vrot.slane %v5647_v40, 2  ;;  %v5723_v26 = vld [vmem:[#allocation7 + $0x1c0] sm:$0xff] }
 0x458   :  { %4201 = vtanh.f32 %v5689_v49  ;;  %v2025_v35 = vrot.slane %v5651_v31, 2  ;;  %v2026_v17 = vrot.slane %v5656_v48, 2  ;;  %v5735_v20 = vld [vmem:[#allocation7 + $0x1a0] sm:$0xff] }
 0x459   :  { %4203 = vtanh.f32 %v5692_v27 }
 0x45f   :  { %v4190_v28 = vpop.eup %4189 }
 0x460   :  { %v4192_v54 = vpop.eup %4191  ;;  %v2035_v10 = vmul.f32 %v4190_v28, %v2019_v32  ;;  %v5738_v32 = vld [vmem:[#allocation7 + $0x1b0] sm:$0xff]  ;;  %v5741_v28 = vld [vmem:[#allocation7 + $0x188] sm:$0xff] }
 0x461   :  { %v4194_v22 = vpop.eup %4193  ;;  %v2036_v42 = vmul.f32 %v4192_v54, %v2020_v7  ;;  %v5744_v7 = vld [vmem:[#allocation7 + $0x198] sm:$0xff]  ;;  %v5747_v54 = vld [vmem:[#allocation7 + $0x180] sm:$0xff] }
 0x462   :  { %v4196_v14 = vpop.eup %4195  ;;  %v2037_v16 = vmul.f32 %v4194_v22, %v2021_v19  ;;  %v5750_v19 = vld [vmem:[#allocation7 + $0x190] sm:$0xff]  ;;  %v5756_v22 = vld [vmem:[#allocation7 + $0x178] sm:$0xff] }
 0x463   :  { %v4198_v12 = vpop.eup %4197  ;;  %v2038_v5 = vmul.f32 %v4196_v14, %v2022_v36  ;;  %v2075_v0 = vcombine.low %v2035_v10, %v2036_v42  ;;  %v5753_v10 = vld [vmem:[#allocation7 + $0x168] sm:$0xff]  ;;  %v5759_v36 = vld [vmem:[#allocation7 + $0x160] sm:$0xff]  ;;  %v5762_v42 = vld [vmem:[#allocation7 + $0x170] sm:$0xff] }
 0x464   :  { %v4200_v39 = vpop.eup %4199  ;;  %v2039_v3 = vmul.f32 %v4198_v12, %v2023_v62  ;;  %v5765_v14 = vld [vmem:[#allocation7 + $0x148] sm:$0xff]  ;;  %v5768_v62 = vld [vmem:[#allocation7 + $0x158] sm:$0xff]  ;;  %v5774_v12 = vld [vmem:[#allocation7 + $0x150] sm:$0xff] }
 0x465   :  { %v4202_v45 = vpop.eup %4201  ;;  %v2040_v13 = vmul.f32 %v4200_v39, %v2024_v52  ;;  %v2076_v34 = vcombine.low %v2037_v16, %v2038_v5  ;;  %v2085_v18 = vrot.slane %v2075_v0, %v4974_v50  ;;  %v5771_v16 = vld [vmem:[#allocation7 + $0x140] sm:$0xff]  ;;  %v5777_v52 = vld [vmem:[#allocation7 + $0x128] sm:$0xff]  ;;  %v5780_v5 = vld [vmem:[#allocation7 + $0x138] sm:$0xff] }
 0x466   :  { %v4204_v61 = vpop.eup %4203  ;;  %v2041_v15 = vmul.f32 %v4202_v45, %v2025_v35  ;;  %6671 = vst [vmem:[#allocation16_spill] sm:$0xff] %v5777_v52  ;;  %6672 = vst [vmem:[#allocation17_spill] sm:$0xff] %v5780_v5  ;;  %v5783_v0 = vld [vmem:[#allocation7 + $0x120] sm:$0xff]  ;;  %v5786_v39 = vld [vmem:[#allocation7 + $0x130] sm:$0xff] }
 0x467   :  { %v2042_v44 = vmul.f32 %v4204_v61, %v2026_v17  ;;  %v2077_v53 = vcombine.low %v2039_v3, %v2040_v13  ;;  %v2092_v41 = vrot.slane %v2076_v34, %v4974_v50  ;;  %6673 = vst [vmem:[#allocation18_spill] sm:$0xff] %v5783_v0  ;;  %6674 = vst [vmem:[#allocation19_spill] sm:$0xff] %v5786_v39  ;;  %v5789_v35 = vld [vmem:[#allocation7 + $0x108] sm:$0xff]  ;;  %v5792_v3 = vld [vmem:[#allocation7 + $0x118] sm:$0xff] }
 0x468   :  { %6675 = vst [vmem:[#allocation20_spill] sm:$0xff] %v5789_v35  ;;  %6676 = vst [vmem:[#allocation21_spill] sm:$0xff] %v5792_v3  ;;  %v5795_v45 = vld [vmem:[#allocation7 + $0x100] sm:$0xff]  ;;  %v5798_v17 = vld [vmem:[#allocation7 + $0x110] sm:$0xff] }
 0x469   :  { %v2078_v40 = vcombine.low %v2041_v15, %v2042_v44  ;;  %v2107_v4 = vcombine.low %v2085_v18, %v2092_v41  ;;  %v2099_v59 = vrot.slane %v2077_v53, %v4974_v50  ;;  %6677 = vst [vmem:[#allocation22_spill] sm:$0xff] %v5795_v45  ;;  %6678 = vst [vmem:[#allocation23_spill] sm:$0xff] %v5798_v17  ;;  %v5801_v13 = vld [vmem:[#allocation7 + $0xe8] sm:$0xff]  ;;  %v5804_v34 = vld [vmem:[#allocation7 + $0xf8] sm:$0xff] }
 0x46a   :  { %6679 = vst [vmem:[#allocation24_spill] sm:$0xff] %v5801_v13  ;;  %6680 = vst [vmem:[#allocation25_spill] sm:$0xff] %v5804_v34  ;;  %v5807_v61 = vld [vmem:[#allocation7 + $0xe0] sm:$0xff]  ;;  %v5810_v15 = vld [vmem:[#allocation7 + $0xf0] sm:$0xff] }
 0x46b   :  { %v2106_v31 = vrot.slane %v2078_v40, %v4974_v50  ;;  %v2115_v8 = vrot.slane %v2107_v4, %v4974_v50  ;;  %6681 = vst [vmem:[#allocation26_spill] sm:$0xff] %v5807_v61  ;;  %6682 = vst [vmem:[#allocation27_spill] sm:$0xff] %v5810_v15  ;;  %v5813_v44 = vld [vmem:[#allocation7 + $0xc8] sm:$0xff]  ;;  %v5816_v53 = vld [vmem:[#allocation7 + $0xd8] sm:$0xff] }
 0x46c   :  { %6683 = vst [vmem:[#allocation28_spill] sm:$0xff] %v5813_v44  ;;  %6684 = vst [vmem:[#allocation29_spill] sm:$0xff] %v5816_v53  ;;  %v5819_v18 = vld [vmem:[#allocation7 + $0xc0] sm:$0xff]  ;;  %v5822_v41 = vld [vmem:[#allocation7 + $0xd0] sm:$0xff] }
 0x46d   :  { %v2108_v51 = vcombine.low %v2099_v59, %v2106_v31  ;;  %6685 = vst [vmem:[#allocation30_spill] sm:$0xff] %v5819_v18  ;;  %6686 = vst [vmem:[#allocation31_spill] sm:$0xff] %v5822_v41  ;;  %v5825_v40 = vld [vmem:[#allocation7 + $0xa8] sm:$0xff]  ;;  %v5828_v4 = vld [vmem:[#allocation7 + $0xb8] sm:$0xff] }
 0x46e   :  { %6687 = vst [vmem:[#allocation32_spill] sm:$0xff] %v5825_v40  ;;  %6688 = vst [vmem:[#allocation33_spill] sm:$0xff] %v5828_v4  ;;  %v5831_v59 = vld [vmem:[#allocation7 + $0xa0] sm:$0xff]  ;;  %v5834_v31 = vld [vmem:[#allocation7 + $0xb0] sm:$0xff] }
 0x46f   :  { %v2122_v48 = vrot.slane %v2108_v51, %v4974_v50  ;;  %6689 = vst [vmem:[#allocation34_spill] sm:$0xff] %v5831_v59  ;;  %6690 = vst [vmem:[#allocation35_spill] sm:$0xff] %v5834_v31  ;;  %v5837_v51 = vld [vmem:[#allocation7 + $0x88] sm:$0xff] }
 0x470   :  { %6691 = vst [vmem:[#allocation36_spill] sm:$0xff] %v5837_v51 }
 0x471   :  { %v2123_v9 = vcombine.low %v2115_v8, %v2122_v48  ;;  %v5840_v8 = vld [vmem:[#allocation7 + $0x98] sm:$0xff]  ;;  %v5843_v48 = vld [vmem:[#allocation7 + $0x80] sm:$0xff] }
 0x472   :  { %6692 = vst [vmem:[#allocation37_spill] sm:$0xff] %v5840_v8  ;;  %6693 = vst [vmem:[#allocation38_spill] sm:$0xff] %v5843_v48 }
 0x473   :  { %2190 = vmatmul.mubr.f32.vlgmr.msra.gmra.mxu0 %v2123_v9  ;;  %2261 = vmatmul.mubr.f32.vlgmr.msra.gmra.mxu1 %v2123_v9  ;;  %v5846_v9 = vld [vmem:[#allocation7 + $0x90] sm:$0xff] }
 0x474   :  { %2582 = vmatpush1.msra.mxu0 %v5711_v60  ;;  %2653 = vmatpush1.msra.mxu1 %v5714_v47  ;;  %6694 = vst [vmem:[#allocation39_spill] sm:$0xff] %v5846_v9 }
 0x475   :  { %2583 = vmatprep.subr.mxu0 %v5717_v23  ;;  %2654 = vmatprep.subr.mxu1 %v5720_v33 }
 0x476   :  { %2584 = vmatpush1.msra.mxu0 %v5723_v26  ;;  %2655 = vmatpush1.msra.mxu1 %v5726_v29 }
 0x477   :  { %2585 = vmatprep.subr.mxu0 %v5729_v38  ;;  %2656 = vmatprep.subr.mxu1 %v5732_v46 }
 0x478   :  { %2586 = vmatpush1.msra.mxu0 %v5735_v20  ;;  %2657 = vmatpush1.msra.mxu1 %v5738_v32 }
 0x479   :  { %2587 = vmatprep.subr.mxu0 %v5741_v28  ;;  %2658 = vmatprep.subr.mxu1 %v5744_v7 }
 0x47a   :  { %2588 = vmatpush1.msra.mxu0 %v5747_v54  ;;  %2659 = vmatpush1.msra.mxu1 %v5750_v19 }
 0x47b   :  { %2589 = vmatprep.subr.mxu0 %v5753_v10  ;;  %2660 = vmatprep.subr.mxu1 %v5756_v22 }
 0x47c   :  { %2590 = vmatpush1.msra.mxu0 %v5759_v36  ;;  %2661 = vmatpush1.msra.mxu1 %v5762_v42 }
 0x47d   :  { %2591 = vmatprep.subr.mxu0 %v5765_v14  ;;  %2662 = vmatprep.subr.mxu1 %v5768_v62 }
 0x47e   :  { %2592 = vmatpush1.msra.mxu0 %v5771_v16  ;;  %2663 = vmatpush1.msra.mxu1 %v5774_v12 }
 0x47f   :  { %2593 = vmatprep.subr.mxu0 %v5777_v52  ;;  %2664 = vmatprep.subr.mxu1 %v5780_v5 }
 0x480   :  { %2594 = vmatpush1.msra.mxu0 %v5783_v0  ;;  %2665 = vmatpush1.msra.mxu1 %v5786_v39 }
 0x481   :  { %2595 = vmatprep.subr.mxu0 %v5789_v35  ;;  %2666 = vmatprep.subr.mxu1 %v5792_v3  ;;  %v2058_v3 = vld [vmem:[#allocation4 + $0xe4] ss:$8 sm:$0xf] }
 0x482   :  { %2596 = vmatpush1.msra.mxu0 %v5795_v45  ;;  %2667 = vmatpush1.msra.mxu1 %v5798_v17 }
 0x483   :  { %2597 = vmatprep.subr.mxu0 %v5801_v13  ;;  %2668 = vmatprep.subr.mxu1 %v5804_v34  ;;  %v2052_v34 = vld [vmem:[#allocation4 + $0x84] ss:$8 sm:$0xf] }
 0x484   :  { %2598 = vmatpush1.msra.mxu0 %v5807_v61  ;;  %2669 = vmatpush1.msra.mxu1 %v5810_v15  ;;  %v2048_v15 = vld [vmem:[#allocation4 + $0x44] ss:$8 sm:$0xf]  ;;  %v2063_v0 = vadd.f32 %v2052_v34, %v6668_v63 }
 0x485   :  { %2599 = vmatprep.subr.mxu0 %v5813_v44  ;;  %2670 = vmatprep.subr.mxu1 %v5816_v53  ;;  %v2046_v53 = vld [vmem:[#allocation4 + $0x24] ss:$8 sm:$0xf] }
 0x486   :  { %2600 = vmatpush1.msra.mxu0 %v5819_v18  ;;  %2671 = vmatpush1.msra.mxu1 %v5822_v41  ;;  %v2044_v18 = vld [vmem:[#allocation4 + $0x4] ss:$8 sm:$0xf] }
 0x487   :  { %2601 = vmatprep.subr.mxu0 %v5825_v40  ;;  %2672 = vmatprep.subr.mxu1 %v5828_v4  ;;  %v2054_v13 = vld [vmem:[#allocation4 + $0xa4] ss:$8 sm:$0xf]  ;;  %v2059_v45 = vadd.f32 %v2044_v18, %v6664_v11 }
 0x488   :  { %2602 = vmatpush1.msra.mxu0 %v5831_v59  ;;  %2673 = vmatpush1.msra.mxu1 %v5834_v31  ;;  %v5849_v59 = vld [vmem:[#allocation7 + $0x68] sm:$0xff]  ;;  %v5852_v31 = vld [vmem:[#allocation7 + $0x78] sm:$0xff] }
 0x489   :  { %2603 = vmatprep.subr.mxu0 %v5837_v51  ;;  %2674 = vmatprep.subr.mxu1 %v5840_v8  ;;  %6695 = vst [vmem:[#allocation40_spill] sm:$0xff] %v5849_v59  ;;  %6696 = vst [vmem:[#allocation41_spill] sm:$0xff] %v5852_v31  ;;  %v5855_v51 = vld [vmem:[#allocation7 + $0x60] sm:$0xff]  ;;  %v5858_v8 = vld [vmem:[#allocation7 + $0x70] sm:$0xff] }
 0x48a   :  { %2604 = vmatpush1.msra.mxu0 %v5843_v48  ;;  %2675 = vmatpush1.msra.mxu1 %v5846_v9  ;;  %6697 = vst [vmem:[#allocation42_spill] sm:$0xff] %v5855_v51  ;;  %6698 = vst [vmem:[#allocation43_spill] sm:$0xff] %v5858_v8  ;;  %v5861_v48 = vld [vmem:[#allocation7 + $0x48] sm:$0xff]  ;;  %v5864_v9 = vld [vmem:[#allocation7 + $0x58] sm:$0xff] }
 0x48b   :  { %2605 = vmatprep.subr.mxu0 %v5849_v59  ;;  %2676 = vmatprep.subr.mxu1 %v5852_v31  ;;  %6699 = vst [vmem:[#allocation44_spill] sm:$0xff] %v5861_v48  ;;  %6700 = vst [vmem:[#allocation45_spill] sm:$0xff] %v5864_v9  ;;  %v5867_v59 = vld [vmem:[#allocation7 + $0x40] sm:$0xff]  ;;  %v5870_v31 = vld [vmem:[#allocation7 + $0x50] sm:$0xff] }
 0x48c   :  { %2606 = vmatpush1.msra.mxu0 %v5855_v51  ;;  %2677 = vmatpush1.msra.mxu1 %v5858_v8  ;;  %6701 = vst [vmem:[#allocation46_spill] sm:$0xff] %v5867_v59  ;;  %6702 = vst [vmem:[#allocation47_spill] sm:$0xff] %v5870_v31  ;;  %v5873_v51 = vld [vmem:[#allocation7 + $0x28] sm:$0xff]  ;;  %v5876_v8 = vld [vmem:[#allocation7 + $0x38] sm:$0xff] }
 0x48d   :  { %2607 = vmatprep.subr.mxu0 %v5861_v48  ;;  %2678 = vmatprep.subr.mxu1 %v5864_v9  ;;  %6703 = vst [vmem:[#allocation48_spill] sm:$0xff] %v5873_v51  ;;  %6704 = vst [vmem:[#allocation49_spill] sm:$0xff] %v5876_v8  ;;  %v5879_v48 = vld [vmem:[#allocation7 + $0x20] sm:$0xff]  ;;  %v5882_v9 = vld [vmem:[#allocation7 + $0x30] sm:$0xff] }
 0x48e   :  { %2608 = vmatpush1.msra.mxu0 %v5867_v59  ;;  %2679 = vmatpush1.msra.mxu1 %v5870_v31  ;;  %6705 = vst [vmem:[#allocation14_spill] sm:$0xff] %v5879_v48  ;;  %6706 = vst [vmem:[#allocation15_spill] sm:$0xff] %v5882_v9  ;;  %v5885_v59 = vld [vmem:[#allocation7 + $0x8] sm:$0xff]  ;;  %v5888_v31 = vld [vmem:[#allocation7 + $0x18] sm:$0xff] }
 0x48f   :  { %2609 = vmatprep.subr.mxu0 %v5873_v51  ;;  %2680 = vmatprep.subr.mxu1 %v5876_v8  ;;  %6707 = vst [vmem:[#allocation56_spill] sm:$0xff] %v5885_v59  ;;  %6708 = vst [vmem:[#allocation58_spill] sm:$0xff] %v5888_v31  ;;  %v5891_v51 = vld [vmem:[#allocation7] sm:$0xff]  ;;  %v5895_v8 = vld [vmem:[#allocation7 + $0x10] sm:$0xff] }
 0x490   :  { %2610 = vmatpush1.msra.mxu0 %v5879_v48  ;;  %2681 = vmatpush1.msra.mxu1 %v5882_v9  ;;  %6709 = vst [vmem:[#allocation59_spill] sm:$0xff] %v5891_v51  ;;  %6710 = vst [vmem:[#allocation60_spill] sm:$0xff] %v5895_v8  ;;  %v5899_v9 = vld [vmem:[#allocation7 + $0x1e8] sm:$0xff] }
 0x491   :  { %2611 = vmatprep.subr.mxu0 %v5885_v59  ;;  %2682 = vmatprep.subr.mxu1 %v5888_v31  ;;  %6711 = vst [vmem:[#allocation61_spill] sm:$0xff] %v5899_v9  ;;  %v5902_v59 = vld [vmem:[#allocation7 + $0x1f8] sm:$0xff] }
 0x492   :  { %2612 = vmatpush1.msra.mxu0 %v5891_v51  ;;  %2645 = vmatprep.mubr.f32.mxu0 %v6660_v56  ;;  %6712 = vst [vmem:[#allocation62_spill] sm:$0xff] %v5902_v59 }
 0x493   :  { %2683 = vmatpush1.msra.mxu1 %v5895_v8  ;;  %2716 = vmatprep.mubr.f32.mxu1 %v6660_v56  ;;  %v2050_v56 = vld [vmem:[#allocation4 + $0x64] ss:$8 sm:$0xf] }
 0x494   :  { %3037 = vmatprep.subr.mxu0 %v5899_v9  ;;  %3108 = vmatprep.subr.mxu1 %v5902_v59 }
 0x533   :  { %v2191_v31 = vpop.f32.mrf.mxu0  ;;  %v2262_v48 = vpop.f32.mrf.mxu1 }
 0x535   :  { %v2193_v4 = vpop.f32.mrf.mxu0  ;;  %v2264_v51 = vpop.f32.mrf.mxu1 }
 0x536   :  { %v2271_v40 = vcombine.low %v2191_v31, %v2193_v4  ;;  %v2272_v41 = vcombine.high %v2191_v31, %v2193_v4  ;;  %v2273_v44 = vcombine.low %v2262_v48, %v2264_v51  ;;  %v2274_v8 = vcombine.high %v2262_v48, %v2264_v51  ;;  %v2056_v31 = vld [vmem:[#allocation4 + $0xc4] ss:$8 sm:$0xf] }
 0x537   :  { %v2060_v4 = vadd.f32 %v2046_v53, %v6665_v21 }
 0x538   :  { %v2281_v61 = vrot.slane %v2271_v40, %v4974_v50  ;;  %v2288_v9 = vrot.slane %v2272_v41, %v4974_v50  ;;  %v2295_v59 = vrot.slane %v2273_v44, %v4974_v50  ;;  %v2302_v17 = vrot.slane %v2274_v8, %v4974_v50 }
 0x539   :  { %v2061_v40 = vadd.f32 %v2048_v15, %v6666_v43  ;;  %v2062_v41 = vadd.f32 %v2050_v56, %v6667_v57  ;;  %v2064_v44 = vadd.f32 %v2054_v13, %v6669_v1 }
 0x53a   :  { %v2303_v35 = vcombine.low %v2281_v61, %v2295_v59  ;;  %v2304_v51 = vcombine.high %v2281_v61, %v2295_v59  ;;  %v2305_v48 = vcombine.low %v2288_v9, %v2302_v17  ;;  %v2306_v39 = vcombine.high %v2288_v9, %v2302_v17 }
 0x53b   :  { %v2065_v61 = vadd.f32 %v2056_v31, %v6577_v25  ;;  %v2066_v17 = vadd.f32 %v2058_v3, %v6670_v37 }
 0x53c   :  { %v2313_v8 = vrot.slane %v2303_v35, %v4974_v50  ;;  %v2320_v18 = vrot.slane %v2305_v48, %v4974_v50  ;;  %v2327_v53 = vrot.slane %v2304_v51, %v4974_v50  ;;  %v2334_v21 = vrot.slane %v2306_v39, %v4974_v50 }
 0x53e   :  { %v2335_v59 = vcombine.high %v2313_v8, %v2313_v8  ;;  %v2336_v15 = vcombine.high %v2320_v18, %v2320_v18  ;;  %v2337_v9 = vcombine.high %v2327_v53, %v2327_v53  ;;  %v2338_v56 = vcombine.high %v2334_v21, %v2334_v21 }
 0x53f   :  { %v2347_v57 = vadd.f32 %v2313_v8, %v2059_v45  ;;  %v2348_v34 = vadd.f32 %v2327_v53, %v2060_v4  ;;  %v2351_v63 = vadd.f32 %v2320_v18, %v2063_v0  ;;  %v2352_v35 = vadd.f32 %v2334_v21, %v2064_v44 }
 0x540   :  { %v2349_v13 = vadd.f32 %v2335_v59, %v2061_v40  ;;  %v2350_v1 = vadd.f32 %v2337_v9, %v2062_v41  ;;  %v2353_v43 = vadd.f32 %v2336_v15, %v2065_v61  ;;  %v2354_v51 = vadd.f32 %v2338_v56, %v2066_v17 }
 0x541   :  { %v2355_v48 = vmul.f32 0.5, %v2347_v57  ;;  %v2356_v11 = vmul.f32 0.5, %v2348_v34  ;;  %v2359_v52 = vmul.f32 0.5, %v2351_v63  ;;  %v2360_v31 = vmul.f32 0.5, %v2352_v35 }
 0x542   :  { %v2357_v5 = vmul.f32 0.5, %v2349_v13  ;;  %v2358_v39 = vmul.f32 0.5, %v2350_v1  ;;  %v2361_v3 = vmul.f32 0.5, %v2353_v43  ;;  %v2362_v37 = vmul.f32 0.5, %v2354_v51 }
 0x543   :  { %4205 = vtanh.f32 %v2355_v48  ;;  %v2395_v45 = vrot.slane %v2347_v57, 3  ;;  %v2396_v0 = vrot.slane %v2348_v34, 3  ;;  %v2397_v21 = vrot.slane %v2349_v13, 3 }
 0x544   :  { %4207 = vtanh.f32 %v2356_v11  ;;  %v2398_v4 = vrot.slane %v2350_v1, 3  ;;  %v2399_v40 = vrot.slane %v2351_v63, 3  ;;  %v2400_v41 = vrot.slane %v2352_v35, 3 }
 0x545   :  { %4209 = vtanh.f32 %v2357_v5  ;;  %v2401_v44 = vrot.slane %v2353_v43, 3  ;;  %v2402_v8 = vrot.slane %v2354_v51, 3 }
 0x546   :  { %4211 = vtanh.f32 %v2358_v39 }
 0x547   :  { %4213 = vtanh.f32 %v2359_v52 }
 0x548   :  { %4215 = vtanh.f32 %v2360_v31 }
 0x549   :  { %4217 = vtanh.f32 %v2361_v3 }
 0x54a   :  { %4219 = vtanh.f32 %v2362_v37 }
 0x54b   :  { %4221 = vtanh.f32 %v2395_v45 }
 0x54c   :  { %4223 = vtanh.f32 %v2396_v0 }
 0x54d   :  { %4225 = vtanh.f32 %v2397_v21 }
 0x54e   :  { %4227 = vtanh.f32 %v2398_v4 }
 0x54f   :  { %4229 = vtanh.f32 %v2399_v40 }
 0x550   :  { %v4206_v11 = vpop.eup %4205  ;;  %4231 = vtanh.f32 %v2400_v41 }
 0x551   :  { %v4208_v5 = vpop.eup %4207  ;;  %v2371_v52 = vmul.f32 0.5, %v4206_v11  ;;  %4233 = vtanh.f32 %v2401_v44 }
 0x552   :  { %v4210_v57 = vpop.eup %4209  ;;  %v2372_v18 = vmul.f32 0.5, %v4208_v5  ;;  %4235 = vtanh.f32 %v2402_v8 }
 0x553   :  { %v4212_v53 = vpop.eup %4211  ;;  %v2373_v37 = vmul.f32 0.5, %v4210_v57  ;;  %v5921_v1 = vadd.f32 0.5, %v2371_v52 }
 0x554   :  { %v4214_v63 = vpop.eup %4213  ;;  %v2374_v61 = vmul.f32 0.5, %v4212_v53  ;;  %v5923_v17 = vadd.f32 0.5, %v2372_v18 }
 0x555   :  { %v4216_v43 = vpop.eup %4215  ;;  %v2375_v59 = vmul.f32 0.5, %v4214_v63  ;;  %v5925_v15 = vadd.f32 0.5, %v2373_v37  ;;  %v2427_v9 = vrot.slane %v5921_v1, 1 }
 0x556   :  { %v4218_v56 = vpop.eup %4217  ;;  %v2376_v34 = vmul.f32 0.5, %v4216_v43  ;;  %v5928_v13 = vadd.f32 0.5, %v2374_v61  ;;  %v2428_v35 = vrot.slane %v5923_v17, 1 }
 0x557   :  { %v4220_v48 = vpop.eup %4219  ;;  %v2377_v51 = vmul.f32 0.5, %v4218_v56  ;;  %v5931_v39 = vadd.f32 0.5, %v2375_v59  ;;  %v2429_v31 = vrot.slane %v5925_v15, 1  ;;  %v2443_v3 = vmul.f32 %v2427_v9, %v5664_v6 }
 0x558   :  { %v4222_v45 = vpop.eup %4221  ;;  %v2378_v0 = vmul.f32 0.5, %v4220_v48  ;;  %v5935_v21 = vadd.f32 0.5, %v2376_v34  ;;  %v2430_v4 = vrot.slane %v5928_v13, 1  ;;  %v2444_v40 = vmul.f32 %v2428_v35, %v5669_v2 }
 0x559   :  { %v4224_v41 = vpop.eup %4223  ;;  %v5939_v44 = vadd.f32 0.5, %v2377_v51  ;;  %v2431_v8 = vrot.slane %v5931_v39, 1  ;;  %v2445_v11 = vmul.f32 %v2429_v31, %v5673_v24  ;;  %v2451_v5 = vmul.f32 %v4222_v45, %v5921_v1 }
 0x55a   :  { %v4226_v52 = vpop.eup %4225  ;;  %v5944_v57 = vadd.f32 0.5, %v2378_v0  ;;  %v2432_v6 = vrot.slane %v5935_v21, 1  ;;  %v2446_v18 = vmul.f32 %v2430_v4, %v5678_v30  ;;  %v2452_v53 = vmul.f32 %v4224_v41, %v5923_v17 }
 0x55b   :  { %v4228_v37 = vpop.eup %4227  ;;  %v2433_v2 = vrot.slane %v5939_v44, 1  ;;  %v2447_v63 = vmul.f32 %v2431_v8, %v5682_v55  ;;  %v2453_v61 = vmul.f32 %v4226_v52, %v5925_v15  ;;  %v5952_v43 = vadd.f32 %v2451_v5, %v2443_v3 }
 0x55c   :  { %v4230_v24 = vpop.eup %4229  ;;  %v2434_v59 = vrot.slane %v5944_v57, 1  ;;  %v2448_v9 = vmul.f32 %v2432_v6, %v5686_v58  ;;  %v2454_v56 = vmul.f32 %v4228_v37, %v5928_v13  ;;  %v5957_v34 = vadd.f32 %v2452_v53, %v2444_v40 }
 0x55d   :  { %v4232_v30 = vpop.eup %4231  ;;  %v2449_v35 = vmul.f32 %v2433_v2, %v5689_v49  ;;  %v2455_v48 = vmul.f32 %v4230_v24, %v5931_v39  ;;  %v5961_v51 = vadd.f32 %v2453_v61, %v2445_v11  ;;  %4237 = vtanh.f32 %v5952_v43 }
 0x55e   :  { %v4234_v55 = vpop.eup %4233  ;;  %v2450_v31 = vmul.f32 %v2434_v59, %v5692_v27  ;;  %v2456_v3 = vmul.f32 %v4232_v30, %v5935_v21  ;;  %v5966_v45 = vadd.f32 %v2454_v56, %v2446_v18  ;;  %4239 = vtanh.f32 %v5957_v34 }
 0x55f   :  { %v4236_v58 = vpop.eup %4235  ;;  %v2457_v0 = vmul.f32 %v4234_v55, %v5939_v44  ;;  %v5970_v4 = vadd.f32 %v2455_v48, %v2447_v63  ;;  %4241 = vtanh.f32 %v5961_v51  ;;  %v2475_v8 = vrot.slane %v5921_v1, 2 }
 0x560   :  { %v2458_v49 = vmul.f32 %v4236_v58, %v5944_v57  ;;  %v5974_v40 = vadd.f32 %v2456_v3, %v2448_v9  ;;  %4243 = vtanh.f32 %v5966_v45  ;;  %v2476_v5 = vrot.slane %v5923_v17, 2 }
 0x561   :  { %v5977_v27 = vadd.f32 %v2457_v0, %v2449_v35  ;;  %4245 = vtanh.f32 %v5970_v4  ;;  %v2477_v6 = vrot.slane %v5925_v15, 2  ;;  %v2478_v37 = vrot.slane %v5928_v13, 2 }
 0x562   :  { %v5980_v41 = vadd.f32 %v2458_v49, %v2450_v31  ;;  %4247 = vtanh.f32 %v5974_v40  ;;  %v2479_v61 = vrot.slane %v5931_v39, 2  ;;  %v2480_v9 = vrot.slane %v5935_v21, 2 }
 0x563   :  { %4249 = vtanh.f32 %v5977_v27  ;;  %v2481_v17 = vrot.slane %v5939_v44, 2  ;;  %v2482_v15 = vrot.slane %v5944_v57, 2 }
 0x564   :  { %4251 = vtanh.f32 %v5980_v41 }
 0x56a   :  { %v4238_v11 = vpop.eup %4237 }
 0x56b   :  { %v4240_v52 = vpop.eup %4239  ;;  %v2491_v18 = vmul.f32 %v4238_v11, %v2475_v8 }
 0x56c   :  { %v4242_v53 = vpop.eup %4241  ;;  %v2492_v2 = vmul.f32 %v4240_v52, %v2476_v5 }
 0x56d   :  { %v4244_v63 = vpop.eup %4243  ;;  %v2493_v24 = vmul.f32 %v4242_v53, %v2477_v6  ;;  %v6736_v53 = vld [vmem:[#allocation39_spill] sm:$0xff] }
 0x56e   :  { %v4246_v59 = vpop.eup %4245  ;;  %v2494_v56 = vmul.f32 %v4244_v63, %v2478_v37  ;;  %v2531_v1 = vcombine.low %v2491_v18, %v2492_v2  ;;  %v6735_v18 = vld [vmem:[#allocation38_spill] sm:$0xff]  ;;  %v6737_v37 = vld [vmem:[#allocation40_spill] sm:$0xff]  ;;  %v6738_v2 = vld [vmem:[#allocation41_spill] sm:$0xff] }
 0x56f   :  { %v4248_v30 = vpop.eup %4247  ;;  %v2495_v35 = vmul.f32 %v4246_v59, %v2479_v61  ;;  %v6739_v63 = vld [vmem:[#allocation42_spill] sm:$0xff]  ;;  %v6740_v61 = vld [vmem:[#allocation43_spill] sm:$0xff]  ;;  %v6742_v59 = vld [vmem:[#allocation45_spill] sm:$0xff] }
 0x570   :  { %v4250_v48 = vpop.eup %4249  ;;  %v2496_v55 = vmul.f32 %v4248_v30, %v2480_v9  ;;  %v2532_v31 = vcombine.low %v2493_v24, %v2494_v56  ;;  %v2541_v39 = vrot.slane %v2531_v1, %v4974_v50  ;;  %v6741_v24 = vld [vmem:[#allocation44_spill] sm:$0xff]  ;;  %v6743_v9 = vld [vmem:[#allocation46_spill] sm:$0xff]  ;;  %v6744_v56 = vld [vmem:[#allocation47_spill] sm:$0xff] }
 0x571   :  { %v4252_v13 = vpop.eup %4251  ;;  %v2497_v3 = vmul.f32 %v4250_v48, %v2481_v17  ;;  %v6745_v1 = vld [vmem:[#allocation48_spill] sm:$0xff]  ;;  %v6746_v30 = vld [vmem:[#allocation49_spill] sm:$0xff]  ;;  %v6747_v17 = vld [vmem:[#allocation14_spill] sm:$0xff] }
 0x572   :  { %v2498_v58 = vmul.f32 %v4252_v13, %v2482_v15  ;;  %v2533_v0 = vcombine.low %v2495_v35, %v2496_v55  ;;  %v2548_v49 = vrot.slane %v2532_v31, %v4974_v50  ;;  %v6748_v35 = vld [vmem:[#allocation15_spill] sm:$0xff]  ;;  %v6749_v48 = vld [vmem:[#allocation56_spill] sm:$0xff]  ;;  %v6750_v15 = vld [vmem:[#allocation58_spill] sm:$0xff]  ;;  %v6752_v31 = vmov 0.0  }
 0x573   :  { %v6751_v55 = vld [vmem:[#allocation59_spill] sm:$0xff]  ;;  %v6753_v13 = vld [vmem:[#allocation60_spill] sm:$0xff] }
 0x574   :  { %v2534_v21 = vcombine.low %v2497_v3, %v2498_v58  ;;  %v2563_v8 = vcombine.low %v2541_v39, %v2548_v49  ;;  %v2555_v11 = vrot.slane %v2533_v0, %v4974_v50  ;;  %v6754_v3 = vld [vmem:[#allocation61_spill] sm:$0xff]  ;;  %v6755_v58 = vld [vmem:[#allocation62_spill] sm:$0xff] }
 0x576   :  { %v2562_v44 = vrot.slane %v2534_v21, %v4974_v50  ;;  %v2571_v52 = vrot.slane %v2563_v8, %v4974_v50 }
 0x578   :  { %v2564_v5 = vcombine.low %v2555_v11, %v2562_v44  ;;  %v2500_v44 = vld [vmem:[#allocation4 + $0x5] ss:$8 sm:$0xf] }
 0x57a   :  { %v2578_v57 = vrot.slane %v2564_v5, %v4974_v50  ;;  %v2502_v5 = vld [vmem:[#allocation4 + $0x25] ss:$8 sm:$0xf] }
 0x57c   :  { %v2579_v6 = vcombine.low %v2571_v52, %v2578_v57 }
 0x57e   :  { %2646 = vmatmul.mubr.f32.vlgmr.msra.gmra.mxu0 %v2579_v6  ;;  %2717 = vmatmul.mubr.f32.vlgmr.msra.gmra.mxu1 %v2579_v6  ;;  %v2504_v6 = vld [vmem:[#allocation4 + $0x45] ss:$8 sm:$0xf] }
 0x57f   :  { %3038 = vmatpush1.msra.mxu0 %v5711_v60  ;;  %3109 = vmatpush1.msra.mxu1 %v5714_v47  ;;  %v6713_v60 = vld [vmem:[#allocation16_spill] sm:$0xff]  ;;  %v6714_v47 = vld [vmem:[#allocation17_spill] sm:$0xff] }
 0x580   :  { %3039 = vmatprep.subr.mxu0 %v5717_v23  ;;  %3110 = vmatprep.subr.mxu1 %v5720_v33  ;;  %v6715_v23 = vld [vmem:[#allocation18_spill] sm:$0xff]  ;;  %v6716_v33 = vld [vmem:[#allocation19_spill] sm:$0xff] }
 0x581   :  { %3040 = vmatpush1.msra.mxu0 %v5723_v26  ;;  %3111 = vmatpush1.msra.mxu1 %v5726_v29  ;;  %v6717_v26 = vld [vmem:[#allocation20_spill] sm:$0xff]  ;;  %v6718_v29 = vld [vmem:[#allocation21_spill] sm:$0xff] }
 0x582   :  { %3041 = vmatprep.subr.mxu0 %v5729_v38  ;;  %3112 = vmatprep.subr.mxu1 %v5732_v46  ;;  %v6719_v38 = vld [vmem:[#allocation22_spill] sm:$0xff]  ;;  %v6720_v46 = vld [vmem:[#allocation23_spill] sm:$0xff] }
 0x583   :  { %3042 = vmatpush1.msra.mxu0 %v5735_v20  ;;  %3113 = vmatpush1.msra.mxu1 %v5738_v32  ;;  %v6721_v20 = vld [vmem:[#allocation24_spill] sm:$0xff]  ;;  %v6722_v32 = vld [vmem:[#allocation25_spill] sm:$0xff] }
 0x584   :  { %3043 = vmatprep.subr.mxu0 %v5741_v28  ;;  %3114 = vmatprep.subr.mxu1 %v5744_v7  ;;  %v6723_v28 = vld [vmem:[#allocation26_spill] sm:$0xff]  ;;  %v6724_v7 = vld [vmem:[#allocation27_spill] sm:$0xff] }
 0x585   :  { %3044 = vmatpush1.msra.mxu0 %v5747_v54  ;;  %3115 = vmatpush1.msra.mxu1 %v5750_v19  ;;  %v6725_v54 = vld [vmem:[#allocation28_spill] sm:$0xff]  ;;  %v6726_v19 = vld [vmem:[#allocation29_spill] sm:$0xff] }
 0x586   :  { %3045 = vmatprep.subr.mxu0 %v5753_v10  ;;  %3116 = vmatprep.subr.mxu1 %v5756_v22  ;;  %v6727_v10 = vld [vmem:[#allocation30_spill] sm:$0xff]  ;;  %v6728_v22 = vld [vmem:[#allocation31_spill] sm:$0xff] }
 0x587   :  { %3046 = vmatpush1.msra.mxu0 %v5759_v36  ;;  %3117 = vmatpush1.msra.mxu1 %v5762_v42  ;;  %v6729_v36 = vld [vmem:[#allocation32_spill] sm:$0xff]  ;;  %v6730_v42 = vld [vmem:[#allocation33_spill] sm:$0xff] }
 0x588   :  { %3047 = vmatprep.subr.mxu0 %v5765_v14  ;;  %3118 = vmatprep.subr.mxu1 %v5768_v62  ;;  %v6731_v14 = vld [vmem:[#allocation34_spill] sm:$0xff]  ;;  %v6732_v62 = vld [vmem:[#allocation35_spill] sm:$0xff] }
 0x589   :  { %3048 = vmatpush1.msra.mxu0 %v5771_v16  ;;  %3119 = vmatpush1.msra.mxu1 %v5774_v12  ;;  %v6733_v16 = vld [vmem:[#allocation36_spill] sm:$0xff]  ;;  %v6734_v12 = vld [vmem:[#allocation37_spill] sm:$0xff] }
 0x58a   :  { %3049 = vmatprep.subr.mxu0 %v6713_v60  ;;  %3120 = vmatprep.subr.mxu1 %v6714_v47  ;;  %v2506_v60 = vld [vmem:[#allocation4 + $0x65] ss:$8 sm:$0xf] }
 0x58b   :  { %3050 = vmatpush1.msra.mxu0 %v6715_v23  ;;  %3121 = vmatpush1.msra.mxu1 %v6716_v33  ;;  %v2508_v33 = vld [vmem:[#allocation4 + $0x85] ss:$8 sm:$0xf] }
 0x58c   :  { %3051 = vmatprep.subr.mxu0 %v6717_v26  ;;  %3122 = vmatprep.subr.mxu1 %v6718_v29  ;;  %v2510_v26 = vld [vmem:[#allocation4 + $0xa5] ss:$8 sm:$0xf] }
 0x58d   :  { %3052 = vmatpush1.msra.mxu0 %v6719_v38  ;;  %3123 = vmatpush1.msra.mxu1 %v6720_v46  ;;  %v6756_v46 = vld [vmem:[#allocation50_spill] sm:$0xff] }
 0x58e   :  { %3053 = vmatprep.subr.mxu0 %v6721_v20  ;;  %3124 = vmatprep.subr.mxu1 %v6722_v32  ;;  %v2515_v20 = vadd.f32 %v2500_v44, %v6756_v46  ;;  %v6757_v32 = vld [vmem:[#allocation51_spill] sm:$0xff] }
 0x58f   :  { %3054 = vmatpush1.msra.mxu0 %v6723_v28  ;;  %3125 = vmatpush1.msra.mxu1 %v6724_v7  ;;  %v2516_v28 = vadd.f32 %v2502_v5, %v6757_v32  ;;  %v2512_v7 = vld [vmem:[#allocation4 + $0xc5] ss:$8 sm:$0xf] }
 0x590   :  { %3055 = vmatprep.subr.mxu0 %v6725_v54  ;;  %3126 = vmatprep.subr.mxu1 %v6726_v19  ;;  %v2514_v54 = vld [vmem:[#allocation4 + $0xe5] ss:$8 sm:$0xf] }
 0x591   :  { %3056 = vmatpush1.msra.mxu0 %v6727_v10  ;;  %3127 = vmatpush1.msra.mxu1 %v6728_v22 }
 0x592   :  { %3057 = vmatprep.subr.mxu0 %v6729_v36  ;;  %3128 = vmatprep.subr.mxu1 %v6730_v42  ;;  %v6758_v42 = vld [vmem:[#allocation54_spill] sm:$0xff] }
 0x593   :  { %3058 = vmatpush1.msra.mxu0 %v6731_v14  ;;  %3129 = vmatpush1.msra.mxu1 %v6732_v62  ;;  %v2517_v14 = vadd.f32 %v2504_v6, %v6758_v42  ;;  %v6759_v62 = vld [vmem:[#allocation55_spill] sm:$0xff] }
 0x594   :  { %3059 = vmatprep.subr.mxu0 %v6733_v16  ;;  %3130 = vmatprep.subr.mxu1 %v6734_v12  ;;  %v2518_v16 = vadd.f32 %v2506_v60, %v6759_v62  ;;  %v6760_v12 = vld [vmem:[#allocation52_spill] sm:$0xff] }
 0x595   :  { %3060 = vmatpush1.msra.mxu0 %v6735_v18  ;;  %3131 = vmatpush1.msra.mxu1 %v6736_v53  ;;  %v2519_v18 = vadd.f32 %v2508_v33, %v6760_v12  ;;  %v6761_v53 = vld [vmem:[#allocation53_spill] sm:$0xff] }
 0x596   :  { %3061 = vmatprep.subr.mxu0 %v6737_v37  ;;  %3132 = vmatprep.subr.mxu1 %v6738_v2  ;;  %v2520_v37 = vadd.f32 %v2510_v26, %v6761_v53 }
 0x597   :  { %3062 = vmatpush1.msra.mxu0 %v6739_v63  ;;  %3133 = vmatpush1.msra.mxu1 %v6740_v61 }
 0x598   :  { %3063 = vmatprep.subr.mxu0 %v6741_v24  ;;  %3134 = vmatprep.subr.mxu1 %v6742_v59  ;;  %v2521_v59 = vadd.f32 %v2512_v7, %v6577_v25 }
 0x599   :  { %3064 = vmatpush1.msra.mxu0 %v6743_v9  ;;  %3135 = vmatpush1.msra.mxu1 %v6744_v56  ;;  %v6762_v9 = vld [vmem:[#allocation57_spill] sm:$0xff] }
 0x59a   :  { %3065 = vmatprep.subr.mxu0 %v6745_v1  ;;  %3136 = vmatprep.subr.mxu1 %v6746_v30  ;;  %v2522_v56 = vadd.f32 %v2514_v54, %v6762_v9 }
 0x59b   :  { %3066 = vmatpush1.msra.mxu0 %v6747_v17  ;;  %3137 = vmatpush1.msra.mxu1 %v6748_v35 }
 0x59c   :  { %3067 = vmatprep.subr.mxu0 %v6749_v48  ;;  %3138 = vmatprep.subr.mxu1 %v6750_v15 }
 0x59d   :  { %3068 = vmatpush1.msra.mxu0 %v6751_v55  ;;  %3101 = vmatprep.mubr.f32.mxu0 %v6752_v31 }
 0x59e   :  { %3139 = vmatpush1.msra.mxu1 %v6753_v13  ;;  %3172 = vmatprep.mubr.f32.mxu1 %v6752_v31 }
 0x59f   :  { %3493 = vmatprep.subr.mxu0 %v6754_v3  ;;  %3564 = vmatprep.subr.mxu1 %v6755_v58 }
 0x63e   :  { %v2647_v0 = vpop.f32.mrf.mxu0  ;;  %v2718_v39 = vpop.f32.mrf.mxu1 }
 0x640   :  { %v2649_v49 = vpop.f32.mrf.mxu0  ;;  %v2720_v21 = vpop.f32.mrf.mxu1 }
 0x641   :  { %v2727_v8 = vcombine.low %v2647_v0, %v2649_v49  ;;  %v2728_v11 = vcombine.high %v2647_v0, %v2649_v49  ;;  %v2729_v52 = vcombine.low %v2718_v39, %v2720_v21  ;;  %v2730_v57 = vcombine.high %v2718_v39, %v2720_v21 }
 0x643   :  { %v2737_v47 = vrot.slane %v2727_v8, %v4974_v50  ;;  %v2744_v23 = vrot.slane %v2728_v11, %v4974_v50  ;;  %v2751_v29 = vrot.slane %v2729_v52, %v4974_v50  ;;  %v2758_v38 = vrot.slane %v2730_v57, %v4974_v50 }
 0x645   :  { %v2759_v19 = vcombine.low %v2737_v47, %v2751_v29  ;;  %v2760_v10 = vcombine.high %v2737_v47, %v2751_v29  ;;  %v2761_v22 = vcombine.low %v2744_v23, %v2758_v38  ;;  %v2762_v36 = vcombine.high %v2744_v23, %v2758_v38 }
 0x647   :  { %v2769_v2 = vrot.slane %v2759_v19, %v4974_v50  ;;  %v2776_v63 = vrot.slane %v2761_v22, %v4974_v50  ;;  %v2783_v61 = vrot.slane %v2760_v10, %v4974_v50  ;;  %v2790_v24 = vrot.slane %v2762_v36, %v4974_v50 }
 0x649   :  { %v2791_v1 = vcombine.high %v2769_v2, %v2769_v2  ;;  %v2792_v30 = vcombine.high %v2776_v63, %v2776_v63  ;;  %v2793_v17 = vcombine.high %v2783_v61, %v2783_v61  ;;  %v2794_v35 = vcombine.high %v2790_v24, %v2790_v24 }
 0x64a   :  { %v2803_v48 = vadd.f32 %v2769_v2, %v2515_v20  ;;  %v2804_v15 = vadd.f32 %v2783_v61, %v2516_v28  ;;  %v2807_v55 = vadd.f32 %v2776_v63, %v2519_v18  ;;  %v2808_v58 = vadd.f32 %v2790_v24, %v2520_v37 }
 0x64b   :  { %v2805_v13 = vadd.f32 %v2791_v1, %v2517_v14  ;;  %v2806_v3 = vadd.f32 %v2793_v17, %v2518_v16  ;;  %v2809_v0 = vadd.f32 %v2792_v30, %v2521_v59  ;;  %v2810_v21 = vadd.f32 %v2794_v35, %v2522_v56 }
 0x64c   :  { %v2811_v39 = vmul.f32 0.5, %v2803_v48  ;;  %v2812_v49 = vmul.f32 0.5, %v2804_v15  ;;  %v2815_v44 = vmul.f32 0.5, %v2807_v55  ;;  %v2816_v5 = vmul.f32 0.5, %v2808_v58 }
 0x64d   :  { %v2813_v8 = vmul.f32 0.5, %v2805_v13  ;;  %v2814_v11 = vmul.f32 0.5, %v2806_v3  ;;  %v2817_v52 = vmul.f32 0.5, %v2809_v0  ;;  %v2818_v57 = vmul.f32 0.5, %v2810_v21 }
 0x64e   :  { %4253 = vtanh.f32 %v2811_v39  ;;  %v2851_v6 = vrot.slane %v2803_v48, 3  ;;  %v2852_v60 = vrot.slane %v2804_v15, 3  ;;  %v2853_v47 = vrot.slane %v2805_v13, 3 }
 0x64f   :  { %4255 = vtanh.f32 %v2812_v49  ;;  %v2854_v23 = vrot.slane %v2806_v3, 3  ;;  %v2855_v33 = vrot.slane %v2807_v55, 3  ;;  %v2856_v26 = vrot.slane %v2808_v58, 3 }
 0x650   :  { %4257 = vtanh.f32 %v2813_v8  ;;  %v2857_v29 = vrot.slane %v2809_v0, 3  ;;  %v2858_v38 = vrot.slane %v2810_v21, 3 }
 0x651   :  { %4259 = vtanh.f32 %v2814_v11 }
 0x652   :  { %4261 = vtanh.f32 %v2815_v44 }
 0x653   :  { %4263 = vtanh.f32 %v2816_v5 }
 0x654   :  { %4265 = vtanh.f32 %v2817_v52 }
 0x655   :  { %4267 = vtanh.f32 %v2818_v57 }
 0x656   :  { %4269 = vtanh.f32 %v2851_v6 }
 0x657   :  { %4271 = vtanh.f32 %v2852_v60 }
 0x658   :  { %4273 = vtanh.f32 %v2853_v47 }
 0x659   :  { %4275 = vtanh.f32 %v2854_v23 }
 0x65a   :  { %4277 = vtanh.f32 %v2855_v33 }
 0x65b   :  { %v4254_v20 = vpop.eup %4253  ;;  %4279 = vtanh.f32 %v2856_v26 }
 0x65c   :  { %v4256_v28 = vpop.eup %4255  ;;  %v2827_v7 = vmul.f32 0.5, %v4254_v20  ;;  %4281 = vtanh.f32 %v2857_v29 }
 0x65d   :  { %v4258_v54 = vpop.eup %4257  ;;  %v2828_v19 = vmul.f32 0.5, %v4256_v28  ;;  %4283 = vtanh.f32 %v2858_v38 }
 0x65e   :  { %v4260_v10 = vpop.eup %4259  ;;  %v2829_v22 = vmul.f32 0.5, %v4258_v54  ;;  %v6081_v36 = vadd.f32 0.5, %v2827_v7 }
 0x65f   :  { %v4262_v14 = vpop.eup %4261  ;;  %v2830_v16 = vmul.f32 0.5, %v4260_v10  ;;  %v6083_v18 = vadd.f32 0.5, %v2828_v19 }
 0x660   :  { %v4264_v37 = vpop.eup %4263  ;;  %v2831_v2 = vmul.f32 0.5, %v4262_v14  ;;  %v6085_v63 = vadd.f32 0.5, %v2829_v22  ;;  %v2883_v61 = vrot.slane %v6081_v36, 1 }
 0x661   :  { %v4266_v24 = vpop.eup %4265  ;;  %v2832_v59 = vmul.f32 0.5, %v4264_v37  ;;  %v6088_v56 = vadd.f32 0.5, %v2830_v16  ;;  %v2884_v1 = vrot.slane %v6083_v18, 1 }
 0x662   :  { %v4268_v30 = vpop.eup %4267  ;;  %v2833_v17 = vmul.f32 0.5, %v4266_v24  ;;  %v6091_v35 = vadd.f32 0.5, %v2831_v2  ;;  %v2885_v48 = vrot.slane %v6085_v63, 1  ;;  %v2899_v15 = vmul.f32 %v2883_v61, %v5952_v43 }
 0x663   :  { %v4270_v55 = vpop.eup %4269  ;;  %v2834_v13 = vmul.f32 0.5, %v4268_v30  ;;  %v6095_v3 = vadd.f32 0.5, %v2832_v59  ;;  %v2886_v58 = vrot.slane %v6088_v56, 1  ;;  %v2900_v0 = vmul.f32 %v2884_v1, %v5957_v34 }
 0x664   :  { %v4272_v39 = vpop.eup %4271  ;;  %v6099_v49 = vadd.f32 0.5, %v2833_v17  ;;  %v2887_v21 = vrot.slane %v6091_v35, 1  ;;  %v2901_v8 = vmul.f32 %v2885_v48, %v5961_v51  ;;  %v2907_v11 = vmul.f32 %v4270_v55, %v6081_v36 }
 0x665   :  { %v4274_v44 = vpop.eup %4273  ;;  %v6104_v5 = vadd.f32 0.5, %v2834_v13  ;;  %v2888_v43 = vrot.slane %v6095_v3, 1  ;;  %v2902_v52 = vmul.f32 %v2886_v58, %v5966_v45  ;;  %v2908_v57 = vmul.f32 %v4272_v39, %v6083_v18 }
 0x666   :  { %v4276_v6 = vpop.eup %4275  ;;  %v2889_v34 = vrot.slane %v6099_v49, 1  ;;  %v2903_v60 = vmul.f32 %v2887_v21, %v5970_v4  ;;  %v2909_v47 = vmul.f32 %v4274_v44, %v6085_v63  ;;  %v6112_v23 = vadd.f32 %v2907_v11, %v2899_v15 }
 0x667   :  { %v4278_v51 = vpop.eup %4277  ;;  %v2890_v33 = vrot.slane %v6104_v5, 1  ;;  %v2904_v26 = vmul.f32 %v2888_v43, %v5974_v40  ;;  %v2910_v29 = vmul.f32 %v4276_v6, %v6088_v56  ;;  %v6117_v38 = vadd.f32 %v2908_v57, %v2900_v0 }
 0x668   :  { %v4280_v45 = vpop.eup %4279  ;;  %v2905_v20 = vmul.f32 %v2889_v34, %v5977_v27  ;;  %v2911_v28 = vmul.f32 %v4278_v51, %v6091_v35  ;;  %v6121_v7 = vadd.f32 %v2909_v47, %v2901_v8  ;;  %4285 = vtanh.f32 %v6112_v23 }
 0x669   :  { %v4282_v4 = vpop.eup %4281  ;;  %v2906_v54 = vmul.f32 %v2890_v33, %v5980_v41  ;;  %v2912_v19 = vmul.f32 %v4280_v45, %v6095_v3  ;;  %v6126_v10 = vadd.f32 %v2910_v29, %v2902_v52  ;;  %4287 = vtanh.f32 %v6117_v38  ;;  %v4525_v45 = vld [vmem:[#allocation7 + $0x1e0] sm:$0xff] }
 0x66a   :  { %v4284_v40 = vpop.eup %4283  ;;  %v2913_v22 = vmul.f32 %v4282_v4, %v6099_v49  ;;  %v6130_v14 = vadd.f32 %v2911_v28, %v2903_v60  ;;  %4289 = vtanh.f32 %v6121_v7  ;;  %v2931_v2 = vrot.slane %v6081_v36, 2  ;;  %v4527_v28 = vld [vmem:[#allocation7 + $0x1c8] sm:$0xff]  ;;  %v4528_v4 = vld [vmem:[#allocation7 + $0x1d8] sm:$0xff] }
 0x66b   :  { %v2914_v27 = vmul.f32 %v4284_v40, %v6104_v5  ;;  %v6134_v16 = vadd.f32 %v2912_v19, %v2904_v26  ;;  %4291 = vtanh.f32 %v6126_v10  ;;  %v2932_v24 = vrot.slane %v6083_v18, 2  ;;  %v4530_v19 = vld [vmem:[#allocation7 + $0x1d0] sm:$0xff]  ;;  %v4531_v40 = vld [vmem:[#allocation7 + $0x1a8] sm:$0xff] }
 0x66c   :  { %v6137_v41 = vadd.f32 %v2913_v22, %v2905_v20  ;;  %4293 = vtanh.f32 %v6130_v14  ;;  %v2933_v1 = vrot.slane %v6085_v63, 2  ;;  %v2934_v48 = vrot.slane %v6088_v56, 2  ;;  %v4526_v20 = vld [vmem:[#allocation7 + $0x1f0] sm:$0xff]  ;;  %v4532_v22 = vld [vmem:[#allocation7 + $0x1b8] sm:$0xff] }
 0x66d   :  { %v6140_v37 = vadd.f32 %v2914_v27, %v2906_v54  ;;  %4295 = vtanh.f32 %v6134_v16  ;;  %v2935_v13 = vrot.slane %v6091_v35, 2  ;;  %v2936_v39 = vrot.slane %v6095_v3, 2  ;;  %v4529_v54 = vld [vmem:[#allocation7 + $0x1c0] sm:$0xff] }
 0x66e   :  { %4297 = vtanh.f32 %v6137_v41  ;;  %v2937_v18 = vrot.slane %v6099_v49, 2  ;;  %v2938_v63 = vrot.slane %v6104_v5, 2  ;;  %v4533_v27 = vld [vmem:[#allocation7 + $0x1a0] sm:$0xff] }
 0x66f   :  { %4299 = vtanh.f32 %v6140_v37 }
 0x675   :  { %v4286_v61 = vpop.eup %4285 }
 0x676   :  { %v4288_v59 = vpop.eup %4287  ;;  %v2947_v30 = vmul.f32 %v4286_v61, %v2931_v2  ;;  %v4534_v2 = vld [vmem:[#allocation7 + $0x1b0] sm:$0xff]  ;;  %v4535_v61 = vld [vmem:[#allocation7 + $0x188] sm:$0xff] }
 0x677   :  { %v4290_v17 = vpop.eup %4289  ;;  %v2948_v15 = vmul.f32 %v4288_v59, %v2932_v24  ;;  %v4536_v24 = vld [vmem:[#allocation7 + $0x198] sm:$0xff]  ;;  %v4537_v59 = vld [vmem:[#allocation7 + $0x180] sm:$0xff] }
 0x678   :  { %v4292_v55 = vpop.eup %4291  ;;  %v2949_v58 = vmul.f32 %v4290_v17, %v2933_v1  ;;  %v4538_v1 = vld [vmem:[#allocation7 + $0x190] sm:$0xff]  ;;  %v4540_v17 = vld [vmem:[#allocation7 + $0x178] sm:$0xff] }
 0x679   :  { %v4294_v0 = vpop.eup %4293  ;;  %v2950_v21 = vmul.f32 %v4292_v55, %v2934_v48  ;;  %v2987_v36 = vcombine.low %v2947_v30, %v2948_v15  ;;  %v4539_v30 = vld [vmem:[#allocation7 + $0x168] sm:$0xff]  ;;  %v4541_v48 = vld [vmem:[#allocation7 + $0x160] sm:$0xff]  ;;  %v4542_v15 = vld [vmem:[#allocation7 + $0x170] sm:$0xff] }
 0x67a   :  { %v4296_v8 = vpop.eup %4295  ;;  %v2951_v11 = vmul.f32 %v4294_v0, %v2935_v13  ;;  %v4543_v55 = vld [vmem:[#allocation7 + $0x148] sm:$0xff]  ;;  %v4544_v13 = vld [vmem:[#allocation7 + $0x158] sm:$0xff]  ;;  %v4546_v0 = vld [vmem:[#allocation7 + $0x150] sm:$0xff] }
 0x67b   :  { %v4298_v44 = vpop.eup %4297  ;;  %v2952_v43 = vmul.f32 %v4296_v8, %v2936_v39  ;;  %v2988_v52 = vcombine.low %v2949_v58, %v2950_v21  ;;  %v2997_v35 = vrot.slane %v2987_v36, %v4974_v50  ;;  %v4545_v58 = vld [vmem:[#allocation7 + $0x140] sm:$0xff]  ;;  %v4547_v39 = vld [vmem:[#allocation7 + $0x128] sm:$0xff]  ;;  %v4548_v21 = vld [vmem:[#allocation7 + $0x138] sm:$0xff] }
 0x67c   :  { %v4300_v56 = vpop.eup %4299  ;;  %v2953_v57 = vmul.f32 %v4298_v44, %v2937_v18  ;;  %v4549_v36 = vld [vmem:[#allocation7 + $0x120] sm:$0xff]  ;;  %v4550_v8 = vld [vmem:[#allocation7 + $0x130] sm:$0xff]  ;;  %v4551_v18 = vld [vmem:[#allocation7 + $0x108] sm:$0xff] }
 0x67d   :  { %v2954_v6 = vmul.f32 %v4300_v56, %v2938_v63  ;;  %v2989_v34 = vcombine.low %v2951_v11, %v2952_v43  ;;  %v3004_v60 = vrot.slane %v2988_v52, %v4974_v50  ;;  %v4552_v11 = vld [vmem:[#allocation7 + $0x118] sm:$0xff]  ;;  %v4553_v44 = vld [vmem:[#allocation7 + $0x100] sm:$0xff]  ;;  %v4554_v63 = vld [vmem:[#allocation7 + $0x110] sm:$0xff] }
 0x67e   :  { %v4555_v43 = vld [vmem:[#allocation7 + $0xe8] sm:$0xff]  ;;  %v4556_v52 = vld [vmem:[#allocation7 + $0xf8] sm:$0xff]  ;;  %v4557_v56 = vld [vmem:[#allocation7 + $0xe0] sm:$0xff] }
 0x67f   :  { %v2990_v3 = vcombine.low %v2953_v57, %v2954_v6  ;;  %v3019_v47 = vcombine.low %v2997_v35, %v3004_v60  ;;  %v3011_v51 = vrot.slane %v2989_v34, %v4974_v50  ;;  %v4558_v57 = vld [vmem:[#allocation7 + $0xf0] sm:$0xff]  ;;  %v4559_v6 = vld [vmem:[#allocation7 + $0xc8] sm:$0xff]  ;;  %v4560_v34 = vld [vmem:[#allocation7 + $0xd8] sm:$0xff] }
 0x680   :  { %v4561_v35 = vld [vmem:[#allocation7 + $0xc0] sm:$0xff]  ;;  %v4562_v60 = vld [vmem:[#allocation7 + $0xd0] sm:$0xff] }
 0x681   :  { %v3018_v49 = vrot.slane %v2990_v3, %v4974_v50  ;;  %v3027_v26 = vrot.slane %v3019_v47, %v4974_v50  ;;  %v4563_v3 = vld [vmem:[#allocation7 + $0xa8] sm:$0xff]  ;;  %v4564_v47 = vld [vmem:[#allocation7 + $0xb8] sm:$0xff] }
 0x683   :  { %v3020_v33 = vcombine.low %v3011_v51, %v3018_v49  ;;  %v4565_v51 = vld [vmem:[#allocation7 + $0xa0] sm:$0xff]  ;;  %v4566_v49 = vld [vmem:[#allocation7 + $0xb0] sm:$0xff] }
 0x685   :  { %v3034_v5 = vrot.slane %v3020_v33, %v4974_v50  ;;  %v4567_v33 = vld [vmem:[#allocation7 + $0x88] sm:$0xff] }
 0x687   :  { %v3035_v29 = vcombine.low %v3027_v26, %v3034_v5  ;;  %v4568_v26 = vld [vmem:[#allocation7 + $0x98] sm:$0xff]  ;;  %v4569_v5 = vld [vmem:[#allocation7 + $0x80] sm:$0xff] }
 0x689   :  { %3102 = vmatmul.mubr.f32.vlgmr.msra.gmra.mxu0 %v3035_v29  ;;  %3173 = vmatmul.mubr.f32.vlgmr.msra.gmra.mxu1 %v3035_v29  ;;  %v4570_v29 = vld [vmem:[#allocation7 + $0x90] sm:$0xff] }
 0x68a   :  { %3494 = vmatpush1.msra.mxu0 %v4525_v45  ;;  %3565 = vmatpush1.msra.mxu1 %v4526_v20  ;;  %v4571_v45 = vld [vmem:[#allocation7 + $0x68] sm:$0xff]  ;;  %v4572_v20 = vld [vmem:[#allocation7 + $0x78] sm:$0xff] }
 0x68b   :  { %3495 = vmatprep.subr.mxu0 %v4527_v28  ;;  %3566 = vmatprep.subr.mxu1 %v4528_v4  ;;  %v4573_v28 = vld [vmem:[#allocation7 + $0x60] sm:$0xff]  ;;  %v4574_v4 = vld [vmem:[#allocation7 + $0x70] sm:$0xff] }
 0x68c   :  { %3496 = vmatpush1.msra.mxu0 %v4529_v54  ;;  %3567 = vmatpush1.msra.mxu1 %v4530_v19  ;;  %v4575_v54 = vld [vmem:[#allocation7 + $0x48] sm:$0xff]  ;;  %v4576_v19 = vld [vmem:[#allocation7 + $0x58] sm:$0xff] }
 0x68d   :  { %3497 = vmatprep.subr.mxu0 %v4531_v40  ;;  %3568 = vmatprep.subr.mxu1 %v4532_v22  ;;  %v4577_v40 = vld [vmem:[#allocation7 + $0x40] sm:$0xff]  ;;  %v4578_v22 = vld [vmem:[#allocation7 + $0x50] sm:$0xff] }
 0x68e   :  { %3498 = vmatpush1.msra.mxu0 %v4533_v27  ;;  %3569 = vmatpush1.msra.mxu1 %v4534_v2  ;;  %v4579_v27 = vld [vmem:[#allocation7 + $0x28] sm:$0xff]  ;;  %v4580_v2 = vld [vmem:[#allocation7 + $0x38] sm:$0xff] }
 0x68f   :  { %3499 = vmatprep.subr.mxu0 %v4535_v61  ;;  %3570 = vmatprep.subr.mxu1 %v4536_v24  ;;  %v4581_v61 = vld [vmem:[#allocation7 + $0x20] sm:$0xff]  ;;  %v4582_v24 = vld [vmem:[#allocation7 + $0x30] sm:$0xff] }
 0x690   :  { %3500 = vmatpush1.msra.mxu0 %v4537_v59  ;;  %3571 = vmatpush1.msra.mxu1 %v4538_v1  ;;  %v4583_v59 = vld [vmem:[#allocation7 + $0x8] sm:$0xff]  ;;  %v4584_v1 = vld [vmem:[#allocation7 + $0x18] sm:$0xff] }
 0x691   :  { %3501 = vmatprep.subr.mxu0 %v4539_v30  ;;  %3572 = vmatprep.subr.mxu1 %v4540_v17  ;;  %v4585_v30 = vld [vmem:[#allocation7] sm:$0xff]  ;;  %v4586_v17 = vld [vmem:[#allocation7 + $0x10] sm:$0xff] }
 0x692   :  { %3502 = vmatpush1.msra.mxu0 %v4541_v48  ;;  %3573 = vmatpush1.msra.mxu1 %v4542_v15 }
 0x693   :  { %3503 = vmatprep.subr.mxu0 %v4543_v55  ;;  %3574 = vmatprep.subr.mxu1 %v4544_v13 }
 0x694   :  { %3504 = vmatpush1.msra.mxu0 %v4545_v58  ;;  %3575 = vmatpush1.msra.mxu1 %v4546_v0 }
 0x695   :  { %3505 = vmatprep.subr.mxu0 %v4547_v39  ;;  %3576 = vmatprep.subr.mxu1 %v4548_v21  ;;  %v2956_v39 = vld [vmem:[#allocation4 + $0x6] ss:$8 sm:$0xf] }
 0x696   :  { %3506 = vmatpush1.msra.mxu0 %v4549_v36  ;;  %3577 = vmatpush1.msra.mxu1 %v4550_v8  ;;  %v2958_v21 = vld [vmem:[#allocation4 + $0x26] ss:$8 sm:$0xf] }
 0x697   :  { %3507 = vmatprep.subr.mxu0 %v4551_v18  ;;  %3578 = vmatprep.subr.mxu1 %v4552_v11  ;;  %v2960_v18 = vld [vmem:[#allocation4 + $0x46] ss:$8 sm:$0xf] }
 0x698   :  { %3508 = vmatpush1.msra.mxu0 %v4553_v44  ;;  %3579 = vmatpush1.msra.mxu1 %v4554_v63  ;;  %v2962_v11 = vld [vmem:[#allocation4 + $0x66] ss:$8 sm:$0xf] }
 0x699   :  { %3509 = vmatprep.subr.mxu0 %v4555_v43  ;;  %3580 = vmatprep.subr.mxu1 %v4556_v52  ;;  %v2964_v43 = vld [vmem:[#allocation4 + $0x86] ss:$8 sm:$0xf] }
 0x69a   :  { %3510 = vmatpush1.msra.mxu0 %v4557_v56  ;;  %3581 = vmatpush1.msra.mxu1 %v4558_v57  ;;  %v2966_v52 = vld [vmem:[#allocation4 + $0xa6] ss:$8 sm:$0xf]  ;;  %v2971_v57 = vadd.f32 %v2956_v39, %v6756_v46 }
 0x69b   :  { %3511 = vmatprep.subr.mxu0 %v4559_v6  ;;  %3582 = vmatprep.subr.mxu1 %v4560_v34  ;;  %v2972_v6 = vadd.f32 %v2958_v21, %v6757_v32  ;;  %v2968_v34 = vld [vmem:[#allocation4 + $0xc6] ss:$8 sm:$0xf] }
 0x69c   :  { %3512 = vmatpush1.msra.mxu0 %v4561_v35  ;;  %3583 = vmatpush1.msra.mxu1 %v4562_v60  ;;  %v2970_v35 = vld [vmem:[#allocation4 + $0xe6] ss:$8 sm:$0xf] }
 0x69d   :  { %3513 = vmatprep.subr.mxu0 %v4563_v3  ;;  %3584 = vmatprep.subr.mxu1 %v4564_v47 }
 0x69e   :  { %3514 = vmatpush1.msra.mxu0 %v4565_v51  ;;  %3585 = vmatpush1.msra.mxu1 %v4566_v49  ;;  %v2973_v49 = vadd.f32 %v2960_v18, %v6758_v42 }
 0x69f   :  { %3515 = vmatprep.subr.mxu0 %v4567_v33  ;;  %3586 = vmatprep.subr.mxu1 %v4568_v26  ;;  %v2974_v33 = vadd.f32 %v2962_v11, %v6759_v62  ;;  %v2975_v26 = vadd.f32 %v2964_v43, %v6760_v12 }
 0x6a0   :  { %3516 = vmatpush1.msra.mxu0 %v4569_v5  ;;  %3587 = vmatpush1.msra.mxu1 %v4570_v29  ;;  %v2976_v5 = vadd.f32 %v2966_v52, %v6761_v53 }
 0x6a1   :  { %3517 = vmatprep.subr.mxu0 %v4571_v45  ;;  %3588 = vmatprep.subr.mxu1 %v4572_v20 }
 0x6a2   :  { %3518 = vmatpush1.msra.mxu0 %v4573_v28  ;;  %3589 = vmatpush1.msra.mxu1 %v4574_v4  ;;  %v2977_v4 = vadd.f32 %v2968_v34, %v6577_v25 }
 0x6a3   :  { %3519 = vmatprep.subr.mxu0 %v4575_v54  ;;  %3590 = vmatprep.subr.mxu1 %v4576_v19  ;;  %v2978_v54 = vadd.f32 %v2970_v35, %v6762_v9 }
 0x6a4   :  { %3520 = vmatpush1.msra.mxu0 %v4577_v40  ;;  %3591 = vmatpush1.msra.mxu1 %v4578_v22 }
 0x6a5   :  { %3521 = vmatprep.subr.mxu0 %v4579_v27  ;;  %3592 = vmatprep.subr.mxu1 %v4580_v2 }
 0x6a6   :  { %3522 = vmatpush1.msra.mxu0 %v4581_v61  ;;  %3593 = vmatpush1.msra.mxu1 %v4582_v24 }
 0x6a7   :  { %3523 = vmatprep.subr.mxu0 %v4583_v59  ;;  %3594 = vmatprep.subr.mxu1 %v4584_v1 }
 0x6a8   :  { %3524 = vmatpush1.msra.mxu0 %v4585_v30  ;;  %3557 = vmatprep.mubr.f32.mxu0 %v6752_v31 }
 0x6a9   :  { %3595 = vmatpush1.msra.mxu1 %v4586_v17  ;;  %3628 = vmatprep.mubr.f32.mxu1 %v6752_v31 }
 0x749   :  { %v3103_v48 = vpop.f32.mrf.mxu0  ;;  %v3174_v15 = vpop.f32.mrf.mxu1 }
 0x74b   :  { %v3105_v55 = vpop.f32.mrf.mxu0  ;;  %v3176_v13 = vpop.f32.mrf.mxu1 }
 0x74c   :  { %v3183_v58 = vcombine.low %v3103_v48, %v3105_v55  ;;  %v3184_v0 = vcombine.high %v3103_v48, %v3105_v55  ;;  %v3185_v36 = vcombine.low %v3174_v15, %v3176_v13  ;;  %v3186_v8 = vcombine.high %v3174_v15, %v3176_v13 }
 0x74e   :  { %v3193_v44 = vrot.slane %v3183_v58, %v4974_v50  ;;  %v3200_v63 = vrot.slane %v3184_v0, %v4974_v50  ;;  %v3207_v31 = vrot.slane %v3185_v36, %v4974_v50  ;;  %v3214_v56 = vrot.slane %v3186_v8, %v4974_v50 }
 0x750   :  { %v3215_v60 = vcombine.low %v3193_v44, %v3207_v31  ;;  %v3216_v3 = vcombine.high %v3193_v44, %v3207_v31  ;;  %v3217_v47 = vcombine.low %v3200_v63, %v3214_v56  ;;  %v3218_v51 = vcombine.high %v3200_v63, %v3214_v56 }
 0x752   :  { %v3225_v29 = vrot.slane %v3215_v60, %v4974_v50  ;;  %v3232_v45 = vrot.slane %v3217_v47, %v4974_v50  ;;  %v3239_v20 = vrot.slane %v3216_v3, %v4974_v50  ;;  %v3246_v28 = vrot.slane %v3218_v51, %v4974_v50 }
 0x754   :  { %v3247_v19 = vcombine.high %v3225_v29, %v3225_v29  ;;  %v3248_v40 = vcombine.high %v3232_v45, %v3232_v45  ;;  %v3249_v22 = vcombine.high %v3239_v20, %v3239_v20  ;;  %v3250_v27 = vcombine.high %v3246_v28, %v3246_v28 }
 0x755   :  { %v3259_v2 = vadd.f32 %v3225_v29, %v2971_v57  ;;  %v3260_v61 = vadd.f32 %v3239_v20, %v2972_v6  ;;  %v3263_v24 = vadd.f32 %v3232_v45, %v2975_v26  ;;  %v3264_v30 = vadd.f32 %v3246_v28, %v2976_v5 }
 0x756   :  { %v3261_v59 = vadd.f32 %v3247_v19, %v2973_v49  ;;  %v3262_v1 = vadd.f32 %v3249_v22, %v2974_v33  ;;  %v3265_v17 = vadd.f32 %v3248_v40, %v2977_v4  ;;  %v3266_v55 = vadd.f32 %v3250_v27, %v2978_v54 }
 0x757   :  { %v3267_v48 = vmul.f32 0.5, %v3259_v2  ;;  %v3268_v15 = vmul.f32 0.5, %v3260_v61  ;;  %v3271_v0 = vmul.f32 0.5, %v3263_v24  ;;  %v3272_v39 = vmul.f32 0.5, %v3264_v30 }
 0x758   :  { %v3269_v13 = vmul.f32 0.5, %v3261_v59  ;;  %v3270_v58 = vmul.f32 0.5, %v3262_v1  ;;  %v3273_v21 = vmul.f32 0.5, %v3265_v17  ;;  %v3274_v36 = vmul.f32 0.5, %v3266_v55 }
 0x759   :  { %4301 = vtanh.f32 %v3267_v48  ;;  %v3307_v8 = vrot.slane %v3259_v2, 3  ;;  %v3308_v18 = vrot.slane %v3260_v61, 3  ;;  %v3309_v11 = vrot.slane %v3261_v59, 3 }
 0x75a   :  { %4303 = vtanh.f32 %v3268_v15  ;;  %v3310_v44 = vrot.slane %v3262_v1, 3  ;;  %v3311_v63 = vrot.slane %v3263_v24, 3  ;;  %v3312_v43 = vrot.slane %v3264_v30, 3 }
 0x75b   :  { %4305 = vtanh.f32 %v3269_v13  ;;  %v3313_v52 = vrot.slane %v3265_v17, 3  ;;  %v3314_v31 = vrot.slane %v3266_v55, 3 }
 0x75c   :  { %4307 = vtanh.f32 %v3270_v58 }
 0x75d   :  { %4309 = vtanh.f32 %v3271_v0 }
 0x75e   :  { %4311 = vtanh.f32 %v3272_v39 }
 0x75f   :  { %4313 = vtanh.f32 %v3273_v21 }
 0x760   :  { %4315 = vtanh.f32 %v3274_v36 }
 0x761   :  { %4317 = vtanh.f32 %v3307_v8 }
 0x762   :  { %4319 = vtanh.f32 %v3308_v18 }
 0x763   :  { %4321 = vtanh.f32 %v3309_v11 }
 0x764   :  { %4323 = vtanh.f32 %v3310_v44 }
 0x765   :  { %4325 = vtanh.f32 %v3311_v63 }
 0x766   :  { %v4302_v56 = vpop.eup %4301  ;;  %4327 = vtanh.f32 %v3312_v43 }
 0x767   :  { %v4304_v57 = vpop.eup %4303  ;;  %v3283_v6 = vmul.f32 0.5, %v4302_v56  ;;  %4329 = vtanh.f32 %v3313_v52 }
 0x768   :  { %v4306_v34 = vpop.eup %4305  ;;  %v3284_v35 = vmul.f32 0.5, %v4304_v57  ;;  %4331 = vtanh.f32 %v3314_v31 }
 0x769   :  { %v4308_v60 = vpop.eup %4307  ;;  %v3285_v3 = vmul.f32 0.5, %v4306_v34  ;;  %v6177_v47 = vadd.f32 0.5, %v3283_v6 }
 0x76a   :  { %v4310_v51 = vpop.eup %4309  ;;  %v3286_v49 = vmul.f32 0.5, %v4308_v60  ;;  %v6179_v33 = vadd.f32 0.5, %v3284_v35 }
 0x76b   :  { %v4312_v26 = vpop.eup %4311  ;;  %v3287_v5 = vmul.f32 0.5, %v4310_v51  ;;  %v6181_v29 = vadd.f32 0.5, %v3285_v3  ;;  %v3339_v45 = vrot.slane %v6177_v47, 1 }
 0x76c   :  { %v4314_v20 = vpop.eup %4313  ;;  %v3288_v28 = vmul.f32 0.5, %v4312_v26  ;;  %v6184_v4 = vadd.f32 0.5, %v3286_v49  ;;  %v3340_v54 = vrot.slane %v6179_v33, 1  ;;  %v3387_v26 = vrot.slane %v6177_v47, 2 }
 0x76d   :  { %v4316_v19 = vpop.eup %4315  ;;  %v3289_v40 = vmul.f32 0.5, %v4314_v20  ;;  %v6187_v22 = vadd.f32 0.5, %v3287_v5  ;;  %v3341_v27 = vrot.slane %v6181_v29, 1  ;;  %v3355_v2 = vmul.f32 %v3339_v45, %v6112_v23 }
 0x76e   :  { %v4318_v61 = vpop.eup %4317  ;;  %v3290_v24 = vmul.f32 0.5, %v4316_v19  ;;  %v6191_v59 = vadd.f32 0.5, %v3288_v28  ;;  %v3342_v1 = vrot.slane %v6184_v4, 1  ;;  %v3356_v30 = vmul.f32 %v3340_v54, %v6117_v38 }
 0x76f   :  { %v4320_v17 = vpop.eup %4319  ;;  %v6195_v48 = vadd.f32 0.5, %v3289_v40  ;;  %v3343_v15 = vrot.slane %v6187_v22, 1  ;;  %v3357_v55 = vmul.f32 %v3341_v27, %v6121_v7  ;;  %v3363_v13 = vmul.f32 %v4318_v61, %v6177_v47 }
 0x770   :  { %v4322_v58 = vpop.eup %4321  ;;  %v6200_v0 = vadd.f32 0.5, %v3290_v24  ;;  %v3344_v23 = vrot.slane %v6191_v59, 1  ;;  %v3358_v39 = vmul.f32 %v3342_v1, %v6126_v10  ;;  %v3364_v21 = vmul.f32 %v4320_v17, %v6179_v33 }
 0x771   :  { %v4324_v36 = vpop.eup %4323  ;;  %v3345_v38 = vrot.slane %v6195_v48, 1  ;;  %v3359_v8 = vmul.f32 %v3343_v15, %v6130_v14  ;;  %v3365_v18 = vmul.f32 %v4322_v58, %v6181_v29  ;;  %v6208_v11 = vadd.f32 %v3363_v13, %v3355_v2 }
 0x772   :  { %v4326_v7 = vpop.eup %4325  ;;  %v3346_v44 = vrot.slane %v6200_v0, 1  ;;  %v3360_v63 = vmul.f32 %v3344_v23, %v6134_v16  ;;  %v3366_v43 = vmul.f32 %v4324_v36, %v6184_v4  ;;  %v6213_v52 = vadd.f32 %v3364_v21, %v3356_v30 }
 0x773   :  { %v4328_v10 = vpop.eup %4327  ;;  %v3361_v31 = vmul.f32 %v3345_v38, %v6137_v41  ;;  %v3367_v56 = vmul.f32 %v4326_v7, %v6187_v22  ;;  %v6217_v57 = vadd.f32 %v3365_v18, %v3357_v55  ;;  %4333 = vtanh.f32 %v6208_v11 }
 0x774   :  { %v4330_v14 = vpop.eup %4329  ;;  %v3362_v6 = vmul.f32 %v3346_v44, %v6140_v37  ;;  %v3368_v34 = vmul.f32 %v4328_v10, %v6191_v59  ;;  %v6222_v35 = vadd.f32 %v3366_v43, %v3358_v39  ;;  %4335 = vtanh.f32 %v6213_v52 }
 0x775   :  { %v4332_v16 = vpop.eup %4331  ;;  %v3369_v60 = vmul.f32 %v4330_v14, %v6195_v48  ;;  %v6226_v3 = vadd.f32 %v3367_v56, %v3359_v8  ;;  %4337 = vtanh.f32 %v6217_v57  ;;  %v3388_v45 = vrot.slane %v6179_v33, 2 }
 0x776   :  { %v3370_v41 = vmul.f32 %v4332_v16, %v6200_v0  ;;  %v6230_v51 = vadd.f32 %v3368_v34, %v3360_v63  ;;  %4339 = vtanh.f32 %v6222_v35  ;;  %v3389_v28 = vrot.slane %v6181_v29, 2  ;;  %v3412_v34 = vld [vmem:[#allocation4 + $0x7] ss:$8 sm:$0xf] }
 0x777   :  { %v6233_v37 = vadd.f32 %v3369_v60, %v3361_v31  ;;  %4341 = vtanh.f32 %v6226_v3  ;;  %v3390_v40 = vrot.slane %v6184_v4, 2  ;;  %v3391_v61 = vrot.slane %v6187_v22, 2  ;;  %v3414_v16 = vld [vmem:[#allocation4 + $0x27] ss:$8 sm:$0xf] }
 0x778   :  { %v6236_v49 = vadd.f32 %v3370_v41, %v3362_v6  ;;  %4343 = vtanh.f32 %v6230_v51  ;;  %v3392_v30 = vrot.slane %v6191_v59, 2  ;;  %v3393_v33 = vrot.slane %v6195_v48, 2 }
 0x779   :  { %4345 = vtanh.f32 %v6233_v37  ;;  %v3394_v29 = vrot.slane %v6200_v0, 2 }
 0x77a   :  { %4347 = vtanh.f32 %v6236_v49 }
 0x780   :  { %v4334_v5 = vpop.eup %4333 }
 0x781   :  { %v4336_v20 = vpop.eup %4335  ;;  %v3403_v54 = vmul.f32 %v4334_v5, %v3387_v26  ;;  %v3416_v26 = vld [vmem:[#allocation4 + $0x47] ss:$8 sm:$0xf] }
 0x782   :  { %v4338_v19 = vpop.eup %4337  ;;  %v3404_v27 = vmul.f32 %v4336_v20, %v3388_v45  ;;  %v3418_v5 = vld [vmem:[#allocation4 + $0x67] ss:$8 sm:$0xf] }
 0x783   :  { %v4340_v2 = vpop.eup %4339  ;;  %v3405_v24 = vmul.f32 %v4338_v19, %v3389_v28  ;;  %v3420_v28 = vld [vmem:[#allocation4 + $0x87] ss:$8 sm:$0xf] }
 0x784   :  { %v4342_v1 = vpop.eup %4341  ;;  %v3406_v17 = vmul.f32 %v4340_v2, %v3390_v40  ;;  %v3443_v47 = vcombine.low %v3403_v54, %v3404_v27  ;;  %v3422_v54 = vld [vmem:[#allocation4 + $0xa7] ss:$8 sm:$0xf]  ;;  %v3427_v27 = vadd.f32 %v3412_v34, %v6756_v46  ;;  %v3428_v2 = vadd.f32 %v3414_v16, %v6757_v32 }
 0x785   :  { %v4344_v15 = vpop.eup %4343  ;;  %v3407_v55 = vmul.f32 %v4342_v1, %v3391_v61  ;;  %v3424_v61 = vld [vmem:[#allocation4 + $0xc7] ss:$8 sm:$0xf] }
 0x786   :  { %v4346_v13 = vpop.eup %4345  ;;  %v3408_v58 = vmul.f32 %v4344_v15, %v3392_v30  ;;  %v3444_v23 = vcombine.low %v3405_v24, %v3406_v17  ;;  %v3453_v22 = vrot.slane %v3443_v47, %v4974_v50  ;;  %v3426_v24 = vld [vmem:[#allocation4 + $0xe7] ss:$8 sm:$0xf]  ;;  %v3429_v15 = vadd.f32 %v3416_v26, %v6758_v42 }
 0x787   :  { %v4348_v4 = vpop.eup %4347  ;;  %v3409_v39 = vmul.f32 %v4346_v13, %v3393_v33  ;;  %v3430_v33 = vadd.f32 %v3418_v5, %v6759_v62  ;;  %v3432_v13 = vadd.f32 %v3422_v54, %v6761_v53 }
 0x788   :  { %v3410_v21 = vmul.f32 %v4348_v4, %v3394_v29  ;;  %v3445_v36 = vcombine.low %v3407_v55, %v3408_v58  ;;  %v3460_v38 = vrot.slane %v3444_v23, %v4974_v50  ;;  %v3431_v55 = vadd.f32 %v3420_v28, %v6760_v12 }
 0x789   :  { %v3433_v23 = vadd.f32 %v3424_v61, %v6577_v25  ;;  %v3434_v4 = vadd.f32 %v3426_v24, %v6762_v9 }
 0x78a   :  { %v3446_v59 = vcombine.low %v3409_v39, %v3410_v21  ;;  %v3475_v8 = vcombine.low %v3453_v22, %v3460_v38  ;;  %v3467_v18 = vrot.slane %v3445_v36, %v4974_v50 }
 0x78c   :  { %v3474_v48 = vrot.slane %v3446_v59, %v4974_v50  ;;  %v3483_v44 = vrot.slane %v3475_v8, %v4974_v50 }
 0x78e   :  { %v3476_v7 = vcombine.low %v3467_v18, %v3474_v48 }
 0x790   :  { %v3490_v0 = vrot.slane %v3476_v7, %v4974_v50 }
 0x792   :  { %v3491_v63 = vcombine.low %v3483_v44, %v3490_v0 }
 0x794   :  { %3558 = vmatmul.mubr.f32.vlgmr.msra.gmra.mxu0 %v3491_v63  ;;  %3629 = vmatmul.mubr.f32.vlgmr.msra.gmra.mxu1 %v3491_v63 }
 0x854   :  { %v3559_v43 = vpop.f32.mrf.mxu0  ;;  %v3630_v10 = vpop.f32.mrf.mxu1 }
 0x856   :  { %v3561_v31 = vpop.f32.mrf.mxu0  ;;  %v3632_v56 = vpop.f32.mrf.mxu1 }
 0x857   :  { %v3639_v14 = vcombine.low %v3559_v43, %v3561_v31  ;;  %v3640_v6 = vcombine.high %v3559_v43, %v3561_v31  ;;  %v3641_v60 = vcombine.low %v3630_v10, %v3632_v56  ;;  %v3642_v41 = vcombine.high %v3630_v10, %v3632_v56 }
 0x859   :  { %v3649_v45 = vrot.slane %v3639_v14, %v4974_v50  ;;  %v3656_v20 = vrot.slane %v3640_v6, %v4974_v50  ;;  %v3663_v19 = vrot.slane %v3641_v60, %v4974_v50  ;;  %v3670_v40 = vrot.slane %v3642_v41, %v4974_v50 }
 0x85b   :  { %v3671_v1 = vcombine.low %v3649_v45, %v3663_v19  ;;  %v3672_v30 = vcombine.high %v3649_v45, %v3663_v19  ;;  %v3673_v17 = vcombine.low %v3656_v20, %v3670_v40  ;;  %v3674_v47 = vcombine.high %v3656_v20, %v3670_v40 }
 0x85d   :  { %v3681_v29 = vrot.slane %v3671_v1, %v4974_v50  ;;  %v3688_v46 = vrot.slane %v3673_v17, %v4974_v50  ;;  %v3695_v32 = vrot.slane %v3672_v30, %v4974_v50  ;;  %v3702_v58 = vrot.slane %v3674_v47, %v4974_v50 }
 0x85f   :  { %v3703_v39 = vcombine.high %v3681_v29, %v3681_v29  ;;  %v3704_v42 = vcombine.high %v3688_v46, %v3688_v46  ;;  %v3705_v21 = vcombine.high %v3695_v32, %v3695_v32  ;;  %v3706_v62 = vcombine.high %v3702_v58, %v3702_v58 }
 0x860   :  { %v3715_v36 = vadd.f32 %v3681_v29, %v3427_v27  ;;  %v3716_v12 = vadd.f32 %v3695_v32, %v3428_v2  ;;  %v3719_v22 = vadd.f32 %v3688_v46, %v3431_v55  ;;  %v3720_v59 = vadd.f32 %v3702_v58, %v3432_v13 }
 0x861   :  { %v3717_v53 = vadd.f32 %v3703_v39, %v3429_v15  ;;  %v3718_v38 = vadd.f32 %v3705_v21, %v3430_v33  ;;  %v3721_v8 = vadd.f32 %v3704_v42, %v3433_v23  ;;  %v3722_v7 = vadd.f32 %v3706_v62, %v3434_v4 }
 0x862   :  { %v3723_v18 = vmul.f32 0.5, %v3715_v36  ;;  %v3724_v48 = vmul.f32 0.5, %v3716_v12  ;;  %v3727_v63 = vmul.f32 0.5, %v3719_v22  ;;  %v3728_v25 = vmul.f32 0.5, %v3720_v59 }
 0x863   :  { %v3725_v44 = vmul.f32 0.5, %v3717_v53  ;;  %v3726_v0 = vmul.f32 0.5, %v3718_v38  ;;  %v3729_v9 = vmul.f32 0.5, %v3721_v8  ;;  %v3730_v43 = vmul.f32 0.5, %v3722_v7 }
 0x864   :  { %4349 = vtanh.f32 %v3723_v18  ;;  %v3763_v10 = vrot.slane %v3715_v36, 3  ;;  %v3764_v31 = vrot.slane %v3716_v12, 3  ;;  %v3765_v56 = vrot.slane %v3717_v53, 3 }
 0x865   :  { %4351 = vtanh.f32 %v3724_v48  ;;  %v3766_v14 = vrot.slane %v3718_v38, 3  ;;  %v3767_v6 = vrot.slane %v3719_v22, 3  ;;  %v3768_v34 = vrot.slane %v3720_v59, 3 }
 0x866   :  { %4353 = vtanh.f32 %v3725_v44  ;;  %v3769_v16 = vrot.slane %v3721_v8, 3  ;;  %v3770_v60 = vrot.slane %v3722_v7, 3 }
 0x867   :  { %4355 = vtanh.f32 %v3726_v0 }
 0x868   :  { %4357 = vtanh.f32 %v3727_v63 }
 0x869   :  { %4359 = vtanh.f32 %v3728_v25 }
 0x86a   :  { %4361 = vtanh.f32 %v3729_v9 }
 0x86b   :  { %4363 = vtanh.f32 %v3730_v43 }
 0x86c   :  { %4365 = vtanh.f32 %v3763_v10 }
 0x86d   :  { %4367 = vtanh.f32 %v3764_v31 }
 0x86e   :  { %4369 = vtanh.f32 %v3765_v56 }
 0x86f   :  { %4371 = vtanh.f32 %v3766_v14 }
 0x870   :  { %4373 = vtanh.f32 %v3767_v6 }
 0x871   :  { %v4350_v41 = vpop.eup %4349  ;;  %4375 = vtanh.f32 %v3768_v34 }
 0x872   :  { %v4352_v26 = vpop.eup %4351  ;;  %v3739_v5 = vmul.f32 0.5, %v4350_v41  ;;  %4377 = vtanh.f32 %v3769_v16 }
 0x873   :  { %v4354_v45 = vpop.eup %4353  ;;  %v3740_v20 = vmul.f32 0.5, %v4352_v26  ;;  %4379 = vtanh.f32 %v3770_v60 }
 0x874   :  { %v4356_v28 = vpop.eup %4355  ;;  %v3741_v54 = vmul.f32 0.5, %v4354_v45  ;;  %v6271_v19 = vadd.f32 0.5, %v3739_v5 }
 0x875   :  { %v4358_v40 = vpop.eup %4357  ;;  %v3742_v27 = vmul.f32 0.5, %v4356_v28  ;;  %v6273_v2 = vadd.f32 0.5, %v3740_v20 }
 0x876   :  { %v4360_v61 = vpop.eup %4359  ;;  %v3743_v24 = vmul.f32 0.5, %v4358_v40  ;;  %v6275_v1 = vadd.f32 0.5, %v3741_v54  ;;  %v3795_v30 = vrot.slane %v6271_v19, 1 }
 0x877   :  { %v4362_v17 = vpop.eup %4361  ;;  %v3744_v47 = vmul.f32 0.5, %v4360_v61  ;;  %v6278_v15 = vadd.f32 0.5, %v3742_v27  ;;  %v3796_v33 = vrot.slane %v6273_v2, 1  ;;  %v3844_v45 = vrot.slane %v6273_v2, 2 }
 0x878   :  { %v4364_v55 = vpop.eup %4363  ;;  %v3745_v13 = vmul.f32 0.5, %v4362_v17  ;;  %v6281_v29 = vadd.f32 0.5, %v3743_v24  ;;  %v3797_v46 = vrot.slane %v6275_v1, 1  ;;  %v3811_v32 = vmul.f32 %v3795_v30, %v6208_v11 }
 0x879   :  { %v4366_v58 = vpop.eup %4365  ;;  %v3746_v23 = vmul.f32 0.5, %v4364_v55  ;;  %v6285_v4 = vadd.f32 0.5, %v3744_v47  ;;  %v3798_v39 = vrot.slane %v6278_v15, 1  ;;  %v3812_v42 = vmul.f32 %v3796_v33, %v6213_v52 }
 0x87a   :  { %v4368_v21 = vpop.eup %4367  ;;  %v6289_v62 = vadd.f32 0.5, %v3745_v13  ;;  %v3799_v36 = vrot.slane %v6281_v29, 1  ;;  %v3813_v12 = vmul.f32 %v3797_v46, %v6217_v57  ;;  %v3819_v22 = vmul.f32 %v4366_v58, %v6271_v19 }
 0x87b   :  { %v4370_v53 = vpop.eup %4369  ;;  %v6294_v38 = vadd.f32 0.5, %v3746_v23  ;;  %v3800_v11 = vrot.slane %v6285_v4, 1  ;;  %v3814_v59 = vmul.f32 %v3798_v39, %v6222_v35  ;;  %v3820_v8 = vmul.f32 %v4368_v21, %v6273_v2 }
 0x87c   :  { %v4372_v18 = vpop.eup %4371  ;;  %v3801_v52 = vrot.slane %v6289_v62, 1  ;;  %v3815_v48 = vmul.f32 %v3799_v36, %v6226_v3  ;;  %v3821_v7 = vmul.f32 %v4370_v53, %v6275_v1  ;;  %v3827_v44 = vadd.f32 %v3819_v22, %v3811_v32 }
 0x87d   :  { %v4374_v57 = vpop.eup %4373  ;;  %v3802_v0 = vrot.slane %v6294_v38, 1  ;;  %v3816_v63 = vmul.f32 %v3800_v11, %v6230_v51  ;;  %v3822_v25 = vmul.f32 %v4372_v18, %v6278_v15  ;;  %v3828_v9 = vadd.f32 %v3820_v8, %v3812_v42 }
 0x87e   :  { %v4376_v43 = vpop.eup %4375  ;;  %v3817_v35 = vmul.f32 %v3801_v52, %v6233_v37  ;;  %v3823_v10 = vmul.f32 %v4374_v57, %v6281_v29  ;;  %v3829_v31 = vadd.f32 %v3821_v7, %v3813_v12  ;;  %4381 = vtanh.f32 %v3827_v44 }
 0x87f   :  { %v4378_v56 = vpop.eup %4377  ;;  %v3818_v3 = vmul.f32 %v3802_v0, %v6236_v49  ;;  %v3824_v14 = vmul.f32 %v4376_v43, %v6285_v4  ;;  %v3830_v6 = vadd.f32 %v3822_v25, %v3814_v59  ;;  %4383 = vtanh.f32 %v3828_v9 }
 0x880   :  { %v4380_v34 = vpop.eup %4379  ;;  %v3825_v51 = vmul.f32 %v4378_v56, %v6289_v62  ;;  %v3831_v16 = vadd.f32 %v3823_v10, %v3815_v48  ;;  %4385 = vtanh.f32 %v3829_v31  ;;  %v3843_v49 = vrot.slane %v6271_v19, 2 }
 0x881   :  { %v3826_v60 = vmul.f32 %v4380_v34, %v6294_v38  ;;  %v3832_v41 = vadd.f32 %v3824_v14, %v3816_v63  ;;  %4387 = vtanh.f32 %v3830_v6  ;;  %v3845_v28 = vrot.slane %v6275_v1, 2 }
 0x882   :  { %v3833_v37 = vadd.f32 %v3825_v51, %v3817_v35  ;;  %4389 = vtanh.f32 %v3831_v16  ;;  %v3846_v27 = vrot.slane %v6278_v15, 2  ;;  %v3847_v30 = vrot.slane %v6281_v29, 2 }
 0x883   :  { %v3834_v26 = vadd.f32 %v3826_v60, %v3818_v3  ;;  %4391 = vtanh.f32 %v3832_v41  ;;  %v3848_v33 = vrot.slane %v6285_v4, 2  ;;  %v3849_v2 = vrot.slane %v6289_v62, 2 }
 0x884   :  { %4393 = vtanh.f32 %v3833_v37  ;;  %v3850_v1 = vrot.slane %v6294_v38, 2 }
 0x885   :  { %4395 = vtanh.f32 %v3834_v26 }
 0x88b   :  { %v4382_v5 = vpop.eup %4381 }
 0x88c   :  { %v4384_v20 = vpop.eup %4383  ;;  %v3859_v54 = vmul.f32 %v4382_v5, %v3843_v49 }
 0x88d   :  { %v4386_v40 = vpop.eup %4385  ;;  %v3860_v61 = vmul.f32 %v4384_v20, %v3844_v45 }
 0x88e   :  { %v4388_v24 = vpop.eup %4387  ;;  %v3861_v17 = vmul.f32 %v4386_v40, %v3845_v28 }
 0x88f   :  { %v4390_v47 = vpop.eup %4389  ;;  %v3862_v55 = vmul.f32 %v4388_v24, %v3846_v27  ;;  %v3875_v19 = vcombine.low %v3859_v54, %v3860_v61 }
 0x890   :  { %v4392_v13 = vpop.eup %4391  ;;  %v3863_v46 = vmul.f32 %v4390_v47, %v3847_v30 }
 0x891   :  { %v4394_v32 = vpop.eup %4393  ;;  %v3864_v58 = vmul.f32 %v4392_v13, %v3848_v33  ;;  %v3876_v23 = vcombine.low %v3861_v17, %v3862_v55  ;;  %v3885_v29 = vrot.slane %v3875_v19, %v4974_v50 }
 0x892   :  { %v4396_v15 = vpop.eup %4395  ;;  %v3865_v39 = vmul.f32 %v4394_v32, %v3849_v2 }
 0x893   :  { %v3866_v42 = vmul.f32 %v4396_v15, %v3850_v1  ;;  %v3877_v21 = vcombine.low %v3863_v46, %v3864_v58  ;;  %v3892_v36 = vrot.slane %v3876_v23, %v4974_v50 }
 0x895   :  { %v3878_v4 = vcombine.low %v3865_v39, %v3866_v42  ;;  %v3907_v12 = vcombine.low %v3885_v29, %v3892_v36  ;;  %v3899_v22 = vrot.slane %v3877_v21, %v4974_v50 }
 0x897   :  { %v3906_v62 = vrot.slane %v3878_v4, %v4974_v50  ;;  %v3915_v11 = vrot.slane %v3907_v12, %v4974_v50 }
 0x899   :  { %v3908_v53 = vcombine.low %v3899_v22, %v3906_v62 }
 0x89b   :  { %v3922_v38 = vrot.slane %v3908_v53, %v4974_v50 }
 0x89d   :  { %v3923_v59 = vcombine.low %v3915_v11, %v3922_v38 }
 0x89f   :  { %3988 = vst [vmem:[#allocation10] sm:$0xff] %v3923_v59 }
 0x8a0   :  { %4658 = shalt.err (!%p4655_p5)
}
 0x8a1   :  { %3998 = dma.vmem_to_hbm [thread:$0]  %s3996_s2, 128, %s6331_s3, [#allocation6]  }
 0x8a2   :  { %4671 = dma.done.wait [#allocation6], 128  }
 0x8a3   :  { %4672 = vsyncadd [#allocation6], 4294967168 }
 0x8a4   :  { %4002 = vsyncpa [#allocation5], 1 }
 0x8a5   :  { %4003 = vsyncpa [#allocation8], 1 }
 0x8a6   :  { %4004 = vsyncpa [#allocation6], 1 }

</bundles_post_ra>
